<compile_context>
chip_gen: v7x
topology: tpu7x:2x2x1
jax: 0.10.0
libtpu: 0.0.40
codegen_flags: <defaults>
</compile_context>

<pallas_src>
import math
import functools

import jax
import jax.numpy as jnp
from jax import lax
from jax.experimental import pallas as pl
from jax.experimental.pallas import tpu as pltpu


def _layer_kernel(xf_ref, xq_ref, wqkv_ref, wo_ref, w1_ref, w2_ref, vec_ref,
                  o_ref, *, nhead):
    """One full SelfAttentionLayer forward for one (batch, query-tile)."""
    f32 = jnp.float32
    bf16 = jnp.bfloat16

    xf = xf_ref[0]                       # (C, S) f32 — full sequence (K/V source)
    xq = xq_ref[0]                       # (C, T) f32 — query tile (+ residual)
    C, S = xf.shape
    T = xq.shape[1]
    hd = C // nhead

    wqkv = wqkv_ref[...]                 # (3C, C)  bf16 (q-rows pre-scaled)
    wo = wo_ref[...]                     # (C, C)   bf16
    w1 = w1_ref[...]                     # (dff, C) bf16
    w2 = w2_ref[...]                     # (C, dff) bf16
    vec = vec_ref[...]                   # (R, 8)   f32 packed bias/LN slab
    dff = w1.shape[0]

    bq_col = vec[0:C, 0:1]               # already scaled by 1/sqrt(hd)
    bkv_col = vec[C:3 * C, 0:1]
    b1_col = vec[0:dff, 1:2]
    bo_col = vec[0:C, 2:3]
    b2_col = vec[0:C, 3:4]
    g1_col = vec[0:C, 4:5]
    be1_col = vec[0:C, 5:6]
    g2_col = vec[0:C, 6:7]
    be2_col = vec[0:C, 7:8]

    # ---- fused in-projection (bf16 operands on MXU, f32 accumulation) ----
    q = jnp.dot(wqkv[0:C, :], xq.astype(bf16),
                preferred_element_type=f32) + bq_col            # (C, T)
    kv = jnp.dot(wqkv[C:3 * C, :], xf.astype(bf16),
                 preferred_element_type=f32) + bkv_col          # (2C, S)
    q_b = q.astype(bf16)
    kv_b = kv.astype(bf16)

    ones_row = jnp.ones((1, S), bf16)

    # ---- multi-head attention: heads are sublane blocks, no concatenate ----
    attn = jnp.zeros((C, T), f32)
    for h in range(nhead):                                      # static unroll
        qh = q_b[h * hd:(h + 1) * hd, :]                        # (hd, T)
        kh = kv_b[h * hd:(h + 1) * hd, :]                       # (hd, S)
        vh = kv_b[C + h * hd:C + (h + 1) * hd, :]               # (hd, S)

        s = lax.dot_general(qh, kh, (((0,), (0,)), ((), ())),
                            preferred_element_type=f32)         # (T, S)
        s = s - jnp.max(s, axis=-1, keepdims=True)
        p = jnp.exp(s).astype(bf16)                             # (T, S)

        o_un = lax.dot_general(vh, p, (((1,), (1,)), ((), ())),
                               preferred_element_type=f32)      # (hd, T)
        den = lax.dot_general(ones_row, p, (((1,), (1,)), ((), ())),
                              preferred_element_type=f32)       # (1, T)
        # deferred softmax normalisation on the small (hd, T) output; EUP recip
        o_h = o_un * pl.reciprocal(den, approx=True)
        attn = attn + jnp.dot(wo[:, h * hd:(h + 1) * hd], o_h.astype(bf16),
                              preferred_element_type=f32)
    attn = attn + bo_col

    # ---- residual + LayerNorm1 (channels = sublane axis, f32) ----
    y = xq + attn
    mu = jnp.mean(y, axis=0, keepdims=True)
    yc = y - mu
    var = jnp.mean(yc * yc, axis=0, keepdims=True)
    y = yc * lax.rsqrt(var + 1e-5) * g1_col + be1_col

    # ---- feed-forward: linear2(relu(linear1(y))) ----
    h1 = jnp.dot(w1, y.astype(bf16), preferred_element_type=f32) + b1_col
    h1 = jnp.maximum(h1, 0.0)
    h2 = jnp.dot(w2, h1.astype(bf16), preferred_element_type=f32) + b2_col

    # ---- residual + LayerNorm2 ----
    z = y + h2
    mu2 = jnp.mean(z, axis=0, keepdims=True)
    zc = z - mu2
    var2 = jnp.mean(zc * zc, axis=0, keepdims=True)
    z = zc * lax.rsqrt(var2 + 1e-5) * g2_col + be2_col

    o_ref[0] = z.astype(o_ref.dtype)


def _run_layer(x_bcs, params, nhead):
    """x_bcs: (B, C, S) f32. Runs one SelfAttentionLayer via one pallas_call."""
    B, C, S = x_bcs.shape
    dff = params["w1"].shape[0]
    hd = C // nhead
    scale = 1.0 / math.sqrt(hd)

    # Pre-pack weights once (no per-layer transposes needed in channels-major):
    # fused QKV weight with the query scale folded into the q rows, bf16 for MXU.
    w3 = params["in_proj_w"]                                    # (3C, C)
    b3 = params["in_proj_b"]                                    # (3C,)
    wqkv = jnp.concatenate([w3[0:C] * scale, w3[C:]], axis=0).astype(jnp.bfloat16)
    wo = params["out_w"].astype(jnp.bfloat16)                   # (C, C)
    w1 = params["w1"].astype(jnp.bfloat16)                      # (dff, C)
    w2 = params["w2"].astype(jnp.bfloat16)                      # (C, dff)

    # Pack all small vectors (biases + LN affine) into ONE f32 slab -> 1 DMA.
    R = max(dff, 3 * C)
    vec = jnp.zeros((R, 8), jnp.float32)
    vec = vec.at[0:3 * C, 0].set(jnp.concatenate([b3[0:C] * scale, b3[C:]]))
    vec = vec.at[0:dff, 1].set(params["b1"])
    vec = vec.at[0:C, 2].set(params["out_b"])
    vec = vec.at[0:C, 3].set(params["b2"])
    vec = vec.at[0:C, 4].set(params["g1"])
    vec = vec.at[0:C, 5].set(params["be1"])
    vec = vec.at[0:C, 6].set(params["g2"])
    vec = vec.at[0:C, 7].set(params["be2"])

    # Query-tile the sequence so the (T, S) score block stays bounded.
    TQ = 256 if (S > 256 and S % 256 == 0) else S
    assert S % TQ == 0
    grid = (B, S // TQ)

    const = lambda b, t: (0, 0)
    in_specs = [
        pl.BlockSpec((1, C, S), lambda b, t: (b, 0, 0)),    # full x (K/V source)
        pl.BlockSpec((1, C, TQ), lambda b, t: (b, 0, t)),   # query tile of x
        pl.BlockSpec(wqkv.shape, const),
        pl.BlockSpec(wo.shape, const),
        pl.BlockSpec(w1.shape, const),
        pl.BlockSpec(w2.shape, const),
        pl.BlockSpec(vec.shape, const),
    ]

    return pl.pallas_call(
        functools.partial(_layer_kernel, nhead=nhead),
        out_shape=jax.ShapeDtypeStruct((B, C, S), x_bcs.dtype),
        grid=grid,
        in_specs=in_specs,
        out_specs=pl.BlockSpec((1, C, TQ), lambda b, t: (b, 0, t)),
        compiler_params=pltpu.CompilerParams(
            dimension_semantics=("parallel", "parallel")),
    )(x_bcs, x_bcs, wqkv, wo, w1, w2, vec)


def self_attention_forward(src_nchw, layer_params, nhead=2):
    """Equivalent of SelfAttention.forward. src_nchw: (B, C, H, W)."""
    B, C, H, W = src_nchw.shape
    x = src_nchw.reshape(B, C, H * W)        # (B, C, S): channels-major, free
    for p in layer_params:
        x = _run_layer(x, p, nhead)
    return x.reshape(B, C, H, W)             # free reshape back to NCHW


def init_layer_params(key, d_model, dff=256):
    ks = jax.random.split(key, 6)

    def xavier(k, shape):
        fan_out, fan_in = shape
        bound = math.sqrt(6.0 / (fan_in + fan_out))
        return jax.random.uniform(k, shape, jnp.float32, -bound, bound)

    def kaiming_uniform(k, shape):
        fan_in = shape[1]
        bound = math.sqrt(1.0 / fan_in)
        return jax.random.uniform(k, shape, jnp.float32, -bound, bound)

    return dict(
        in_proj_w=xavier(ks[0], (3 * d_model, d_model)),
        in_proj_b=jnp.zeros((3 * d_model,), jnp.float32),
        out_w=xavier(ks[1], (d_model, d_model)),
        out_b=jnp.zeros((d_model,), jnp.float32),
        w1=kaiming_uniform(ks[2], (dff, d_model)),
        b1=jax.random.uniform(ks[3], (dff,), jnp.float32,
                              -1.0 / math.sqrt(d_model), 1.0 / math.sqrt(d_model)),
        w2=kaiming_uniform(ks[4], (d_model, dff)),
        b2=jax.random.uniform(ks[5], (d_model,), jnp.float32,
                              -1.0 / math.sqrt(dff), 1.0 / math.sqrt(dff)),
        g1=jnp.ones((d_model,), jnp.float32),
        be1=jnp.zeros((d_model,), jnp.float32),
        g2=jnp.ones((d_model,), jnp.float32),
        be2=jnp.zeros((d_model,), jnp.float32),
    )


if __name__ == "__main__":
    key = jax.random.PRNGKey(0)
    k_x, k_p = jax.random.split(key)

    B, C, H, W = 2, 4, 16, 16       # channels=4 (d_model), nhead=2 -> head_dim=2
    n_layers = 2

    src = jax.random.normal(k_x, (B, C, H, W), dtype=jnp.float32)
    layer_keys = jax.random.split(k_p, n_layers)
    params = [init_layer_params(lk, d_model=C, dff=256) for lk in layer_keys]

    fwd = jax.jit(functools.partial(self_attention_forward, nhead=2))
    out = fwd(src, params)
    out = jax.block_until_ready(out)
    assert out.shape == (B, C, H, W)
    assert jnp.all(jnp.isfinite(out))
    print("KERNEL_OK")
</pallas_src>

<mosaic_0001>
module attributes {stable_mosaic.version = 11 : i64} {
  func.func @_layer_kernel(%arg0: i32, %arg1: i32, %arg2: memref<1x4x256xf32, #tpu.memory_space<vmem>>, %arg3: memref<1x4x256xf32, #tpu.memory_space<vmem>>, %arg4: memref<12x4xbf16, #tpu.memory_space<vmem>>, %arg5: memref<4x4xbf16, #tpu.memory_space<vmem>>, %arg6: memref<256x4xbf16, #tpu.memory_space<vmem>>, %arg7: memref<4x256xbf16, #tpu.memory_space<vmem>>, %arg8: memref<256x8xf32, #tpu.memory_space<vmem>>, %arg9: memref<1x4x256xf32, #tpu.memory_space<vmem>>) attributes {dimension_semantics = [#tpu.dimension_semantics<parallel>, #tpu.dimension_semantics<parallel>], iteration_bounds = array<i64: 2, 1>, scalar_prefetch = 0 : i64, scratch_operands = 0 : i64, tpu.core_type = #tpu.core_type<tc>, window_params = [{transform_indices = @transform_0, window_bounds = array<i64: 1, 4, 256>}, {transform_indices = @transform_1, window_bounds = array<i64: 1, 4, 256>}, {pipeline_mode = #tpu.pipeline_mode<synchronous>, transform_indices = @transform_2, window_bounds = array<i64: 12, 4>}, {pipeline_mode = #tpu.pipeline_mode<synchronous>, transform_indices = @transform_3, window_bounds = array<i64: 4, 4>}, {pipeline_mode = #tpu.pipeline_mode<synchronous>, transform_indices = @transform_4, window_bounds = array<i64: 256, 4>}, {pipeline_mode = #tpu.pipeline_mode<synchronous>, transform_indices = @transform_5, window_bounds = array<i64: 4, 256>}, {pipeline_mode = #tpu.pipeline_mode<synchronous>, transform_indices = @transform_6, window_bounds = array<i64: 256, 8>}, {transform_indices = @transform_7, window_bounds = array<i64: 1, 4, 256>}]} {
    %c0 = arith.constant 0 : index
    %c0_0 = arith.constant 0 : index
    %c0_1 = arith.constant 0 : index
    %0 = vector.load %arg2[%c0, %c0_0, %c0_1] : memref<1x4x256xf32, #tpu.memory_space<vmem>>, vector<1x4x256xf32>
    %1 = vector.shape_cast %0 : vector<1x4x256xf32> to vector<4x256xf32>
    %c0_2 = arith.constant 0 : index
    %c0_3 = arith.constant 0 : index
    %c0_4 = arith.constant 0 : index
    %2 = vector.load %arg3[%c0_2, %c0_3, %c0_4] : memref<1x4x256xf32, #tpu.memory_space<vmem>>, vector<1x4x256xf32>
    %3 = vector.shape_cast %2 : vector<1x4x256xf32> to vector<4x256xf32>
    %c0_5 = arith.constant 0 : index
    %c0_6 = arith.constant 0 : index
    %4 = vector.load %arg4[%c0_5, %c0_6] : memref<12x4xbf16, #tpu.memory_space<vmem>>, vector<12x4xbf16>
    %c0_7 = arith.constant 0 : index
    %c0_8 = arith.constant 0 : index
    %5 = vector.load %arg5[%c0_7, %c0_8] : memref<4x4xbf16, #tpu.memory_space<vmem>>, vector<4x4xbf16>
    %c0_9 = arith.constant 0 : index
    %c0_10 = arith.constant 0 : index
    %6 = vector.load %arg6[%c0_9, %c0_10] : memref<256x4xbf16, #tpu.memory_space<vmem>>, vector<256x4xbf16>
    %c0_11 = arith.constant 0 : index
    %c0_12 = arith.constant 0 : index
    %7 = vector.load %arg7[%c0_11, %c0_12] : memref<4x256xbf16, #tpu.memory_space<vmem>>, vector<4x256xbf16>
    %c0_13 = arith.constant 0 : index
    %c0_14 = arith.constant 0 : index
    %8 = vector.load %arg8[%c0_13, %c0_14] : memref<256x8xf32, #tpu.memory_space<vmem>>, vector<256x8xf32>
    %9 = vector.extract_strided_slice %8 {offsets = [0, 0], sizes = [4, 1], strides = [1, 1]} : vector<256x8xf32> to vector<4x1xf32>
    %10 = vector.extract_strided_slice %8 {offsets = [4, 0], sizes = [8, 1], strides = [1, 1]} : vector<256x8xf32> to vector<8x1xf32>
    %11 = vector.extract_strided_slice %8 {offsets = [0, 1], sizes = [256, 1], strides = [1, 1]} : vector<256x8xf32> to vector<256x1xf32>
    %12 = vector.extract_strided_slice %8 {offsets = [0, 2], sizes = [4, 1], strides = [1, 1]} : vector<256x8xf32> to vector<4x1xf32>
    %13 = vector.extract_strided_slice %8 {offsets = [0, 3], sizes = [4, 1], strides = [1, 1]} : vector<256x8xf32> to vector<4x1xf32>
    %14 = vector.extract_strided_slice %8 {offsets = [0, 4], sizes = [4, 1], strides = [1, 1]} : vector<256x8xf32> to vector<4x1xf32>
    %15 = vector.extract_strided_slice %8 {offsets = [0, 5], sizes = [4, 1], strides = [1, 1]} : vector<256x8xf32> to vector<4x1xf32>
    %16 = vector.extract_strided_slice %8 {offsets = [0, 6], sizes = [4, 1], strides = [1, 1]} : vector<256x8xf32> to vector<4x1xf32>
    %17 = vector.extract_strided_slice %8 {offsets = [0, 7], sizes = [4, 1], strides = [1, 1]} : vector<256x8xf32> to vector<4x1xf32>
    %18 = vector.extract_strided_slice %4 {offsets = [0, 0], sizes = [4, 4], strides = [1, 1]} : vector<12x4xbf16> to vector<4x4xbf16>
    %19 = arith.truncf %3 : vector<4x256xf32> to vector<4x256xbf16>
    %cst = arith.constant dense<0.000000e+00> : vector<4x256xf32>
    %20 = tpu.matmul %18, %19, %cst {dimension_numbers = #tpu.dot_dimension_numbers<[1], [0], [0], [1], [0, 0, 1, 1], [], []>} : vector<4x4xbf16>, vector<4x256xbf16>, vector<4x256xf32> -> vector<4x256xf32>
    %21 = vector.broadcast %9 : vector<4x1xf32> to vector<4x256xf32>
    %22 = arith.addf %20, %21 : vector<4x256xf32>
    %23 = vector.extract_strided_slice %4 {offsets = [4, 0], sizes = [8, 4], strides = [1, 1]} : vector<12x4xbf16> to vector<8x4xbf16>
    %24 = arith.truncf %1 : vector<4x256xf32> to vector<4x256xbf16>
    %cst_15 = arith.constant dense<0.000000e+00> : vector<8x256xf32>
    %25 = tpu.matmul %23, %24, %cst_15 {dimension_numbers = #tpu.dot_dimension_numbers<[1], [0], [0], [1], [0, 0, 1, 1], [], []>} : vector<8x4xbf16>, vector<4x256xbf16>, vector<8x256xf32> -> vector<8x256xf32>
    %26 = vector.broadcast %10 : vector<8x1xf32> to vector<8x256xf32>
    %27 = arith.addf %25, %26 : vector<8x256xf32>
    %28 = arith.truncf %22 : vector<4x256xf32> to vector<4x256xbf16>
    %29 = arith.truncf %27 : vector<8x256xf32> to vector<8x256xbf16>
    %cst_16 = arith.constant 1.000000e+00 : bf16
    %30 = vector.broadcast %cst_16 : bf16 to vector<1x256xbf16>
    %cst_17 = arith.constant 0.000000e+00 : f32
    %31 = vector.broadcast %cst_17 : f32 to vector<4x256xf32>
    %32 = vector.extract_strided_slice %28 {offsets = [0, 0], sizes = [2, 256], strides = [1, 1]} : vector<4x256xbf16> to vector<2x256xbf16>
    %33 = vector.extract_strided_slice %29 {offsets = [0, 0], sizes = [2, 256], strides = [1, 1]} : vector<8x256xbf16> to vector<2x256xbf16>
    %34 = vector.extract_strided_slice %29 {offsets = [4, 0], sizes = [2, 256], strides = [1, 1]} : vector<8x256xbf16> to vector<2x256xbf16>
    %cst_18 = arith.constant dense<0.000000e+00> : vector<256x256xf32>
    %35 = tpu.matmul %32, %33, %cst_18 {dimension_numbers = #tpu.dot_dimension_numbers<[0], [0], [1], [1], [0, 1, 1, 1], [], []>} : vector<2x256xbf16>, vector<2x256xbf16>, vector<256x256xf32> -> vector<256x256xf32>
    %cst_19 = arith.constant dense<0xFF800000> : vector<256xf32>
    %36 = vector.multi_reduction <maximumf>, %35, %cst_19 [1] : vector<256x256xf32> to vector<256xf32>
    %37 = vector.shape_cast %36 : vector<256xf32> to vector<256x1xf32>
    %38 = vector.broadcast %37 : vector<256x1xf32> to vector<256x256xf32>
    %39 = arith.subf %35, %38 : vector<256x256xf32>
    %40 = math.exp %39 : vector<256x256xf32>
    %41 = arith.truncf %40 : vector<256x256xf32> to vector<256x256xbf16>
    %cst_20 = arith.constant dense<0.000000e+00> : vector<2x256xf32>
    %42 = tpu.matmul %34, %41, %cst_20 {dimension_numbers = #tpu.dot_dimension_numbers<[1], [1], [0], [0], [0, 0, 1, 0], [], []>} : vector<2x256xbf16>, vector<256x256xbf16>, vector<2x256xf32> -> vector<2x256xf32>
    %cst_21 = arith.constant dense<0.000000e+00> : vector<1x256xf32>
    %43 = tpu.matmul %30, %41, %cst_21 {dimension_numbers = #tpu.dot_dimension_numbers<[1], [1], [0], [0], [0, 0, 1, 0], [], []>} : vector<1x256xbf16>, vector<256x256xbf16>, vector<1x256xf32> -> vector<1x256xf32>
    %44 = tpu.reciprocal %43 {approx = true} : vector<1x256xf32> -> vector<1x256xf32>
    %45 = vector.broadcast %44 : vector<1x256xf32> to vector<2x256xf32>
    %46 = arith.mulf %42, %45 : vector<2x256xf32>
    %47 = vector.extract_strided_slice %5 {offsets = [0, 0], sizes = [4, 2], strides = [1, 1]} : vector<4x4xbf16> to vector<4x2xbf16>
    %48 = arith.truncf %46 : vector<2x256xf32> to vector<2x256xbf16>
    %cst_22 = arith.constant dense<0.000000e+00> : vector<4x256xf32>
    %49 = tpu.matmul %47, %48, %cst_22 {dimension_numbers = #tpu.dot_dimension_numbers<[1], [0], [0], [1], [0, 0, 1, 1], [], []>} : vector<4x2xbf16>, vector<2x256xbf16>, vector<4x256xf32> -> vector<4x256xf32>
    %50 = arith.addf %31, %49 : vector<4x256xf32>
    %51 = vector.extract_strided_slice %28 {offsets = [2, 0], sizes = [2, 256], strides = [1, 1]} : vector<4x256xbf16> to vector<2x256xbf16>
    %52 = vector.extract_strided_slice %29 {offsets = [2, 0], sizes = [2, 256], strides = [1, 1]} : vector<8x256xbf16> to vector<2x256xbf16>
    %53 = vector.extract_strided_slice %29 {offsets = [6, 0], sizes = [2, 256], strides = [1, 1]} : vector<8x256xbf16> to vector<2x256xbf16>
    %cst_23 = arith.constant dense<0.000000e+00> : vector<256x256xf32>
    %54 = tpu.matmul %51, %52, %cst_23 {dimension_numbers = #tpu.dot_dimension_numbers<[0], [0], [1], [1], [0, 1, 1, 1], [], []>} : vector<2x256xbf16>, vector<2x256xbf16>, vector<256x256xf32> -> vector<256x256xf32>
    %cst_24 = arith.constant dense<0xFF800000> : vector<256xf32>
    %55 = vector.multi_reduction <maximumf>, %54, %cst_24 [1] : vector<256x256xf32> to vector<256xf32>
    %56 = vector.shape_cast %55 : vector<256xf32> to vector<256x1xf32>
    %57 = vector.broadcast %56 : vector<256x1xf32> to vector<256x256xf32>
    %58 = arith.subf %54, %57 : vector<256x256xf32>
    %59 = math.exp %58 : vector<256x256xf32>
    %60 = arith.truncf %59 : vector<256x256xf32> to vector<256x256xbf16>
    %cst_25 = arith.constant dense<0.000000e+00> : vector<2x256xf32>
    %61 = tpu.matmul %53, %60, %cst_25 {dimension_numbers = #tpu.dot_dimension_numbers<[1], [1], [0], [0], [0, 0, 1, 0], [], []>} : vector<2x256xbf16>, vector<256x256xbf16>, vector<2x256xf32> -> vector<2x256xf32>
    %cst_26 = arith.constant dense<0.000000e+00> : vector<1x256xf32>
    %62 = tpu.matmul %30, %60, %cst_26 {dimension_numbers = #tpu.dot_dimension_numbers<[1], [1], [0], [0], [0, 0, 1, 0], [], []>} : vector<1x256xbf16>, vector<256x256xbf16>, vector<1x256xf32> -> vector<1x256xf32>
    %63 = tpu.reciprocal %62 {approx = true} : vector<1x256xf32> -> vector<1x256xf32>
    %64 = vector.broadcast %63 : vector<1x256xf32> to vector<2x256xf32>
    %65 = arith.mulf %61, %64 : vector<2x256xf32>
    %66 = vector.extract_strided_slice %5 {offsets = [0, 2], sizes = [4, 2], strides = [1, 1]} : vector<4x4xbf16> to vector<4x2xbf16>
    %67 = arith.truncf %65 : vector<2x256xf32> to vector<2x256xbf16>
    %cst_27 = arith.constant dense<0.000000e+00> : vector<4x256xf32>
    %68 = tpu.matmul %66, %67, %cst_27 {dimension_numbers = #tpu.dot_dimension_numbers<[1], [0], [0], [1], [0, 0, 1, 1], [], []>} : vector<4x2xbf16>, vector<2x256xbf16>, vector<4x256xf32> -> vector<4x256xf32>
    %69 = arith.addf %50, %68 : vector<4x256xf32>
    %70 = vector.broadcast %12 : vector<4x1xf32> to vector<4x256xf32>
    %71 = arith.addf %69, %70 : vector<4x256xf32>
    %72 = arith.addf %3, %71 : vector<4x256xf32>
    %cst_28 = arith.constant dense<0.000000e+00> : vector<256xf32>
    %73 = vector.multi_reduction <add>, %72, %cst_28 [0] : vector<4x256xf32> to vector<256xf32>
    %74 = vector.shape_cast %73 : vector<256xf32> to vector<1x256xf32>
    %cst_29 = arith.constant 4.000000e+00 : f32
    %75 = vector.broadcast %cst_29 : f32 to vector<1x256xf32>
    %76 = arith.divf %74, %75 : vector<1x256xf32>
    %77 = vector.broadcast %76 : vector<1x256xf32> to vector<4x256xf32>
    %78 = arith.subf %72, %77 : vector<4x256xf32>
    %79 = arith.mulf %78, %78 : vector<4x256xf32>
    %cst_30 = arith.constant dense<0.000000e+00> : vector<256xf32>
    %80 = vector.multi_reduction <add>, %79, %cst_30 [0] : vector<4x256xf32> to vector<256xf32>
    %81 = vector.shape_cast %80 : vector<256xf32> to vector<1x256xf32>
    %cst_31 = arith.constant 4.000000e+00 : f32
    %82 = vector.broadcast %cst_31 : f32 to vector<1x256xf32>
    %83 = arith.divf %81, %82 : vector<1x256xf32>
    %cst_32 = arith.constant 9.99999974E-6 : f32
    %84 = vector.broadcast %cst_32 : f32 to vector<1x256xf32>
    %85 = arith.addf %83, %84 : vector<1x256xf32>
    %86 = math.rsqrt %85 : vector<1x256xf32>
    %87 = vector.broadcast %86 : vector<1x256xf32> to vector<4x256xf32>
    %88 = arith.mulf %78, %87 : vector<4x256xf32>
    %89 = vector.broadcast %14 : vector<4x1xf32> to vector<4x256xf32>
    %90 = arith.mulf %88, %89 : vector<4x256xf32>
    %91 = vector.broadcast %15 : vector<4x1xf32> to vector<4x256xf32>
    %92 = arith.addf %90, %91 : vector<4x256xf32>
    %93 = arith.truncf %92 : vector<4x256xf32> to vector<4x256xbf16>
    %cst_33 = arith.constant dense<0.000000e+00> : vector<256x256xf32>
    %94 = tpu.matmul %6, %93, %cst_33 {dimension_numbers = #tpu.dot_dimension_numbers<[1], [0], [0], [1], [0, 0, 1, 1], [], []>} : vector<256x4xbf16>, vector<4x256xbf16>, vector<256x256xf32> -> vector<256x256xf32>
    %95 = vector.broadcast %11 : vector<256x1xf32> to vector<256x256xf32>
    %96 = arith.addf %94, %95 : vector<256x256xf32>
    %cst_34 = arith.constant 0.000000e+00 : f32
    %97 = vector.broadcast %cst_34 : f32 to vector<256x256xf32>
    %98 = arith.maximumf %96, %97 : vector<256x256xf32>
    %99 = arith.truncf %98 : vector<256x256xf32> to vector<256x256xbf16>
    %cst_35 = arith.constant dense<0.000000e+00> : vector<4x256xf32>
    %100 = tpu.matmul %7, %99, %cst_35 {dimension_numbers = #tpu.dot_dimension_numbers<[1], [0], [0], [1], [0, 0, 1, 1], [], []>} : vector<4x256xbf16>, vector<256x256xbf16>, vector<4x256xf32> -> vector<4x256xf32>
    %101 = vector.broadcast %13 : vector<4x1xf32> to vector<4x256xf32>
    %102 = arith.addf %100, %101 : vector<4x256xf32>
    %103 = arith.addf %92, %102 : vector<4x256xf32>
    %cst_36 = arith.constant dense<0.000000e+00> : vector<256xf32>
    %104 = vector.multi_reduction <add>, %103, %cst_36 [0] : vector<4x256xf32> to vector<256xf32>
    %105 = vector.shape_cast %104 : vector<256xf32> to vector<1x256xf32>
    %cst_37 = arith.constant 4.000000e+00 : f32
    %106 = vector.broadcast %cst_37 : f32 to vector<1x256xf32>
    %107 = arith.divf %105, %106 : vector<1x256xf32>
    %108 = vector.broadcast %107 : vector<1x256xf32> to vector<4x256xf32>
    %109 = arith.subf %103, %108 : vector<4x256xf32>
    %110 = arith.mulf %109, %109 : vector<4x256xf32>
    %cst_38 = arith.constant dense<0.000000e+00> : vector<256xf32>
    %111 = vector.multi_reduction <add>, %110, %cst_38 [0] : vector<4x256xf32> to vector<256xf32>
    %112 = vector.shape_cast %111 : vector<256xf32> to vector<1x256xf32>
    %cst_39 = arith.constant 4.000000e+00 : f32
    %113 = vector.broadcast %cst_39 : f32 to vector<1x256xf32>
    %114 = arith.divf %112, %113 : vector<1x256xf32>
    %cst_40 = arith.constant 9.99999974E-6 : f32
    %115 = vector.broadcast %cst_40 : f32 to vector<1x256xf32>
    %116 = arith.addf %114, %115 : vector<1x256xf32>
    %117 = math.rsqrt %116 : vector<1x256xf32>
    %118 = vector.broadcast %117 : vector<1x256xf32> to vector<4x256xf32>
    %119 = arith.mulf %109, %118 : vector<4x256xf32>
    %120 = vector.broadcast %16 : vector<4x1xf32> to vector<4x256xf32>
    %121 = arith.mulf %119, %120 : vector<4x256xf32>
    %122 = vector.broadcast %17 : vector<4x1xf32> to vector<4x256xf32>
    %123 = arith.addf %121, %122 : vector<4x256xf32>
    %c0_41 = arith.constant 0 : index
    %c0_42 = arith.constant 0 : index
    %c0_43 = arith.constant 0 : index
    %124 = vector.load %arg9[%c0_41, %c0_42, %c0_43] : memref<1x4x256xf32, #tpu.memory_space<vmem>>, vector<1x4x256xf32>
    %125 = vector.shape_cast %124 : vector<1x4x256xf32> to vector<4x256xf32>
    %126 = vector.shape_cast %123 : vector<4x256xf32> to vector<1x4x256xf32>
    tpu.vector_store %arg9[%c0_41, %c0_42, %c0_43], %126 {strides = array<i32>} : memref<1x4x256xf32, #tpu.memory_space<vmem>>, vector<1x4x256xf32>,
    return
  }
  func.func @transform_0(%arg0: i32, %arg1: i32) -> (i32, i32, i32) {
    %c0_i32 = arith.constant 0 : i32
    %c0_i32_0 = arith.constant 0 : i32
    %c0_i32_1 = arith.constant 0 : i32
    return %arg0, %c0_i32, %c0_i32_0 : i32, i32, i32
  }
  func.func @transform_1(%arg0: i32, %arg1: i32) -> (i32, i32, i32) {
    %c0_i32 = arith.constant 0 : i32
    %c0_i32_0 = arith.constant 0 : i32
    return %arg0, %c0_i32, %arg1 : i32, i32, i32
  }
  func.func @transform_2(%arg0: i32, %arg1: i32) -> (i32, i32) {
    %c0_i32 = arith.constant 0 : i32
    %c0_i32_0 = arith.constant 0 : i32
    %c0_i32_1 = arith.constant 0 : i32
    return %c0_i32, %c0_i32_0 : i32, i32
  }
  func.func @transform_3(%arg0: i32, %arg1: i32) -> (i32, i32) {
    %c0_i32 = arith.constant 0 : i32
    %c0_i32_0 = arith.constant 0 : i32
    %c0_i32_1 = arith.constant 0 : i32
    return %c0_i32, %c0_i32_0 : i32, i32
  }
  func.func @transform_4(%arg0: i32, %arg1: i32) -> (i32, i32) {
    %c0_i32 = arith.constant 0 : i32
    %c0_i32_0 = arith.constant 0 : i32
    %c0_i32_1 = arith.constant 0 : i32
    return %c0_i32, %c0_i32_0 : i32, i32
  }
  func.func @transform_5(%arg0: i32, %arg1: i32) -> (i32, i32) {
    %c0_i32 = arith.constant 0 : i32
    %c0_i32_0 = arith.constant 0 : i32
    %c0_i32_1 = arith.constant 0 : i32
    return %c0_i32, %c0_i32_0 : i32, i32
  }
  func.func @transform_6(%arg0: i32, %arg1: i32) -> (i32, i32) {
    %c0_i32 = arith.constant 0 : i32
    %c0_i32_0 = arith.constant 0 : i32
    %c0_i32_1 = arith.constant 0 : i32
    return %c0_i32, %c0_i32_0 : i32, i32
  }
  func.func @transform_7(%arg0: i32, %arg1: i32) -> (i32, i32, i32) {
    %c0_i32 = arith.constant 0 : i32
    %c0_i32_0 = arith.constant 0 : i32
    return %arg0, %c0_i32, %arg1 : i32, i32, i32
  }
}

</mosaic_0001>

<bundles_post_ra>
// kernel: self_attention_forward.2
= control target key start
LH: loop header
LB: loop body
LE: loop exit
PB: predicated region body
PF: predicated region fallthrough
CT: control target
= control target key end

     0   :  { %s3488_s24 = smov 0   ;;  %s3490_s25 = smov 0   ;;  %s4414_s0 = inlined_call_operand.vmem [shape: f32[2,4,256], index: 0, kind: input, shape index: {}, may-alias: {0,1}]   ;;  %s4415_s1 = inlined_call_operand.vmem [shape: f32[2,4,256], index: 1, kind: input, shape index: {}, may-alias: {0,1}]   ;;  %s4416_s2 = inlined_call_operand.vmem [shape: bf16[12,4], index: 2, kind: input, shape index: {}]   ;;  %s4417_s3 = inlined_call_operand.vmem [shape: bf16[4,4], index: 3, kind: input, shape index: {}]   ;;  %s4418_s4 = inlined_call_operand.vmem [shape: bf16[256,4], index: 4, kind: input, shape index: {}]   ;;  %s4419_s5 = inlined_call_operand.vmem [shape: bf16[4,256], index: 5, kind: input, shape index: {}]   ;;  %s4420_s6 = inlined_call_operand.vmem [shape: f32[256,8], index: 6, kind: input, shape index: {}]   ;;  %s4421_s7 = inlined_call_operand.vmem [shape: f32[2,4,256], index: 7, kind: output, shape index: {}]  }
   0x1   :  { %s3492_s26 = smov 0  }
   0x2 LB: > { %s29_s27 = sadd.s32 1, %s3430_s25  ;;  %p2983_p0 = scmp.ge.s32.totalorder %s3434_s26, 1  ;;  %s3434_s26 = sphi %s3492_s26, %s17_s26   ;;  %s3430_s25 = sphi %s3490_s25, %s4535_s25   ;;  %s3426_s24 = sphi %s3488_s24, %s4534_s24  }
   0x3   : > { %p31_p1 = scmp.ge.s32.totalorder %s29_s27, 2  ;;  %p268_p2 = scmp.lt.s32.totalorder %s3434_s26, 3 }
   0x5   : > { %s4537_s27 = smov (%p31_p1, %s29_s27), 0  ;;  %p269_p3 = pnand %p2983_p0, %p268_p2 }
   0x7   : > { %272 = sbr.rel (%p269_p3) target bundleno = 2526 (0x9de), region = 48 }
   0xe   : > { %p313_p4 = scmp.lt.s32.totalorder %s3426_s24, 1  ;;  %v4422_v0 = vmov 0   ;;  %v378_v1 = vld [vmem:[%s4420_s6] sm:$0xff]  ;;  %v379_v2 = vld [vmem:[%s4420_s6 + $0x8] sm:$0xff]  ;;  %vm424_vm0 = vcmask 1041408   ;;  %vm420_vm1 = vcmask 31744  }
   0xf   : > { %463 = vmatprep.mubr.bf16.mxu1 %v4422_v0  ;;  %3108 = vset.pattern.permute.xlu0 %v4422_v0  ;;  %v342_v13 = vld [vmem:[%s4416_s2] sm:$0xf]  ;;  %v343_v14 = vld [vmem:[%s4416_s2 + $0x4] sm:$0x3]  ;;  %vm487_vm2 = vcmask 1043456   ;;  %vm627_vm3 = vcmask 1040384  }
  0x10   : > { %s4539_s24 = smov (!%p313_p4, %s3426_s24), 1  ;;  %417 = vperm.xlu0 %3108, %v378_v1   ;;  %v2992_v15 = vcombine.low %v342_v13, %v343_v14  ;;  %vm578_vm4 = vcmask 15360   ;;  %s3439_s22 = smov 126  }
  0x11   : > { %s3514_s9 = sshll.u32 %s4539_s24, 3 }
  0x12   : > { %s317_s12 = scalar_lea.vmem %s4414_s0, %s3514_s9  ;;  %s3524_s15 = scalar_lea.vmem %s4415_s1, %s3514_s9  ;;  %v486_v16 = vrot.slane %v2992_v15, 2 }
  0x13   : > { %v341_v3 = vld [vmem:[%s3524_s15] sm:$0xff]  ;;  %s336_s8 = scalar_lea.vmem %s4421_s7, %s3514_s9 }
  0x14   : > { %v340_v4 = vld [vmem:[%s317_s12] sm:$0xff]  ;;  %479 = vperm.xlu0 %3108, %v379_v2   ;;  %v411_v5 = vcombine.high %v341_v3, %v341_v3  ;;  %v413_v6 = vpack.c.bf16 %v341_v3, %v341_v3 }
  0x15   : > { %v473_v7 = vcombine.high %v340_v4, %v340_v4  ;;  %v475_v8 = vpack.c.bf16 %v340_v4, %v340_v4 }
  0x16   : > { %v414_v9 = vpack.c.bf16 %v411_v5, %v411_v5  ;;  %v426_v10 = vsel %vm424_vm0, %v413_v6, 0 }
  0x17   : > { %v476_v11 = vpack.c.bf16 %v473_v7, %v473_v7  ;;  %v496_v12 = vsel %vm424_vm0, %v475_v8, 0 }
  0x18   : > { %2990 = vmatprep.subr.msk.bf16.mxu1 %vm424_vm0, %v414_v9 }
  0x19   : > { %432 = vmatpush1.bf16.msra.mxu1 %v426_v10 }
  0x1a   : > { %2993 = vmatprep.subr.msk.bf16.mxu1 %vm424_vm0, %v476_v11 }
  0x1c   : > { %2991 = vmatmul.mubr.msk.bf16.vlgmr.msra.gmra.mrb[0].mxu1 %vm420_vm1, %v342_v13 }
  0x1d   : > { %502 = vmatpush1.bf16.msra.mxu1 %v496_v12  ;;  %533 = vmatprep.mubr.bf16.mxu1 %v4422_v0 }
  0x24   : > { %2994 = vmatmul.mubr.msk.bf16.vlgmr.msra.gmra.mrb[4].mxu1 %vm420_vm1, %v486_v16 }
  0x25   : > { %666 = vmatprep.mubr.bf16.mxu1 %v4422_v0 }
  0x8f   : > { %v418_v17 = vpop.permute.xlu0 %417 }
  0x90   : > { %v488_v25 = vrot.slane %v418_v17, 4 }
  0x93   : > { %v480_v19 = vpop.permute.xlu0 %479 }
  0x94   : > { %v489_v26 = vrot.slane %v480_v19, 4 }
  0x96   : > { %v490_v27 = vsel %vm487_vm2, %v488_v25, %v489_v26 }
  0xef   : > { %v465_v18 = vpop.f32.mrb[0].mxu1 }
  0xf0   : > { %v466_v20 = vadd.f32 %v465_v18, %v418_v17  ;;  %v467_v21 = vpop.f32.mrb[1].mxu1 }
  0xf1   : > { %v469_v22 = vpop.f32.mrb[2].mxu1  ;;  %v468_v37 = vadd.f32 %v467_v21, %v418_v17 }
  0xf2   : > { %v3541_v23 = vpack.c.bf16 %v466_v20, %v466_v20  ;;  %v470_v24 = vpop.f32.mrb[3].mxu1 }
  0xf3   : > { %v3553_v38 = vpack.c.bf16 %v468_v37, %v468_v37 }
  0xf4   : > { %546 = vxpose.xlu1.c.b16.start.end [1/1] (short) %v3541_v23, 128 }
  0xf7   : > { %v535_v28 = vpop.f32.mrb[4].mxu1 }
  0xf8   : > { %v536_v29 = vadd.f32 %v535_v28, %v490_v27  ;;  %v537_v30 = vpop.f32.mrb[5].mxu1 }
  0xf9   : > { %v538_v31 = vadd.f32 %v537_v30, %v490_v27  ;;  %v539_v32 = vpop.f32.mrb[6].mxu1 }
  0xfa   : > { %v3545_v33 = vpack.c.bf16 %v536_v29, %v536_v29  ;;  %v540_v34 = vpop.f32.mrb[7].mxu1 }
  0xfb   : > { %v3547_v35 = vpack.c.bf16 %v538_v31, %v538_v31 }
  0xfc   : > { %4462 = vst [vmem:[#allocation2_spill] sm:$0xff] %v3545_v33  ;;  %v629_v36 = vsel %vm627_vm3, %v3545_v33, 0 }
  0xfd   : > { %4463 = vst [vmem:[#allocation3_spill] sm:$0xff] %v3547_v35  ;;  %2995 = vmatprep.subr.msk.bf16.mxu1 %vm627_vm3, %v3547_v35  ;;  %v1150_v55 = vrot.slane %v3547_v35, 2 }
  0xfe   : > { %635 = vmatpush1.bf16.msra.mxu1 %v629_v36 }
 0x111   : > { %562 = vxpose.xlu1.c.b16.start.end [1/1] (short) %v3553_v38, 128 }
 0x15a   : > { %v554_v39 = vpop.trf.xlu1 }
 0x15b   : > { %2996 = vmatmul.mubr.msk.bf16.vlgmr.msra.gmra.mrb[8].mxu1 %vm578_vm4, %v554_v39 }
 0x15c   : > { %676 = vmatprep.mubr.bf16.mxu1 %v4422_v0 }
 0x15e   : > { %v555_v40 = vpop.trf.xlu1 }
 0x162   : > { %v556_v41 = vpop.trf.xlu1 }
 0x163   : > { %2997 = vmatmul.mubr.msk.bf16.gmra.mrb[12].mxu1 %vm578_vm4, %v555_v40 }
 0x164   : > { %686 = vmatprep.mubr.bf16.mxu1 %v4422_v0 }
 0x166   : > { %v557_v42 = vpop.trf.xlu1 }
 0x16a   : > { %v558_v43 = vpop.trf.xlu1 }
 0x16b   : > { %2998 = vmatmul.mubr.msk.bf16.gmra.mrb[16].mxu1 %vm578_vm4, %v556_v41 }
 0x16c   : > { %696 = vmatprep.mubr.bf16.mxu1 %v4422_v0 }
 0x16e   : > { %v559_v44 = vpop.trf.xlu1 }
 0x172   : > { %v560_v45 = vpop.trf.xlu1 }
 0x173   : > { %2999 = vmatmul.mubr.msk.bf16.gmra.mrb[20].mxu1 %vm578_vm4, %v557_v42 }
 0x174   : > { %706 = vmatprep.mubr.bf16.mxu1 %v4422_v0 }
 0x176   : > { %v561_v46 = vpop.trf.xlu1 }
 0x17a   : > { %v570_v47 = vpop.trf.xlu1 }
 0x17b   : > { %3000 = vmatmul.mubr.msk.bf16.gmra.mrb[24].mxu1 %vm578_vm4, %v558_v43 }
 0x17c   : > { %716 = vmatprep.mubr.bf16.mxu1 %v4422_v0 }
 0x17e   : > { %v571_v48 = vpop.trf.xlu1 }
 0x182   : > { %v572_v49 = vpop.trf.xlu1 }
 0x183   : > { %3001 = vmatmul.mubr.msk.bf16.gmra.mrb[28].mxu1 %vm578_vm4, %v559_v44 }
 0x184   : > { %726 = vmatprep.mubr.bf16.mxu1 %v4422_v0 }
 0x186   : > { %v573_v50 = vpop.trf.xlu1 }
 0x18a   : > { %v574_v51 = vpop.trf.xlu1 }
 0x18b   : > { %3002 = vmatmul.mubr.msk.bf16.gmra.mrb[32].mxu1 %vm578_vm4, %v560_v45 }
 0x18c   : > { %736 = vmatprep.mubr.bf16.mxu1 %v4422_v0 }
 0x18e   : > { %v575_v52 = vpop.trf.xlu1 }
 0x192   : > { %v576_v53 = vpop.trf.xlu1 }
 0x193   : > { %3003 = vmatmul.mubr.msk.bf16.gmra.mrb[36].mxu1 %vm578_vm4, %v561_v46 }
 0x194   : > { %746 = vmatprep.mubr.bf16.mxu1 %v4422_v0 }
 0x196   : > { %v577_v54 = vpop.trf.xlu1 }
 0x19b   : > { %3004 = vmatmul.mubr.msk.bf16.gmra.mrb[40].mxu1 %vm578_vm4, %v570_v47 }
 0x19c   : > { %756 = vmatprep.mubr.bf16.mxu1 %v4422_v0 }
 0x1a3   : > { %3005 = vmatmul.mubr.msk.bf16.gmra.mrb[44].mxu1 %vm578_vm4, %v571_v48 }
 0x1a4   : > { %766 = vmatprep.mubr.bf16.mxu1 %v4422_v0 }
 0x1ab   : > { %3006 = vmatmul.mubr.msk.bf16.gmra.mrb[48].mxu1 %vm578_vm4, %v572_v49 }
 0x1ac   : > { %776 = vmatprep.mubr.bf16.mxu1 %v4422_v0 }
 0x1b3   : > { %3007 = vmatmul.mubr.msk.bf16.gmra.mrb[52].mxu1 %vm578_vm4, %v573_v50 }
 0x1b4   : > { %786 = vmatprep.mubr.bf16.mxu1 %v4422_v0 }
 0x1bb   : > { %3008 = vmatmul.mubr.msk.bf16.gmra.mrb[56].mxu1 %vm578_vm4, %v574_v51 }
 0x1bc   : > { %796 = vmatprep.mubr.bf16.mxu1 %v4422_v0 }
 0x1c3   : > { %3009 = vmatmul.mubr.msk.bf16.gmra.mrb[60].mxu1 %vm578_vm4, %v575_v52 }
 0x1c4   : > { %806 = vmatprep.mubr.bf16.mxu1 %v4422_v0 }
 0x1cb   : > { %3010 = vmatmul.mubr.msk.bf16.gmra.mrb[64].mxu1 %vm578_vm4, %v576_v53 }
 0x1cc   : > { %816 = vmatprep.mubr.bf16.mxu1 %v4422_v0 }
 0x1d3   : > { %3011 = vmatmul.mubr.msk.bf16.gmra.mrb[68].mxu1 %vm578_vm4, %v577_v54 }
 0x1d4   : > { %1185 = vmatprep.mubr.bf16.mxu1 %v1150_v55 }
 0x22e   : > { %v3588_v56 = vpop.f32.mrb[8].mxu1 }
 0x22f   : > { %v3590_v57 = vpop.f32.mrb[9].mxu1 }
 0x230   : > { %v3592_v58 = vpop.f32.mrb[10].mxu1  ;;  %v827_v59 = vmax.f32 %v3588_v56, %v3590_v57 }
 0x231   : > { %v3596_v60 = vpop.f32.mrb[11].mxu1 }
 0x232   : > { %828 = vmax.xlane.f32.xlu0 %v827_v59  ;;  %v830_v61 = vmax.f32 %v3592_v58, %v3596_v60 }
 0x234   : > { %831 = vmax.xlane.f32.xlu1 %v830_v61 }
 0x236   : > { %v3600_v62 = vpop.f32.mrb[12].mxu1 }
 0x237   : > { %v3602_v63 = vpop.f32.mrb[13].mxu1 }
 0x238   : > { %v3604_v1 = vpop.f32.mrb[14].mxu1  ;;  %v833_v2 = vmax.f32 %v3600_v62, %v3602_v63 }
 0x239   : > { %v3608_v3 = vpop.f32.mrb[15].mxu1 }
 0x23a   : > { %834 = vmax.xlane.f32.xlu0 %v833_v2  ;;  %v836_v4 = vmax.f32 %v3604_v1, %v3608_v3 }
 0x23e   : > { %837 = vmax.xlane.f32.xlu0 %v836_v4  ;;  %v3612_v5 = vpop.f32.mrb[16].mxu1 }
 0x23f   : > { %v3614_v6 = vpop.f32.mrb[17].mxu1 }
 0x240   : > { %v3616_v7 = vpop.f32.mrb[18].mxu1  ;;  %v839_v8 = vmax.f32 %v3612_v5, %v3614_v6 }
 0x241   : > { %v3620_v9 = vpop.f32.mrb[19].mxu1 }
 0x242   : > { %840 = vmax.xlane.f32.xlu0 %v839_v8  ;;  %v842_v10 = vmax.f32 %v3616_v7, %v3620_v9 }
 0x246   : > { %843 = vmax.xlane.f32.xlu0 %v842_v10  ;;  %v3624_v11 = vpop.f32.mrb[20].mxu1 }
 0x247   : > { %v3626_v12 = vpop.f32.mrb[21].mxu1 }
 0x248   : > { %v3628_v13 = vpop.f32.mrb[22].mxu1  ;;  %v845_v14 = vmax.f32 %v3624_v11, %v3626_v12 }
 0x249   : > { %v3632_v15 = vpop.f32.mrb[23].mxu1 }
 0x24a   : > { %846 = vmax.xlane.f32.xlu0 %v845_v14  ;;  %v848_v16 = vmax.f32 %v3628_v13, %v3632_v15 }
 0x24e   : > { %849 = vmax.xlane.f32.xlu0 %v848_v16  ;;  %v3636_v17 = vpop.f32.mrb[24].mxu1 }
 0x24f   : > { %v3638_v18 = vpop.f32.mrb[25].mxu1 }
 0x250   : > { %v3640_v19 = vpop.f32.mrb[26].mxu1  ;;  %v851_v20 = vmax.f32 %v3636_v17, %v3638_v18 }
 0x251   : > { %v3644_v21 = vpop.f32.mrb[27].mxu1 }
 0x252   : > { %852 = vmax.xlane.f32.xlu0 %v851_v20  ;;  %v854_v22 = vmax.f32 %v3640_v19, %v3644_v21 }
 0x256   : > { %855 = vmax.xlane.f32.xlu0 %v854_v22  ;;  %v3648_v24 = vpop.f32.mrb[28].mxu1 }
 0x257   : > { %v3650_v25 = vpop.f32.mrb[29].mxu1 }
 0x258   : > { %v3652_v26 = vpop.f32.mrb[30].mxu1  ;;  %v857_v27 = vmax.f32 %v3648_v24, %v3650_v25 }
 0x259   : > { %v3656_v28 = vpop.f32.mrb[31].mxu1 }
 0x25a   : > { %858 = vmax.xlane.f32.xlu0 %v857_v27  ;;  %v860_v29 = vmax.f32 %v3652_v26, %v3656_v28 }
 0x25c   : > { %861 = vmax.xlane.f32.xlu1 %v860_v29 }
 0x25e   : > { %v3660_v30 = vpop.f32.mrb[32].mxu1 }
 0x25f   : > { %v3662_v31 = vpop.f32.mrb[33].mxu1 }
 0x260   : > { %v3664_v32 = vpop.f32.mrb[34].mxu1  ;;  %v863_v34 = vmax.f32 %v3660_v30, %v3662_v31 }
 0x261   : > { %v3668_v36 = vpop.f32.mrb[35].mxu1 }
 0x262   : > { %864 = vmax.xlane.f32.xlu0 %v863_v34  ;;  %v866_v37 = vmax.f32 %v3664_v32, %v3668_v36 }
 0x264   : > { %867 = vmax.xlane.f32.xlu1 %v866_v37 }
 0x266   : > { %v3672_v39 = vpop.f32.mrb[36].mxu1 }
 0x267   : > { %v3674_v40 = vpop.f32.mrb[37].mxu1 }
 0x268   : > { %v3676_v41 = vpop.f32.mrb[38].mxu1  ;;  %v869_v42 = vmax.f32 %v3672_v39, %v3674_v40 }
 0x269   : > { %v3680_v43 = vpop.f32.mrb[39].mxu1 }
 0x26a   : > { %870 = vmax.xlane.f32.xlu0 %v869_v42  ;;  %v872_v44 = vmax.f32 %v3676_v41, %v3680_v43 }
 0x26c   : > { %873 = vmax.xlane.f32.xlu1 %v872_v44 }
 0x26e   : > { %v3684_v45 = vpop.f32.mrb[40].mxu1 }
 0x26f   : > { %v3686_v46 = vpop.f32.mrb[41].mxu1 }
 0x270   : > { %v3688_v47 = vpop.f32.mrb[42].mxu1  ;;  %v875_v48 = vmax.f32 %v3684_v45, %v3686_v46 }
 0x271   : > { %v3692_v49 = vpop.f32.mrb[43].mxu1 }
 0x272   : > { %876 = vmax.xlane.f32.xlu0 %v875_v48  ;;  %v878_v50 = vmax.f32 %v3688_v47, %v3692_v49 }
 0x274   : > { %879 = vmax.xlane.f32.xlu1 %v878_v50 }
 0x276   : > { %v3696_v51 = vpop.f32.mrb[44].mxu1 }
 0x277   : > { %v3698_v52 = vpop.f32.mrb[45].mxu1 }
 0x278   : > { %v3700_v53 = vpop.f32.mrb[46].mxu1  ;;  %v881_v54 = vmax.f32 %v3696_v51, %v3698_v52 }
 0x279   : > { %v3704_v55 = vpop.f32.mrb[47].mxu1 }
 0x27a   : > { %882 = vmax.xlane.f32.xlu0 %v881_v54  ;;  %v884_v59 = vmax.f32 %v3700_v53, %v3704_v55 }
 0x27c   : > { %885 = vmax.xlane.f32.xlu1 %v884_v59 }
 0x27e   : > { %v3708_v61 = vpop.f32.mrb[48].mxu1 }
 0x27f   : > { %v3710_v2 = vpop.f32.mrb[49].mxu1 }
 0x280   : > { %v3712_v4 = vpop.f32.mrb[50].mxu1  ;;  %v887_v8 = vmax.f32 %v3708_v61, %v3710_v2 }
 0x281   : > { %v3716_v10 = vpop.f32.mrb[51].mxu1 }
 0x282   : > { %888 = vmax.xlane.f32.xlu0 %v887_v8  ;;  %v890_v14 = vmax.f32 %v3712_v4, %v3716_v10 }
 0x284   : > { %891 = vmax.xlane.f32.xlu1 %v890_v14 }
 0x286   : > { %v3720_v16 = vpop.f32.mrb[52].mxu1 }
 0x287   : > { %v3722_v20 = vpop.f32.mrb[53].mxu1 }
 0x288   : > { %v3724_v22 = vpop.f32.mrb[54].mxu1  ;;  %v893_v27 = vmax.f32 %v3720_v16, %v3722_v20 }
 0x289   : > { %v3728_v29 = vpop.f32.mrb[55].mxu1 }
 0x28a   : > { %894 = vmax.xlane.f32.xlu0 %v893_v27  ;;  %v896_v34 = vmax.f32 %v3724_v22, %v3728_v29 }
 0x28c   : > { %897 = vmax.xlane.f32.xlu1 %v896_v34 }
 0x28e   : > { %v3732_v37 = vpop.f32.mrb[56].mxu1 }
 0x28f   : > { %4464 = vst [vmem:[#allocation4_spill] sm:$0xff] %v3732_v37  ;;  %v3734_v42 = vpop.f32.mrb[57].mxu1 }
 0x290   : > { %4465 = vst [vmem:[#allocation5_spill] sm:$0xff] %v3734_v42  ;;  %v3736_v44 = vpop.f32.mrb[58].mxu1  ;;  %v899_v48 = vmax.f32 %v3732_v37, %v3734_v42 }
 0x291   : > { %4466 = vst [vmem:[#allocation6_spill] sm:$0xff] %v3736_v44  ;;  %v3740_v50 = vpop.f32.mrb[59].mxu1 }
 0x292   : > { %4467 = vst [vmem:[#allocation7_spill] sm:$0xff] %v3740_v50  ;;  %900 = vmax.xlane.f32.xlu0 %v899_v48  ;;  %v902_v54 = vmax.f32 %v3736_v44, %v3740_v50 }
 0x294   : > { %903 = vmax.xlane.f32.xlu1 %v902_v54 }
 0x296   : > { %v3744_v59 = vpop.f32.mrb[60].mxu1 }
 0x297   : > { %4468 = vst [vmem:[#allocation8_spill] sm:$0xff] %v3744_v59  ;;  %v3746_v8 = vpop.f32.mrb[61].mxu1 }
 0x298   : > { %4469 = vst [vmem:[#allocation9_spill] sm:$0xff] %v3746_v8  ;;  %v3748_v14 = vpop.f32.mrb[62].mxu1  ;;  %v905_v27 = vmax.f32 %v3744_v59, %v3746_v8 }
 0x299   : > { %4470 = vst [vmem:[#allocation10_spill] sm:$0xff] %v3748_v14  ;;  %v3752_v34 = vpop.f32.mrb[63].mxu1 }
 0x29a   : > { %4471 = vst [vmem:[#allocation11_spill] sm:$0xff] %v3752_v34  ;;  %906 = vmax.xlane.f32.xlu0 %v905_v27  ;;  %v908_v0 = vmax.f32 %v3748_v14, %v3752_v34 }
 0x29c   : > { %909 = vmax.xlane.f32.xlu1 %v908_v0 }
 0x29e   : > { %v3756_v48 = vpop.f32.mrb[64].mxu1 }
 0x29f   : > { %4472 = vst [vmem:[#allocation12_spill] sm:$0xff] %v3756_v48  ;;  %v3758_v33 = vpop.f32.mrb[65].mxu1 }
 0x2a0   : > { %4473 = vst [vmem:[#allocation13_spill] sm:$0xff] %v3758_v33  ;;  %v3760_v54 = vpop.f32.mrb[66].mxu1  ;;  %v911_v35 = vmax.f32 %v3756_v48, %v3758_v33 }
 0x2a1   : > { %4474 = vst [vmem:[#allocation14_spill] sm:$0xff] %v3760_v54  ;;  %v3764_v50 = vpop.f32.mrb[67].mxu1 }
 0x2a2   : > { %4475 = vst [vmem:[#allocation15_spill] sm:$0xff] %v3764_v50  ;;  %912 = vmax.xlane.f32.xlu0 %v911_v35  ;;  %v914_v8 = vmax.f32 %v3760_v54, %v3764_v50 }
 0x2a4   : > { %915 = vmax.xlane.f32.xlu1 %v914_v8 }
 0x2a6   : > { %v3768_v27 = vpop.f32.mrb[68].mxu1 }
 0x2a7   : > { %4476 = vst [vmem:[#allocation16_spill] sm:$0xff] %v3768_v27  ;;  %v3770_v34 = vpop.f32.mrb[69].mxu1 }
 0x2a8   : > { %4477 = vst [vmem:[#allocation17_spill] sm:$0xff] %v3770_v34  ;;  %v3772_v0 = vpop.f32.mrb[70].mxu1  ;;  %v917_v14 = vmax.f32 %v3768_v27, %v3770_v34 }
 0x2a9   : > { %v3776_v59 = vpop.f32.mrb[71].mxu1 }
 0x2aa   : > { %4478 = vst [vmem:[#allocation18_spill] sm:$0xff] %v3776_v59  ;;  %918 = vmax.xlane.f32.xlu0 %v917_v14  ;;  %v920_v33 = vmax.f32 %v3772_v0, %v3776_v59 }
 0x2ac   : > { %921 = vmax.xlane.f32.xlu1 %v920_v33 }
 0x2bf   : > { %v829_v35 = vpop.xlane.xlu0 %828 }
 0x2c0   : > { %v923_v50 = vsub.f32 %v3588_v56, %v829_v35  ;;  %v924_v8 = vsub.f32 %v3590_v57, %v829_v35 }
 0x2c1   : > { %v832_v54 = vpop.xlane.xlu1 %831 }
 0x2c2   : > { %v987_v48 = vmul.f32 1.442695, %v923_v50  ;;  %v989_v44 = vmul.f32 1.442695, %v924_v8  ;;  %v925_v42 = vsub.f32 %v3592_v58, %v832_v54  ;;  %v926_v37 = vsub.f32 %v3596_v60, %v832_v54 }
 0x2c4   : > { %3137 = vpow2.f32 %v987_v48  ;;  %v991_v34 = vmul.f32 1.442695, %v925_v42  ;;  %v993_v27 = vmul.f32 1.442695, %v926_v37 }
 0x2c5   : > { %3139 = vpow2.f32 %v989_v44 }
 0x2c6   : > { %3141 = vpow2.f32 %v991_v34 }
 0x2c7   : > { %3143 = vpow2.f32 %v993_v27  ;;  %v835_v14 = vpop.xlane.xlu0 %834  ;;  %v4443_v27 = vmov 1065369472  }
 0x2c8   : > { %v927_v33 = vsub.f32 %v3600_v62, %v835_v14  ;;  %v928_v56 = vsub.f32 %v3602_v63, %v835_v14  ;;  %1226 = vmatprep.mubr.bf16.mxu0 %v4443_v27 }
 0x2ca   : > { %v995_v59 = vmul.f32 1.442695, %v927_v33  ;;  %v997_v57 = vmul.f32 1.442695, %v928_v56 }
 0x2cb   : > { %v838_v35 = vpop.xlane.xlu0 %837 }
 0x2cc   : > { %v929_v50 = vsub.f32 %v3604_v1, %v838_v35  ;;  %v930_v58 = vsub.f32 %v3608_v3, %v838_v35  ;;  %3145 = vpow2.f32 %v995_v59  ;;  %v1252_v35 = vrot.slane %v3553_v38, 1 }
 0x2cd   : > { %3147 = vpow2.f32 %v997_v57 }
 0x2ce   : > { %v3138_v8 = vpop.eup %3137  ;;  %v999_v60 = vmul.f32 1.442695, %v929_v50  ;;  %v1001_v42 = vmul.f32 1.442695, %v930_v58 }
 0x2cf   : > { %v3140_v37 = vpop.eup %3139  ;;  %v841_v44 = vpop.xlane.xlu0 %840 }
 0x2d0   : > { %v3142_v34 = vpop.eup %3141  ;;  %3149 = vpow2.f32 %v999_v60  ;;  %v931_v62 = vsub.f32 %v3612_v5, %v841_v44  ;;  %v932_v63 = vsub.f32 %v3614_v6, %v841_v44  ;;  %v1251_v5 = vrot.slane %v3541_v23, 1 }
 0x2d1   : > { %v3144_v48 = vpop.eup %3143  ;;  %3151 = vpow2.f32 %v1001_v42  ;;  %v1115_v54 = vpack.c.bf16 %v3142_v34, %v3138_v8 }
 0x2d2   : > { %v1003_v1 = vmul.f32 1.442695, %v931_v62  ;;  %v1116_v3 = vpack.c.bf16 %v3144_v48, %v3140_v37  ;;  %v1005_v59 = vmul.f32 1.442695, %v932_v63 }
 0x2d3   : > { %v844_v14 = vpop.xlane.xlu0 %843 }
 0x2d4   : > { %1153 = vmatprep.subr.bf16.mxu1 %v1116_v3  ;;  %1194 = vmatprep.subr.bf16.mxu0 %v1116_v3  ;;  %v933_v33 = vsub.f32 %v3616_v7, %v844_v14  ;;  %v934_v56 = vsub.f32 %v3620_v9, %v844_v14  ;;  %3153 = vpow2.f32 %v1003_v1 }
 0x2d5   : > { %1154 = vmatpush1.bf16.xpose.msra.mxu1 %v1115_v54  ;;  %1195 = vmatpush1.bf16.xpose.msra.mxu0 %v1115_v54  ;;  %3155 = vpow2.f32 %v1005_v59 }
 0x2d6   : > { %v1007_v6 = vmul.f32 1.442695, %v933_v33  ;;  %v1009_v57 = vmul.f32 1.442695, %v934_v56  ;;  %v3146_v58 = vpop.eup %3145 }
 0x2d7   : > { %v847_v50 = vpop.xlane.xlu0 %846  ;;  %1255 = vxpose.xlu0.c.b16.start.end [1/1] (short) %v1251_v5, 128  ;;  %v3148_v60 = vpop.eup %3147 }
 0x2d8   : > { %3157 = vpow2.f32 %v1007_v6  ;;  %v935_v8 = vsub.f32 %v3624_v11, %v847_v50  ;;  %v936_v7 = vsub.f32 %v3626_v12, %v847_v50 }
 0x2d9   : > { %3159 = vpow2.f32 %v1009_v57  ;;  %1271 = vxpose.xlu1.c.b16.start.end [1/1] (short) %v1252_v35, 128 }
 0x2da   : > { %v3150_v23 = vpop.eup %3149  ;;  %v1011_v9 = vmul.f32 1.442695, %v935_v8  ;;  %v1013_v37 = vmul.f32 1.442695, %v936_v7 }
 0x2db   : > { %v3152_v42 = vpop.eup %3151  ;;  %v850_v44 = vpop.xlane.xlu0 %849  ;;  %v1117_v34 = vpack.c.bf16 %v3150_v23, %v3146_v58 }
 0x2dc   : > { %v937_v38 = vsub.f32 %v3628_v13, %v850_v44  ;;  %v938_v62 = vsub.f32 %v3632_v15, %v850_v44  ;;  %v1118_v63 = vpack.c.bf16 %v3152_v42, %v3148_v60  ;;  %3161 = vpow2.f32 %v1011_v9 }
 0x2dd   : > { %3163 = vpow2.f32 %v1013_v37 }
 0x2de   : > { %v1015_v48 = vmul.f32 1.442695, %v937_v38  ;;  %v1017_v54 = vmul.f32 1.442695, %v938_v62  ;;  %1155 = vmatprep.subr.bf16.mxu1 %v1118_v63  ;;  %1196 = vmatprep.subr.bf16.mxu0 %v1118_v63  ;;  %v3154_v12 = vpop.eup %3153 }
 0x2df   : > { %1156 = vmatpush1.bf16.xpose.msra.mxu1 %v1117_v34  ;;  %1197 = vmatpush1.bf16.xpose.msra.mxu0 %v1117_v34  ;;  %v853_v11 = vpop.xlane.xlu0 %852  ;;  %v3156_v59 = vpop.eup %3155 }
 0x2e0   : > { %3165 = vpow2.f32 %v1015_v48  ;;  %v939_v1 = vsub.f32 %v3636_v17, %v853_v11  ;;  %v940_v3 = vsub.f32 %v3638_v18, %v853_v11 }
 0x2e1   : > { %3167 = vpow2.f32 %v1017_v54 }
 0x2e2   : > { %v3158_v13 = vpop.eup %3157  ;;  %v1019_v15 = vmul.f32 1.442695, %v939_v1  ;;  %v1021_v33 = vmul.f32 1.442695, %v940_v3 }
 0x2e3   : > { %v3160_v14 = vpop.eup %3159  ;;  %v856_v56 = vpop.xlane.xlu0 %855  ;;  %v1119_v5 = vpack.c.bf16 %v3158_v13, %v3154_v12 }
 0x2e4   : > { %v941_v6 = vsub.f32 %v3640_v19, %v856_v56  ;;  %v942_v57 = vsub.f32 %v3644_v21, %v856_v56  ;;  %v1120_v35 = vpack.c.bf16 %v3160_v14, %v3156_v59  ;;  %3169 = vpow2.f32 %v1019_v15 }
 0x2e5   : > { %3171 = vpow2.f32 %v1021_v33 }
 0x2e6   : > { %v1023_v50 = vmul.f32 1.442695, %v941_v6  ;;  %v1025_v58 = vmul.f32 1.442695, %v942_v57  ;;  %1157 = vmatprep.subr.bf16.mxu1 %v1120_v35  ;;  %1198 = vmatprep.subr.bf16.mxu0 %v1120_v35  ;;  %v3162_v18 = vpop.eup %3161 }
 0x2e7   : > { %1158 = vmatpush1.bf16.xpose.msra.mxu1 %v1119_v5  ;;  %1199 = vmatpush1.bf16.xpose.msra.mxu0 %v1119_v5  ;;  %v859_v17 = vpop.xlane.xlu0 %858  ;;  %v3164_v60 = vpop.eup %3163 }
 0x2e8   : > { %3173 = vpow2.f32 %v1023_v50  ;;  %v943_v8 = vsub.f32 %v3648_v24, %v859_v17  ;;  %v944_v7 = vsub.f32 %v3650_v25, %v859_v17 }
 0x2e9   : > { %3175 = vpow2.f32 %v1025_v58  ;;  %v862_v19 = vpop.xlane.xlu1 %861 }
 0x2ea   : > { %v3166_v21 = vpop.eup %3165  ;;  %v1027_v23 = vmul.f32 1.442695, %v943_v8  ;;  %v945_v9 = vsub.f32 %v3652_v26, %v862_v19  ;;  %v946_v42 = vsub.f32 %v3656_v28, %v862_v19  ;;  %v1029_v34 = vmul.f32 1.442695, %v944_v7 }
 0x2eb   : > { %v3168_v37 = vpop.eup %3167  ;;  %v1121_v44 = vpack.c.bf16 %v3166_v21, %v3162_v18 }
 0x2ec   : > { %v1031_v38 = vmul.f32 1.442695, %v945_v9  ;;  %v1033_v62 = vmul.f32 1.442695, %v946_v42  ;;  %v1122_v63 = vpack.c.bf16 %v3168_v37, %v3164_v60  ;;  %3177 = vpow2.f32 %v1027_v23 }
 0x2ee   : > { %3179 = vpow2.f32 %v1031_v38  ;;  %1159 = vmatprep.subr.bf16.mxu1 %v1122_v63  ;;  %1200 = vmatprep.subr.bf16.mxu0 %v1122_v63  ;;  %v3170_v25 = vpop.eup %3169 }
 0x2ef   : > { %3181 = vpow2.f32 %v1033_v62  ;;  %1160 = vmatpush1.bf16.xpose.msra.mxu1 %v1121_v44  ;;  %1201 = vmatpush1.bf16.xpose.msra.mxu0 %v1121_v44  ;;  %v865_v24 = vpop.xlane.xlu0 %864  ;;  %v3172_v48 = vpop.eup %3171 }
 0x2f0   : > { %3183 = vpow2.f32 %v1029_v34  ;;  %v947_v26 = vsub.f32 %v3660_v30, %v865_v24  ;;  %v948_v28 = vsub.f32 %v3662_v31, %v865_v24 }
 0x2f1   : > { %v868_v54 = vpop.xlane.xlu1 %867 }
 0x2f2   : > { %v3174_v11 = vpop.eup %3173  ;;  %v1035_v12 = vmul.f32 1.442695, %v947_v26  ;;  %v949_v1 = vsub.f32 %v3664_v32, %v868_v54  ;;  %v950_v3 = vsub.f32 %v3668_v36, %v868_v54  ;;  %v1037_v15 = vmul.f32 1.442695, %v948_v28 }
 0x2f3   : > { %v3176_v59 = vpop.eup %3175  ;;  %v1123_v13 = vpack.c.bf16 %v3174_v11, %v3170_v25 }
 0x2f4   : > { %v1039_v14 = vmul.f32 1.442695, %v949_v1  ;;  %v1041_v33 = vmul.f32 1.442695, %v950_v3  ;;  %v1124_v56 = vpack.c.bf16 %v3176_v59, %v3172_v48  ;;  %3185 = vpow2.f32 %v1035_v12 }
 0x2f6   : > { %3187 = vpow2.f32 %v1039_v14  ;;  %1161 = vmatprep.subr.bf16.mxu1 %v1124_v56  ;;  %1202 = vmatprep.subr.bf16.mxu0 %v1124_v56  ;;  %v3178_v30 = vpop.eup %3177 }
 0x2f7   : > { %3189 = vpow2.f32 %v1041_v33  ;;  %1162 = vmatpush1.bf16.xpose.msra.mxu1 %v1123_v13  ;;  %1203 = vmatpush1.bf16.xpose.msra.mxu0 %v1123_v13  ;;  %v871_v31 = vpop.xlane.xlu0 %870 }
 0x2f8   : > { %v3180_v5 = vpop.eup %3179  ;;  %3191 = vpow2.f32 %v1037_v15  ;;  %v951_v32 = vsub.f32 %v3672_v39, %v871_v31  ;;  %v952_v36 = vsub.f32 %v3674_v40, %v871_v31 }
 0x2f9   : > { %v3182_v6 = vpop.eup %3181  ;;  %v874_v57 = vpop.xlane.xlu1 %873  ;;  %v1125_v35 = vpack.c.bf16 %v3180_v5, %v3178_v30 }
 0x2fa   : > { %v3184_v50 = vpop.eup %3183  ;;  %v1043_v58 = vmul.f32 1.442695, %v951_v32  ;;  %v953_v17 = vsub.f32 %v3676_v41, %v874_v57  ;;  %v954_v18 = vsub.f32 %v3680_v43, %v874_v57  ;;  %v1045_v7 = vmul.f32 1.442695, %v952_v36 }
 0x2fb   : > { %v1126_v8 = vpack.c.bf16 %v3182_v6, %v3184_v50 }
 0x2fc   : > { %v1047_v60 = vmul.f32 1.442695, %v953_v17  ;;  %v1049_v19 = vmul.f32 1.442695, %v954_v18  ;;  %3193 = vpow2.f32 %v1043_v58 }
 0x2fd   : > { %1163 = vmatprep.subr.bf16.mxu1 %v1126_v8  ;;  %1204 = vmatprep.subr.bf16.mxu0 %v1126_v8 }
 0x2fe   : > { %3195 = vpow2.f32 %v1047_v60  ;;  %v3186_v39 = vpop.eup %3185 }
 0x2ff   : > { %3197 = vpow2.f32 %v1049_v19  ;;  %1164 = vmatpush1.bf16.xpose.msra.mxu1 %v1125_v35  ;;  %1205 = vmatpush1.bf16.xpose.msra.mxu0 %v1125_v35  ;;  %v877_v40 = vpop.xlane.xlu0 %876 }
 0x300   : > { %v3188_v21 = vpop.eup %3187  ;;  %3199 = vpow2.f32 %v1045_v7  ;;  %v955_v23 = vsub.f32 %v3684_v45, %v877_v40  ;;  %v956_v41 = vsub.f32 %v3686_v46, %v877_v40 }
 0x301   : > { %v3190_v43 = vpop.eup %3189  ;;  %v880_v9 = vpop.xlane.xlu1 %879  ;;  %v1127_v42 = vpack.c.bf16 %v3188_v21, %v3186_v39 }
 0x302   : > { %v3192_v37 = vpop.eup %3191  ;;  %v1051_v44 = vmul.f32 1.442695, %v955_v23  ;;  %v957_v34 = vsub.f32 %v3688_v47, %v880_v9  ;;  %v958_v38 = vsub.f32 %v3692_v49, %v880_v9  ;;  %v1053_v63 = vmul.f32 1.442695, %v956_v41 }
 0x303   : > { %v1128_v62 = vpack.c.bf16 %v3190_v43, %v3192_v37 }
 0x304   : > { %v1055_v24 = vmul.f32 1.442695, %v957_v34  ;;  %v1057_v25 = vmul.f32 1.442695, %v958_v38  ;;  %3201 = vpow2.f32 %v1051_v44 }
 0x305   : > { %1165 = vmatprep.subr.bf16.mxu1 %v1128_v62  ;;  %1206 = vmatprep.subr.bf16.mxu0 %v1128_v62 }
 0x306   : > { %3203 = vpow2.f32 %v1055_v24  ;;  %v3194_v45 = vpop.eup %3193  ;;  %v4481_v24 = vld [vmem:[#allocation6_spill] sm:$0xff] }
 0x307   : > { %3205 = vpow2.f32 %v1057_v25  ;;  %1166 = vmatpush1.bf16.xpose.msra.mxu1 %v1127_v42  ;;  %1207 = vmatpush1.bf16.xpose.msra.mxu0 %v1127_v42  ;;  %v883_v46 = vpop.xlane.xlu0 %882  ;;  %v4479_v42 = vld [vmem:[#allocation4_spill] sm:$0xff] }
 0x308   : > { %v3196_v26 = vpop.eup %3195  ;;  %3207 = vpow2.f32 %v1053_v63  ;;  %v959_v28 = vsub.f32 %v3696_v51, %v883_v46  ;;  %v960_v47 = vsub.f32 %v3698_v52, %v883_v46 }
 0x309   : > { %v3198_v49 = vpop.eup %3197  ;;  %v886_v48 = vpop.xlane.xlu1 %885  ;;  %v1129_v54 = vpack.c.bf16 %v3196_v26, %v3194_v45  ;;  %v4482_v45 = vld [vmem:[#allocation7_spill] sm:$0xff] }
 0x30a   : > { %v3200_v11 = vpop.eup %3199  ;;  %v1059_v12 = vmul.f32 1.442695, %v959_v28  ;;  %v961_v1 = vsub.f32 %v3700_v53, %v886_v48  ;;  %v962_v3 = vsub.f32 %v3704_v55, %v886_v48  ;;  %v1061_v13 = vmul.f32 1.442695, %v960_v47 }
 0x30b   : > { %v1130_v59 = vpack.c.bf16 %v3198_v49, %v3200_v11 }
 0x30c   : > { %v1063_v15 = vmul.f32 1.442695, %v961_v1  ;;  %v1065_v14 = vmul.f32 1.442695, %v962_v3  ;;  %3209 = vpow2.f32 %v1059_v12  ;;  %v4483_v12 = vld [vmem:[#allocation8_spill] sm:$0xff]  ;;  %v4484_v3 = vld [vmem:[#allocation9_spill] sm:$0xff] }
 0x30d   : > { %1167 = vmatprep.subr.bf16.mxu1 %v1130_v59  ;;  %1208 = vmatprep.subr.bf16.mxu0 %v1130_v59 }
 0x30e   : > { %3211 = vpow2.f32 %v1063_v15  ;;  %v3202_v51 = vpop.eup %3201 }
 0x30f   : > { %3213 = vpow2.f32 %v1065_v14  ;;  %1168 = vmatpush1.bf16.xpose.msra.mxu1 %v1129_v54  ;;  %1209 = vmatpush1.bf16.xpose.msra.mxu0 %v1129_v54  ;;  %v889_v52 = vpop.xlane.xlu0 %888 }
 0x310   : > { %v3204_v33 = vpop.eup %3203  ;;  %3215 = vpow2.f32 %v1061_v13  ;;  %v963_v56 = vsub.f32 %v3708_v61, %v889_v52  ;;  %v964_v53 = vsub.f32 %v3710_v2, %v889_v52 }
 0x311   : > { %v3206_v55 = vpop.eup %3205  ;;  %v892_v30 = vpop.xlane.xlu1 %891  ;;  %v1131_v31 = vpack.c.bf16 %v3204_v33, %v3202_v51  ;;  %v4485_v33 = vld [vmem:[#allocation10_spill] sm:$0xff] }
 0x312   : > { %v3208_v5 = vpop.eup %3207  ;;  %v1067_v32 = vmul.f32 1.442695, %v963_v56  ;;  %v965_v36 = vsub.f32 %v3712_v4, %v892_v30  ;;  %v966_v6 = vsub.f32 %v3716_v10, %v892_v30  ;;  %v1069_v35 = vmul.f32 1.442695, %v964_v53  ;;  %v4486_v53 = vld [vmem:[#allocation11_spill] sm:$0xff] }
 0x313   : > { %v1132_v57 = vpack.c.bf16 %v3206_v55, %v3208_v5 }
 0x314   : > { %v1071_v50 = vmul.f32 1.442695, %v965_v36  ;;  %v1073_v58 = vmul.f32 1.442695, %v966_v6  ;;  %3217 = vpow2.f32 %v1067_v32 }
 0x315   : > { %1169 = vmatprep.subr.bf16.mxu1 %v1132_v57  ;;  %1210 = vmatprep.subr.bf16.mxu0 %v1132_v57 }
 0x316   : > { %3219 = vpow2.f32 %v1071_v50  ;;  %v3210_v61 = vpop.eup %3209 }
 0x317   : > { %3221 = vpow2.f32 %v1073_v58  ;;  %1170 = vmatpush1.bf16.xpose.msra.mxu1 %v1131_v31  ;;  %1211 = vmatpush1.bf16.xpose.msra.mxu0 %v1131_v31  ;;  %v895_v2 = vpop.xlane.xlu0 %894  ;;  %v4488_v58 = vld [vmem:[#allocation13_spill] sm:$0xff] }
 0x318   : > { %v3212_v17 = vpop.eup %3211  ;;  %3223 = vpow2.f32 %v1069_v35  ;;  %v967_v18 = vsub.f32 %v3720_v16, %v895_v2  ;;  %v968_v4 = vsub.f32 %v3722_v20, %v895_v2  ;;  %v4487_v35 = vld [vmem:[#allocation12_spill] sm:$0xff] }
 0x319   : > { %v3214_v10 = vpop.eup %3213  ;;  %v898_v8 = vpop.xlane.xlu1 %897  ;;  %v1133_v7 = vpack.c.bf16 %v3212_v17, %v3210_v61 }
 0x31a   : > { %v3216_v60 = vpop.eup %3215  ;;  %v1075_v19 = vmul.f32 1.442695, %v967_v18  ;;  %v969_v39 = vsub.f32 %v3724_v22, %v898_v8  ;;  %v970_v40 = vsub.f32 %v3728_v29, %v898_v8  ;;  %v1077_v23 = vmul.f32 1.442695, %v968_v4  ;;  %v4480_v22 = vld [vmem:[#allocation5_spill] sm:$0xff] }
 0x31b   : > { %v1134_v21 = vpack.c.bf16 %v3214_v10, %v3216_v60 }
 0x31c   : > { %v1079_v41 = vmul.f32 1.442695, %v969_v39  ;;  %v1081_v43 = vmul.f32 1.442695, %v970_v40  ;;  %3225 = vpow2.f32 %v1075_v19  ;;  %v4490_v19 = vld [vmem:[#allocation15_spill] sm:$0xff] }
 0x31d   : > { %1171 = vmatprep.subr.bf16.mxu1 %v1134_v21  ;;  %1212 = vmatprep.subr.bf16.mxu0 %v1134_v21 }
 0x31e   : > { %3227 = vpow2.f32 %v1079_v41  ;;  %v3218_v16 = vpop.eup %3217 }
 0x31f   : > { %3229 = vpow2.f32 %v1081_v43  ;;  %1172 = vmatpush1.bf16.xpose.msra.mxu1 %v1133_v7  ;;  %1213 = vmatpush1.bf16.xpose.msra.mxu0 %v1133_v7  ;;  %v901_v20 = vpop.xlane.xlu0 %900  ;;  %v4489_v7 = vld [vmem:[#allocation14_spill] sm:$0xff] }
 0x320   : > { %v3220_v9 = vpop.eup %3219  ;;  %3231 = vpow2.f32 %v1077_v23  ;;  %v971_v37 = vsub.f32 %v4479_v42, %v901_v20  ;;  %v972_v44 = vsub.f32 %v4480_v22, %v901_v20  ;;  %v4491_v20 = vld [vmem:[#allocation16_spill] sm:$0xff]  ;;  %v4492_v42 = vld [vmem:[#allocation17_spill] sm:$0xff] }
 0x321   : > { %v3222_v29 = vpop.eup %3221  ;;  %v904_v34 = vpop.xlane.xlu1 %903  ;;  %v1135_v38 = vpack.c.bf16 %v3220_v9, %v3218_v16 }
 0x322   : > { %v3224_v62 = vpop.eup %3223  ;;  %v1083_v63 = vmul.f32 1.442695, %v971_v37  ;;  %v973_v25 = vsub.f32 %v4481_v24, %v904_v34  ;;  %v974_v46 = vsub.f32 %v4482_v45, %v904_v34  ;;  %v1085_v28 = vmul.f32 1.442695, %v972_v44  ;;  %v4493_v24 = vld [vmem:[#allocation18_spill] sm:$0xff] }
 0x323   : > { %v1136_v26 = vpack.c.bf16 %v3222_v29, %v3224_v62 }
 0x324   : > { %v1087_v47 = vmul.f32 1.442695, %v973_v25  ;;  %v1089_v49 = vmul.f32 1.442695, %v974_v46  ;;  %3233 = vpow2.f32 %v1083_v63 }
 0x325   : > { %1173 = vmatprep.subr.bf16.mxu1 %v1136_v26  ;;  %1214 = vmatprep.subr.bf16.mxu0 %v1136_v26 }
 0x326   : > { %3235 = vpow2.f32 %v1087_v47  ;;  %v3226_v48 = vpop.eup %3225 }
 0x327   : > { %3237 = vpow2.f32 %v1089_v49  ;;  %1174 = vmatpush1.bf16.xpose.msra.mxu1 %v1135_v38  ;;  %1215 = vmatpush1.bf16.xpose.msra.mxu0 %v1135_v38  ;;  %v907_v54 = vpop.xlane.xlu0 %906 }
 0x328   : > { %v3228_v11 = vpop.eup %3227  ;;  %3239 = vpow2.f32 %v1085_v28  ;;  %v975_v1 = vsub.f32 %v4483_v12, %v907_v54  ;;  %v976_v59 = vsub.f32 %v4484_v3, %v907_v54 }
 0x329   : > { %v3230_v13 = vpop.eup %3229  ;;  %v910_v15 = vpop.xlane.xlu1 %909  ;;  %v1137_v14 = vpack.c.bf16 %v3228_v11, %v3226_v48 }
 0x32a   : > { %v3232_v51 = vpop.eup %3231  ;;  %v1091_v52 = vmul.f32 1.442695, %v975_v1  ;;  %v977_v56 = vsub.f32 %v4485_v33, %v910_v15  ;;  %v978_v55 = vsub.f32 %v4486_v53, %v910_v15  ;;  %v1093_v31 = vmul.f32 1.442695, %v976_v59  ;;  %v4494_v15 = vld [vmem:[#allocation3_spill] sm:$0xff] }
 0x32b   : > { %v1138_v30 = vpack.c.bf16 %v3230_v13, %v3232_v51  ;;  %v4495_v51 = vld [vmem:[#allocation2_spill] sm:$0xff] }
 0x32c   : > { %v1095_v5 = vmul.f32 1.442695, %v977_v56  ;;  %v1097_v32 = vmul.f32 1.442695, %v978_v55  ;;  %3241 = vpow2.f32 %v1091_v52  ;;  %v1287_v52 = vrot.slane %v4495_v51, 1 }
 0x32d   : > { %1175 = vmatprep.subr.bf16.mxu1 %v1138_v30  ;;  %1216 = vmatprep.subr.bf16.mxu0 %v1138_v30  ;;  %v1149_v33 = vrot.slane %v4495_v51, 2  ;;  %v1857_v56 = vrot.slane %v4494_v15, 3  ;;  %v4496_v55 = vmov 0  }
 0x32e   : > { %3243 = vpow2.f32 %v1095_v5  ;;  %v3234_v36 = vpop.eup %3233  ;;  %v1338_v53 = vsel %vm627_vm3, %v1287_v52, 0 }
 0x32f   : > { %3245 = vpow2.f32 %v1097_v32  ;;  %1176 = vmatpush1.bf16.xpose.msra.mxu1 %v1137_v14  ;;  %1217 = vmatpush1.bf16.xpose.msra.mxu0 %v1137_v14  ;;  %v913_v6 = vpop.xlane.xlu0 %912  ;;  %v1288_v14 = vrot.slane %v4494_v15, 1 }
 0x330   : > { %v3236_v57 = vpop.eup %3235  ;;  %3247 = vpow2.f32 %v1093_v31  ;;  %v979_v50 = vsub.f32 %v4487_v35, %v913_v6  ;;  %v980_v61 = vsub.f32 %v4488_v58, %v913_v6 }
 0x331   : > { %v3238_v2 = vpop.eup %3237  ;;  %v916_v17 = vpop.xlane.xlu1 %915  ;;  %v1139_v18 = vpack.c.bf16 %v3236_v57, %v3234_v36 }
 0x332   : > { %v3240_v4 = vpop.eup %3239  ;;  %v1099_v10 = vmul.f32 1.442695, %v979_v50  ;;  %v1101_v8 = vmul.f32 1.442695, %v980_v61  ;;  %v981_v60 = vsub.f32 %v4489_v7, %v916_v17  ;;  %v982_v39 = vsub.f32 %v4490_v19, %v916_v17 }
 0x333   : > { %v1140_v40 = vpack.c.bf16 %v3238_v2, %v3240_v4 }
 0x334   : > { %3249 = vpow2.f32 %v1099_v10  ;;  %v1103_v21 = vmul.f32 1.442695, %v981_v60  ;;  %v1105_v23 = vmul.f32 1.442695, %v982_v39  ;;  %v1237_v60 = vlaneseq }
 0x335   : > { %3251 = vpow2.f32 %v1101_v8  ;;  %1177 = vmatprep.subr.bf16.mxu1 %v1140_v40  ;;  %1218 = vmatprep.subr.bf16.mxu0 %v1140_v40 }
 0x336   : > { %3253 = vpow2.f32 %v1103_v21  ;;  %v3242_v41 = vpop.eup %3241 }
 0x337   : > { %3255 = vpow2.f32 %v1105_v23  ;;  %1178 = vmatpush1.bf16.xpose.msra.mxu1 %v1139_v18  ;;  %1219 = vmatpush1.bf16.xpose.msra.mxu0 %v1139_v18  ;;  %v919_v43 = vpop.xlane.xlu0 %918 }
 0x338   : > { %v3244_v16 = vpop.eup %3243  ;;  %v983_v9 = vsub.f32 %v4491_v20, %v919_v43  ;;  %v984_v37 = vsub.f32 %v4492_v42, %v919_v43  ;;  %v3887_v43 = vshrl.u32 %v1237_v60, 7 }
 0x339   : > { %v3246_v22 = vpop.eup %3245  ;;  %v922_v44 = vpop.xlane.xlu1 %921  ;;  %v1141_v29 = vpack.c.bf16 %v3244_v16, %v3242_v41 }
 0x33a   : > { %v3248_v34 = vpop.eup %3247  ;;  %v1107_v38 = vmul.f32 1.442695, %v983_v9  ;;  %v1109_v62 = vmul.f32 1.442695, %v984_v37  ;;  %v985_v63 = vsub.f32 %v3772_v0, %v922_v44  ;;  %v986_v25 = vsub.f32 %v4493_v24, %v922_v44 }
 0x33b   : > { %v1142_v45 = vpack.c.bf16 %v3246_v22, %v3248_v34  ;;  %v3892_v20 = vsub.s32 0, %v3887_v43 }
 0x33c   : > { %3257 = vpow2.f32 %v1107_v38  ;;  %v1111_v46 = vmul.f32 1.442695, %v985_v63  ;;  %v1113_v26 = vmul.f32 1.442695, %v986_v25 }
 0x33d   : > { %3259 = vpow2.f32 %v1109_v62  ;;  %1179 = vmatprep.subr.bf16.mxu1 %v1142_v45  ;;  %1220 = vmatprep.subr.bf16.mxu0 %v1142_v45  ;;  %v1263_v30 = vpop.trf.xlu0  ;;  %4497 = vst [vmem:[#allocation4_spill] sm:$0xff] %v3892_v20 }
 0x33e   : > { %v3250_v28 = vpop.eup %3249  ;;  %3261 = vpow2.f32 %v1111_v46 }
 0x33f   : > { %v3252_v47 = vpop.eup %3251  ;;  %3263 = vpow2.f32 %v1113_v26  ;;  %1180 = vmatpush1.bf16.xpose.msra.mxu1 %v1141_v29  ;;  %1221 = vmatpush1.bf16.xpose.msra.mxu0 %v1141_v29  ;;  %v1279_v50 = vpop.trf.xlu1 }
 0x340   : > { %v3254_v49 = vpop.eup %3253 }
 0x341   : > { %v3256_v48 = vpop.eup %3255  ;;  %v1143_v54 = vpack.c.bf16 %v3254_v49, %v3250_v28  ;;  %v1264_v31 = vpop.trf.xlu0 }
 0x342   : > { %v1144_v11 = vpack.c.bf16 %v3256_v48, %v3252_v47 }
 0x343   : > { %v1280_v58 = vpop.trf.xlu1 }
 0x344   : > { %1181 = vmatprep.subr.bf16.mxu1 %v1144_v11  ;;  %1222 = vmatprep.subr.bf16.mxu0 %v1144_v11 }
 0x345   : > { %v1265_v5 = vpop.trf.xlu0 }
 0x346   : > { %v3258_v0 = vpop.eup %3257 }
 0x347   : > { %v3260_v12 = vpop.eup %3259  ;;  %1182 = vmatpush1.bf16.xpose.msra.mxu1 %v1143_v54  ;;  %1223 = vmatpush1.bf16.xpose.msra.mxu0 %v1143_v54  ;;  %v1281_v61 = vpop.trf.xlu1 }
 0x348   : > { %v3262_v1 = vpop.eup %3261 }
 0x349   : > { %v3264_v3 = vpop.eup %3263  ;;  %v1145_v59 = vpack.c.bf16 %v3262_v1, %v3258_v0  ;;  %v1266_v32 = vpop.trf.xlu0 }
 0x34a   : > { %v1146_v13 = vpack.c.bf16 %v3264_v3, %v3260_v12 }
 0x34b   : > { %v1282_v2 = vpop.trf.xlu1 }
 0x34c   : > { %1183 = vmatprep.subr.bf16.mxu1 %v1146_v13  ;;  %1224 = vmatprep.subr.bf16.mxu0 %v1146_v13 }
 0x34d   : > { %v1267_v36 = vpop.trf.xlu0 }
 0x34f   : > { %1184 = vmatpush1.bf16.xpose.msra.mxu1 %v1145_v59  ;;  %1225 = vmatpush1.bf16.xpose.msra.mxu0 %v1145_v59  ;;  %v1283_v17 = vpop.trf.xlu1 }
 0x350   : > { %3012 = vmatprep.subr.msk.bf16.mxu1 %vm627_vm3, %v1288_v14 }
 0x351   : > { %v1268_v6 = vpop.trf.xlu0 }
 0x353   : > { %v1284_v18 = vpop.trf.xlu1 }
 0x355   : > { %v1269_v57 = vpop.trf.xlu0 }
 0x356   : > { %1186 = vmatmul.mubr.bf16.vlgmr.msra.gmra.mrb[72].mxu1 %v1149_v33  ;;  %1227 = vmatmul.mubr.bf16.vlgmr.msra.gmra.mrb[0].mxu0 %v4443_v27 }
 0x357   : > { %1344 = vmatpush1.bf16.msra.mxu1 %v1338_v53  ;;  %1892 = vmatprep.mubr.bf16.mxu0 %v1857_v56  ;;  %v1285_v4 = vpop.trf.xlu1 }
 0x358   : > { %1375 = vmatprep.mubr.bf16.mxu1 %v4496_v55 }
 0x359   : > { %v1270_v35 = vpop.trf.xlu0 }
 0x35b   : > { %v1286_v10 = vpop.trf.xlu1 }
 0x35e   : > { %3013 = vmatmul.mubr.msk.bf16.vlgmr.msra.gmra.mrb[76].mxu1 %vm578_vm4, %v1263_v30 }
 0x35f   : > { %1385 = vmatprep.mubr.bf16.mxu1 %v4496_v55 }
 0x366   : > { %3014 = vmatmul.mubr.msk.bf16.gmra.mrb[80].mxu1 %vm578_vm4, %v1264_v31 }
 0x367   : > { %1395 = vmatprep.mubr.bf16.mxu1 %v4496_v55 }
 0x36e   : > { %3015 = vmatmul.mubr.msk.bf16.gmra.mrb[84].mxu1 %vm578_vm4, %v1265_v5 }
 0x36f   : > { %1405 = vmatprep.mubr.bf16.mxu1 %v4496_v55 }
 0x376   : > { %3016 = vmatmul.mubr.msk.bf16.gmra.mrb[88].mxu1 %vm578_vm4, %v1266_v32 }
 0x377   : > { %1415 = vmatprep.mubr.bf16.mxu1 %v4496_v55 }
 0x37e   : > { %3017 = vmatmul.mubr.msk.bf16.gmra.mrb[92].mxu1 %vm578_vm4, %v1267_v36 }
 0x37f   : > { %1425 = vmatprep.mubr.bf16.mxu1 %v4496_v55 }
 0x386   : > { %3018 = vmatmul.mubr.msk.bf16.gmra.mrb[96].mxu1 %vm578_vm4, %v1268_v6 }
 0x387   : > { %1435 = vmatprep.mubr.bf16.mxu1 %v4496_v55 }
 0x38e   : > { %3019 = vmatmul.mubr.msk.bf16.gmra.mrb[100].mxu1 %vm578_vm4, %v1269_v57 }
 0x38f   : > { %1445 = vmatprep.mubr.bf16.mxu1 %v4496_v55 }
 0x396   : > { %3020 = vmatmul.mubr.msk.bf16.gmra.mrb[104].mxu1 %vm578_vm4, %v1270_v35 }
 0x397   : > { %1455 = vmatprep.mubr.bf16.mxu1 %v4496_v55 }
 0x39e   : > { %3021 = vmatmul.mubr.msk.bf16.gmra.mrb[108].mxu1 %vm578_vm4, %v1279_v50 }
 0x39f   : > { %1465 = vmatprep.mubr.bf16.mxu1 %v4496_v55 }
 0x3a6   : > { %3022 = vmatmul.mubr.msk.bf16.gmra.mrb[112].mxu1 %vm578_vm4, %v1280_v58 }
 0x3a7   : > { %1475 = vmatprep.mubr.bf16.mxu1 %v4496_v55 }
 0x3ae   : > { %3023 = vmatmul.mubr.msk.bf16.gmra.mrb[116].mxu1 %vm578_vm4, %v1281_v61 }
 0x3af   : > { %1485 = vmatprep.mubr.bf16.mxu1 %v4496_v55 }
 0x3b6   : > { %3024 = vmatmul.mubr.msk.bf16.gmra.mrb[120].mxu1 %vm578_vm4, %v1282_v2 }
 0x3b7   : > { %1495 = vmatprep.mubr.bf16.mxu1 %v4496_v55 }
 0x3be   : > { %3025 = vmatmul.mubr.msk.bf16.gmra.mrb[124].mxu1 %vm578_vm4, %v1283_v17 }
 0x3bf   : > { %1505 = vmatprep.mubr.bf16.mxu1 %v4496_v55 }
 0x3c6   : > { %3026 = vmatmul.mubr.msk.bf16.gmra.mrb[128].mxu1 %vm578_vm4, %v1284_v18 }
 0x3c7   : > { %1515 = vmatprep.mubr.bf16.mxu1 %v4496_v55 }
 0x3ce   : > { %3027 = vmatmul.mubr.msk.bf16.gmra.mrb[132].mxu1 %vm578_vm4, %v1285_v4 }
 0x3cf   : > { %1525 = vmatprep.mubr.bf16.mxu1 %v4496_v55 }
 0x3d6   : > { %3028 = vmatmul.mubr.msk.bf16.gmra.mrb[136].mxu1 %vm578_vm4, %v1286_v10 }
 0x3d7   : > { %1933 = vmatprep.mubr.bf16.mxu1 %v4443_v27 }
 0x429   : > { %v1187_v8 = vpop.f32.mrb[72].mxu1  ;;  %v1228_v7 = vpop.f32.mrb[0].mxu0 }
 0x42a   : > { %3265 = vrcp.f32 %v1228_v7  ;;  %v1189_v19 = vpop.f32.mrb[73].mxu1  ;;  %v1230_v39 = vpop.f32.mrb[1].mxu0 }
 0x42b   : > { %3267 = vrcp.f32 %v1230_v39  ;;  %v1191_v40 = vpop.f32.mrb[74].mxu1  ;;  %v1232_v21 = vpop.f32.mrb[2].mxu0 }
 0x42c   : > { %v1192_v23 = vpop.f32.mrb[75].mxu1  ;;  %v1233_v41 = vpop.f32.mrb[3].mxu0 }
 0x431   : > { %v3889_v16 = vpop.f32.mrb[76].mxu1 }
 0x432   : > { %v3894_v9 = vpop.f32.mrb[77].mxu1 }
 0x433   : > { %v3896_v42 = vpop.f32.mrb[78].mxu1  ;;  %v1536_v37 = vmax.f32 %v3889_v16, %v3894_v9 }
 0x434   : > { %v3266_v22 = vpop.eup %3265  ;;  %v3900_v44 = vpop.f32.mrb[79].mxu1 }
 0x435   : > { %v3268_v29 = vpop.eup %3267  ;;  %1537 = vmax.xlane.f32.xlu0 %v1536_v37  ;;  %v1539_v34 = vmax.f32 %v3896_v42, %v3900_v44  ;;  %v1240_v38 = vrot.slane %v3266_v22, %v3892_v20 }
 0x436   : > { %v1244_v62 = vrot.slane %v3268_v29, %v3892_v20 }
 0x437   : > { %1540 = vmax.xlane.f32.xlu1 %v1539_v34  ;;  %v3906_v63 = vmul.f32 %v1240_v38, %v1187_v8 }
 0x438   : > { %v3908_v24 = vmul.f32 %v1244_v62, %v1189_v19 }
 0x439   : > { %4498 = vst [vmem:[#allocation5_spill] sm:$0xff] %v3906_v63  ;;  %v3910_v25 = vpop.f32.mrb[80].mxu1 }
 0x43a   : > { %4499 = vst [vmem:[#allocation6_spill] sm:$0xff] %v3908_v24  ;;  %v3912_v45 = vpop.f32.mrb[81].mxu1 }
 0x43b   : > { %v3914_v46 = vpop.f32.mrb[82].mxu1  ;;  %v1542_v26 = vmax.f32 %v3910_v25, %v3912_v45 }
 0x43c   : > { %v3918_v28 = vpop.f32.mrb[83].mxu1 }
 0x43d   : > { %1543 = vmax.xlane.f32.xlu0 %v1542_v26  ;;  %v1545_v47 = vmax.f32 %v3914_v46, %v3918_v28 }
 0x43f   : > { %1546 = vmax.xlane.f32.xlu1 %v1545_v47 }
 0x441   : > { %v3922_v49 = vpop.f32.mrb[84].mxu1 }
 0x442   : > { %v3924_v48 = vpop.f32.mrb[85].mxu1 }
 0x443   : > { %v3926_v54 = vpop.f32.mrb[86].mxu1  ;;  %v1548_v11 = vmax.f32 %v3922_v49, %v3924_v48 }
 0x444   : > { %v3930_v0 = vpop.f32.mrb[87].mxu1 }
 0x445   : > { %1549 = vmax.xlane.f32.xlu0 %v1548_v11  ;;  %v1551_v12 = vmax.f32 %v3926_v54, %v3930_v0 }
 0x447   : > { %1552 = vmax.xlane.f32.xlu1 %v1551_v12 }
 0x449   : > { %v3934_v1 = vpop.f32.mrb[88].mxu1 }
 0x44a   : > { %v3936_v3 = vpop.f32.mrb[89].mxu1 }
 0x44b   : > { %v3938_v59 = vpop.f32.mrb[90].mxu1  ;;  %v1554_v13 = vmax.f32 %v3934_v1, %v3936_v3 }
 0x44c   : > { %v3942_v15 = vpop.f32.mrb[91].mxu1 }
 0x44d   : > { %1555 = vmax.xlane.f32.xlu0 %v1554_v13  ;;  %v1557_v14 = vmax.f32 %v3938_v59, %v3942_v15 }
 0x44f   : > { %1558 = vmax.xlane.f32.xlu1 %v1557_v14 }
 0x451   : > { %v3946_v52 = vpop.f32.mrb[92].mxu1 }
 0x452   : > { %v3948_v33 = vpop.f32.mrb[93].mxu1 }
 0x453   : > { %v3950_v56 = vpop.f32.mrb[94].mxu1  ;;  %v1560_v53 = vmax.f32 %v3946_v52, %v3948_v33 }
 0x454   : > { %v3954_v30 = vpop.f32.mrb[95].mxu1 }
 0x455   : > { %1561 = vmax.xlane.f32.xlu0 %v1560_v53  ;;  %v1563_v31 = vmax.f32 %v3950_v56, %v3954_v30 }
 0x457   : > { %1564 = vmax.xlane.f32.xlu1 %v1563_v31 }
 0x459   : > { %v3958_v5 = vpop.f32.mrb[96].mxu1 }
 0x45a   : > { %v3960_v32 = vpop.f32.mrb[97].mxu1 }
 0x45b   : > { %v3962_v36 = vpop.f32.mrb[98].mxu1  ;;  %v1566_v6 = vmax.f32 %v3958_v5, %v3960_v32 }
 0x45c   : > { %v3966_v57 = vpop.f32.mrb[99].mxu1 }
 0x45d   : > { %1567 = vmax.xlane.f32.xlu0 %v1566_v6  ;;  %v1569_v35 = vmax.f32 %v3962_v36, %v3966_v57 }
 0x45f   : > { %1570 = vmax.xlane.f32.xlu1 %v1569_v35 }
 0x461   : > { %v3970_v50 = vpop.f32.mrb[100].mxu1 }
 0x462   : > { %v3972_v58 = vpop.f32.mrb[101].mxu1 }
 0x463   : > { %v3974_v61 = vpop.f32.mrb[102].mxu1  ;;  %v1572_v2 = vmax.f32 %v3970_v50, %v3972_v58 }
 0x464   : > { %v3978_v17 = vpop.f32.mrb[103].mxu1 }
 0x465   : > { %1573 = vmax.xlane.f32.xlu0 %v1572_v2  ;;  %v1575_v18 = vmax.f32 %v3974_v61, %v3978_v17 }
 0x467   : > { %1576 = vmax.xlane.f32.xlu1 %v1575_v18 }
 0x469   : > { %v3982_v4 = vpop.f32.mrb[104].mxu1 }
 0x46a   : > { %v3984_v10 = vpop.f32.mrb[105].mxu1 }
 0x46b   : > { %v3986_v8 = vpop.f32.mrb[106].mxu1  ;;  %v1578_v7 = vmax.f32 %v3982_v4, %v3984_v10 }
 0x46c   : > { %v3990_v60 = vpop.f32.mrb[107].mxu1 }
 0x46d   : > { %1579 = vmax.xlane.f32.xlu0 %v1578_v7  ;;  %v1581_v19 = vmax.f32 %v3986_v8, %v3990_v60 }
 0x46f   : > { %1582 = vmax.xlane.f32.xlu1 %v1581_v19 }
 0x471   : > { %v3994_v39 = vpop.f32.mrb[108].mxu1 }
 0x472   : > { %v3996_v40 = vpop.f32.mrb[109].mxu1 }
 0x473   : > { %v3998_v21 = vpop.f32.mrb[110].mxu1  ;;  %v1584_v23 = vmax.f32 %v3994_v39, %v3996_v40 }
 0x474   : > { %v4002_v41 = vpop.f32.mrb[111].mxu1 }
 0x475   : > { %1585 = vmax.xlane.f32.xlu0 %v1584_v23  ;;  %v1587_v37 = vmax.f32 %v3998_v21, %v4002_v41 }
 0x477   : > { %1588 = vmax.xlane.f32.xlu1 %v1587_v37 }
 0x479   : > { %v4006_v22 = vpop.f32.mrb[112].mxu1 }
 0x47a   : > { %v4008_v29 = vpop.f32.mrb[113].mxu1 }
 0x47b   : > { %v4010_v34 = vpop.f32.mrb[114].mxu1  ;;  %v1590_v38 = vmax.f32 %v4006_v22, %v4008_v29 }
 0x47c   : > { %v4014_v62 = vpop.f32.mrb[115].mxu1 }
 0x47d   : > { %1591 = vmax.xlane.f32.xlu0 %v1590_v38  ;;  %v1593_v26 = vmax.f32 %v4010_v34, %v4014_v62 }
 0x47f   : > { %1594 = vmax.xlane.f32.xlu1 %v1593_v26 }
 0x481   : > { %v4018_v47 = vpop.f32.mrb[116].mxu1 }
 0x482   : > { %v4020_v11 = vpop.f32.mrb[117].mxu1 }
 0x483   : > { %v4022_v12 = vpop.f32.mrb[118].mxu1  ;;  %v1596_v13 = vmax.f32 %v4018_v47, %v4020_v11 }
 0x484   : > { %v4026_v14 = vpop.f32.mrb[119].mxu1 }
 0x485   : > { %1597 = vmax.xlane.f32.xlu0 %v1596_v13  ;;  %v1599_v53 = vmax.f32 %v4022_v12, %v4026_v14 }
 0x487   : > { %1600 = vmax.xlane.f32.xlu1 %v1599_v53 }
 0x489   : > { %v4030_v31 = vpop.f32.mrb[120].mxu1 }
 0x48a   : > { %v4032_v6 = vpop.f32.mrb[121].mxu1 }
 0x48b   : > { %v4034_v35 = vpop.f32.mrb[122].mxu1  ;;  %v1602_v2 = vmax.f32 %v4030_v31, %v4032_v6 }
 0x48c   : > { %v4038_v18 = vpop.f32.mrb[123].mxu1 }
 0x48d   : > { %1603 = vmax.xlane.f32.xlu0 %v1602_v2  ;;  %v1605_v7 = vmax.f32 %v4034_v35, %v4038_v18 }
 0x48f   : > { %1606 = vmax.xlane.f32.xlu1 %v1605_v7 }
 0x491   : > { %v4042_v19 = vpop.f32.mrb[124].mxu1 }
 0x492   : > { %v4044_v23 = vpop.f32.mrb[125].mxu1 }
 0x493   : > { %4500 = vst [vmem:[#allocation7_spill] sm:$0xff] %v4044_v23  ;;  %v4046_v37 = vpop.f32.mrb[126].mxu1  ;;  %v1608_v38 = vmax.f32 %v4042_v19, %v4044_v23 }
 0x494   : > { %4501 = vst [vmem:[#allocation8_spill] sm:$0xff] %v4046_v37  ;;  %v4050_v26 = vpop.f32.mrb[127].mxu1 }
 0x495   : > { %4502 = vst [vmem:[#allocation9_spill] sm:$0xff] %v4050_v26  ;;  %1609 = vmax.xlane.f32.xlu0 %v1608_v38  ;;  %v1611_v13 = vmax.f32 %v4046_v37, %v4050_v26 }
 0x497   : > { %1612 = vmax.xlane.f32.xlu1 %v1611_v13 }
 0x499   : > { %v4054_v53 = vpop.f32.mrb[128].mxu1 }
 0x49a   : > { %4503 = vst [vmem:[#allocation10_spill] sm:$0xff] %v4054_v53  ;;  %v4056_v2 = vpop.f32.mrb[129].mxu1 }
 0x49b   : > { %4504 = vst [vmem:[#allocation11_spill] sm:$0xff] %v4056_v2  ;;  %v4058_v7 = vpop.f32.mrb[130].mxu1  ;;  %v1614_v27 = vmax.f32 %v4054_v53, %v4056_v2 }
 0x49c   : > { %4505 = vst [vmem:[#allocation12_spill] sm:$0xff] %v4058_v7  ;;  %v4062_v63 = vpop.f32.mrb[131].mxu1 }
 0x49d   : > { %4506 = vst [vmem:[#allocation13_spill] sm:$0xff] %v4062_v63  ;;  %v1617_v24 = vmax.f32 %v4058_v7, %v4062_v63  ;;  %1615 = vmax.xlane.f32.xlu0 %v1614_v27 }
 0x49f   : > { %1618 = vmax.xlane.f32.xlu1 %v1617_v24 }
 0x4a1   : > { %v4066_v38 = vpop.f32.mrb[132].mxu1 }
 0x4a2   : > { %4507 = vst [vmem:[#allocation14_spill] sm:$0xff] %v4066_v38  ;;  %v4068_v20 = vpop.f32.mrb[133].mxu1 }
 0x4a3   : > { %4508 = vst [vmem:[#allocation15_spill] sm:$0xff] %v4068_v20  ;;  %v4070_v13 = vpop.f32.mrb[134].mxu1  ;;  %v1620_v55 = vmax.f32 %v4066_v38, %v4068_v20 }
 0x4a4   : > { %4509 = vst [vmem:[#allocation16_spill] sm:$0xff] %v4070_v13  ;;  %v4074_v51 = vpop.f32.mrb[135].mxu1 }
 0x4a5   : > { %4510 = vst [vmem:[#allocation17_spill] sm:$0xff] %v4074_v51  ;;  %v1623_v2 = vmax.f32 %v4070_v13, %v4074_v51  ;;  %1621 = vmax.xlane.f32.xlu0 %v1620_v55 }
 0x4a7   : > { %1624 = vmax.xlane.f32.xlu1 %v1623_v2 }
 0x4a9   : > { %v4078_v53 = vpop.f32.mrb[136].mxu1 }
 0x4aa   : > { %4511 = vst [vmem:[#allocation18_spill] sm:$0xff] %v4078_v53  ;;  %v4080_v27 = vpop.f32.mrb[137].mxu1 }
 0x4ab   : > { %4512 = vst [vmem:[#allocation3_spill] sm:$0xff] %v4080_v27  ;;  %v4082_v24 = vpop.f32.mrb[138].mxu1  ;;  %v1626_v63 = vmax.f32 %v4078_v53, %v4080_v27 }
 0x4ac   : > { %v4086_v7 = vpop.f32.mrb[139].mxu1 }
 0x4ad   : > { %4513 = vst [vmem:[#allocation19_spill] sm:$0xff] %v4086_v7  ;;  %v1629_v20 = vmax.f32 %v4082_v24, %v4086_v7  ;;  %1627 = vmax.xlane.f32.xlu0 %v1626_v63 }
 0x4af   : > { %1630 = vmax.xlane.f32.xlu1 %v1629_v20 }
 0x4c2   : > { %v1538_v38 = vpop.xlane.xlu0 %1537 }
 0x4c3   : > { %v1632_v55 = vsub.f32 %v3889_v16, %v1538_v38  ;;  %v1633_v2 = vsub.f32 %v3894_v9, %v1538_v38 }
 0x4c4   : > { %v1541_v51 = vpop.xlane.xlu1 %1540 }
 0x4c5   : > { %v1696_v13 = vmul.f32 1.442695, %v1632_v55  ;;  %v1634_v26 = vsub.f32 %v3896_v42, %v1541_v51  ;;  %v1635_v37 = vsub.f32 %v3900_v44, %v1541_v51  ;;  %v1698_v23 = vmul.f32 1.442695, %v1633_v2 }
 0x4c7   : > { %v1700_v27 = vmul.f32 1.442695, %v1634_v26  ;;  %v1702_v53 = vmul.f32 1.442695, %v1635_v37  ;;  %3269 = vpow2.f32 %v1696_v13 }
 0x4c9   : > { %3271 = vpow2.f32 %v1700_v27 }
 0x4ca   : > { %3273 = vpow2.f32 %v1702_v53  ;;  %v1544_v7 = vpop.xlane.xlu0 %1543 }
 0x4cb   : > { %3275 = vpow2.f32 %v1698_v23  ;;  %v1636_v20 = vsub.f32 %v3910_v25, %v1544_v7  ;;  %v1637_v16 = vsub.f32 %v3912_v45, %v1544_v7 }
 0x4cc   : > { %v1547_v63 = vpop.xlane.xlu1 %1546 }
 0x4cd   : > { %v1704_v9 = vmul.f32 1.442695, %v1636_v20  ;;  %v1638_v38 = vsub.f32 %v3914_v46, %v1547_v63  ;;  %v1639_v42 = vsub.f32 %v3918_v28, %v1547_v63  ;;  %v1706_v55 = vmul.f32 1.442695, %v1637_v16 }
 0x4cf   : > { %v1708_v51 = vmul.f32 1.442695, %v1638_v38  ;;  %v1710_v44 = vmul.f32 1.442695, %v1639_v42  ;;  %3277 = vpow2.f32 %v1704_v9 }
 0x4d1   : > { %3279 = vpow2.f32 %v1708_v51  ;;  %v3270_v37 = vpop.eup %3269 }
 0x4d2   : > { %3281 = vpow2.f32 %v1710_v44  ;;  %v1550_v26 = vpop.xlane.xlu0 %1549 }
 0x4d3   : > { %v3272_v53 = vpop.eup %3271  ;;  %3283 = vpow2.f32 %v1706_v55  ;;  %v1640_v25 = vsub.f32 %v3922_v49, %v1550_v26  ;;  %v1641_v45 = vsub.f32 %v3924_v48, %v1550_v26  ;;  %v3438_v49 = vmov 1983009808  }
 0x4d4   : > { %v3274_v23 = vpop.eup %3273  ;;  %v1553_v7 = vpop.xlane.xlu1 %1552  ;;  %v1824_v13 = vpack.c.bf16 %v3272_v53, %v3270_v37  ;;  %v1958_v48 = vunpack.c.l.s4 %v3438_v49 }
 0x4d5   : > { %v3276_v46 = vpop.eup %3275  ;;  %v1712_v27 = vmul.f32 1.442695, %v1640_v25  ;;  %v1642_v28 = vsub.f32 %v3926_v54, %v1553_v7  ;;  %v1643_v2 = vsub.f32 %v3930_v0, %v1553_v7  ;;  %v1714_v16 = vmul.f32 1.442695, %v1641_v45  ;;  %v4109_v7 = vld [vmem:[%s4417_s3] sm:$0x3] }
 0x4d6   : > { %v1825_v20 = vpack.c.bf16 %v3274_v23, %v3276_v46  ;;  %v1959_v51 = vunpack.c.0.s8 %v1958_v48 }
 0x4d7   : > { %v1716_v63 = vmul.f32 1.442695, %v1642_v28  ;;  %v1718_v9 = vmul.f32 1.442695, %v1643_v2  ;;  %3285 = vpow2.f32 %v1712_v27 }
 0x4d8   : > { %1860 = vmatprep.subr.bf16.mxu0 %v1825_v20  ;;  %1901 = vmatprep.subr.bf16.mxu1 %v1825_v20 }
 0x4d9   : > { %3287 = vpow2.f32 %v1716_v63  ;;  %1861 = vmatpush1.bf16.xpose.msra.mxu0 %v1824_v13  ;;  %1902 = vmatpush1.bf16.xpose.msra.mxu1 %v1824_v13  ;;  %v3278_v38 = vpop.eup %3277 }
 0x4da   : > { %3289 = vpow2.f32 %v1718_v9  ;;  %v1556_v42 = vpop.xlane.xlu0 %1555 }
 0x4db   : > { %v3280_v55 = vpop.eup %3279  ;;  %3291 = vpow2.f32 %v1714_v16  ;;  %v1644_v54 = vsub.f32 %v3934_v1, %v1556_v42  ;;  %v1645_v0 = vsub.f32 %v3936_v3, %v1556_v42  ;;  %v1962_v1 = vsub.s32 %v1959_v51, %v3887_v43 }
 0x4dc   : > { %v3282_v44 = vpop.eup %3281  ;;  %v1559_v37 = vpop.xlane.xlu1 %1558  ;;  %v1826_v26 = vpack.c.bf16 %v3280_v55, %v3278_v38 }
 0x4dd   : > { %v3284_v53 = vpop.eup %3283  ;;  %v1720_v25 = vmul.f32 1.442695, %v1644_v54  ;;  %v1646_v45 = vsub.f32 %v3938_v59, %v1559_v37  ;;  %v1647_v23 = vsub.f32 %v3942_v15, %v1559_v37  ;;  %v1722_v46 = vmul.f32 1.442695, %v1645_v0 }
 0x4de   : > { %v1827_v13 = vpack.c.bf16 %v3282_v44, %v3284_v53  ;;  %v1963_v28 = vrot.slane %v4109_v7, %v1962_v1 }
 0x4df   : > { %v1724_v3 = vmul.f32 1.442695, %v1646_v45  ;;  %v1726_v27 = vmul.f32 1.442695, %v1647_v23  ;;  %3293 = vpow2.f32 %v1720_v25 }
 0x4e0   : > { %1862 = vmatprep.subr.bf16.mxu0 %v1827_v13  ;;  %1903 = vmatprep.subr.bf16.mxu1 %v1827_v13 }
 0x4e1   : > { %3295 = vpow2.f32 %v1724_v3  ;;  %1863 = vmatpush1.bf16.xpose.msra.mxu0 %v1826_v26  ;;  %1904 = vmatpush1.bf16.xpose.msra.mxu1 %v1826_v26  ;;  %v3286_v59 = vpop.eup %3285 }
 0x4e2   : > { %3297 = vpow2.f32 %v1726_v27  ;;  %v1562_v15 = vpop.xlane.xlu0 %1561  ;;  %1964 = vrot.lane.b32.xlu0 %v1963_v28, %s3439_s22 }
 0x4e3   : > { %v3288_v2 = vpop.eup %3287  ;;  %3299 = vpow2.f32 %v1722_v46  ;;  %v1648_v20 = vsub.f32 %v3946_v52, %v1562_v15  ;;  %v1649_v16 = vsub.f32 %v3948_v33, %v1562_v15 }
 0x4e4   : > { %v3290_v63 = vpop.eup %3289  ;;  %v1565_v9 = vpop.xlane.xlu1 %1564  ;;  %v1828_v49 = vpack.c.bf16 %v3288_v2, %v3286_v59 }
 0x4e5   : > { %v3292_v48 = vpop.eup %3291  ;;  %v1728_v38 = vmul.f32 1.442695, %v1648_v20  ;;  %v1650_v42 = vsub.f32 %v3950_v56, %v1565_v9  ;;  %v1651_v55 = vsub.f32 %v3954_v30, %v1565_v9  ;;  %v1730_v0 = vmul.f32 1.442695, %v1649_v16 }
 0x4e6   : > { %v1829_v54 = vpack.c.bf16 %v3290_v63, %v3292_v48 }
 0x4e7   : > { %v1732_v51 = vmul.f32 1.442695, %v1650_v42  ;;  %v1734_v44 = vmul.f32 1.442695, %v1651_v55  ;;  %3301 = vpow2.f32 %v1728_v38 }
 0x4e8   : > { %1864 = vmatprep.subr.bf16.mxu0 %v1829_v54  ;;  %1905 = vmatprep.subr.bf16.mxu1 %v1829_v54 }
 0x4e9   : > { %3303 = vpow2.f32 %v1732_v51  ;;  %1865 = vmatpush1.bf16.xpose.msra.mxu0 %v1828_v49  ;;  %1906 = vmatpush1.bf16.xpose.msra.mxu1 %v1828_v49  ;;  %v3294_v52 = vpop.eup %3293 }
 0x4ea   : > { %3305 = vpow2.f32 %v1734_v44  ;;  %v1568_v33 = vpop.xlane.xlu0 %1567 }
 0x4eb   : > { %v3296_v37 = vpop.eup %3295  ;;  %3307 = vpow2.f32 %v1730_v0  ;;  %v1652_v26 = vsub.f32 %v3958_v5, %v1568_v33  ;;  %v1653_v56 = vsub.f32 %v3960_v32, %v1568_v33 }
 0x4ec   : > { %v3298_v30 = vpop.eup %3297  ;;  %v1571_v53 = vpop.xlane.xlu1 %1570  ;;  %v1830_v25 = vpack.c.bf16 %v3296_v37, %v3294_v52 }
 0x4ed   : > { %v3300_v45 = vpop.eup %3299  ;;  %v1736_v23 = vmul.f32 1.442695, %v1652_v26  ;;  %v1654_v13 = vsub.f32 %v3962_v36, %v1571_v53  ;;  %v1655_v1 = vsub.f32 %v3966_v57, %v1571_v53  ;;  %v1738_v3 = vmul.f32 1.442695, %v1653_v56 }
 0x4ee   : > { %v1831_v46 = vpack.c.bf16 %v3298_v30, %v3300_v45 }
 0x4ef   : > { %v1740_v27 = vmul.f32 1.442695, %v1654_v13  ;;  %v1742_v28 = vmul.f32 1.442695, %v1655_v1  ;;  %3309 = vpow2.f32 %v1736_v23 }
 0x4f0   : > { %1866 = vmatprep.subr.bf16.mxu0 %v1831_v46  ;;  %1907 = vmatprep.subr.bf16.mxu1 %v1831_v46 }
 0x4f1   : > { %3311 = vpow2.f32 %v1740_v27  ;;  %1867 = vmatpush1.bf16.xpose.msra.mxu0 %v1830_v25  ;;  %1908 = vmatpush1.bf16.xpose.msra.mxu1 %v1830_v25  ;;  %v3302_v5 = vpop.eup %3301 }
 0x4f2   : > { %3313 = vpow2.f32 %v1742_v28  ;;  %v1574_v32 = vpop.xlane.xlu0 %1573 }
 0x4f3   : > { %v3304_v59 = vpop.eup %3303  ;;  %3315 = vpow2.f32 %v1738_v3  ;;  %v1656_v15 = vsub.f32 %v3970_v50, %v1574_v32  ;;  %v1657_v36 = vsub.f32 %v3972_v58, %v1574_v32 }
 0x4f4   : > { %v3306_v57 = vpop.eup %3305  ;;  %v1577_v2 = vpop.xlane.xlu1 %1576  ;;  %v1832_v20 = vpack.c.bf16 %v3304_v59, %v3302_v5 }
 0x4f5   : > { %v3308_v16 = vpop.eup %3307  ;;  %v1744_v63 = vmul.f32 1.442695, %v1656_v15  ;;  %v1658_v9 = vsub.f32 %v3974_v61, %v1577_v2  ;;  %v1659_v49 = vsub.f32 %v3978_v17, %v1577_v2  ;;  %v1746_v38 = vmul.f32 1.442695, %v1657_v36 }
 0x4f6   : > { %v1833_v48 = vpack.c.bf16 %v3306_v57, %v3308_v16 }
 0x4f7   : > { %v1748_v42 = vmul.f32 1.442695, %v1658_v9  ;;  %v1750_v55 = vmul.f32 1.442695, %v1659_v49  ;;  %3317 = vpow2.f32 %v1744_v63 }
 0x4f8   : > { %1868 = vmatprep.subr.bf16.mxu0 %v1833_v48  ;;  %1909 = vmatprep.subr.bf16.mxu1 %v1833_v48 }
 0x4f9   : > { %3319 = vpow2.f32 %v1748_v42  ;;  %1869 = vmatpush1.bf16.xpose.msra.mxu0 %v1832_v20  ;;  %1910 = vmatpush1.bf16.xpose.msra.mxu1 %v1832_v20  ;;  %v3310_v50 = vpop.eup %3309 }
 0x4fa   : > { %3321 = vpow2.f32 %v1750_v55  ;;  %v1580_v58 = vpop.xlane.xlu0 %1579 }
 0x4fb   : > { %v3312_v54 = vpop.eup %3311  ;;  %3323 = vpow2.f32 %v1746_v38  ;;  %v1660_v0 = vsub.f32 %v3982_v4, %v1580_v58  ;;  %v1661_v61 = vsub.f32 %v3984_v10, %v1580_v58 }
 0x4fc   : > { %v3314_v17 = vpop.eup %3313  ;;  %v1583_v51 = vpop.xlane.xlu1 %1582  ;;  %v1834_v44 = vpack.c.bf16 %v3312_v54, %v3310_v50 }
 0x4fd   : > { %v3316_v52 = vpop.eup %3315  ;;  %v1752_v33 = vmul.f32 1.442695, %v1660_v0  ;;  %v1662_v37 = vsub.f32 %v3986_v8, %v1583_v51  ;;  %v1663_v26 = vsub.f32 %v3990_v60, %v1583_v51  ;;  %v1754_v30 = vmul.f32 1.442695, %v1661_v61 }
 0x4fe   : > { %v1835_v56 = vpack.c.bf16 %v3314_v17, %v3316_v52 }
 0x4ff   : > { %v1756_v53 = vmul.f32 1.442695, %v1662_v37  ;;  %v1758_v25 = vmul.f32 1.442695, %v1663_v26  ;;  %3325 = vpow2.f32 %v1752_v33 }
 0x500   : > { %1870 = vmatprep.subr.bf16.mxu0 %v1835_v56  ;;  %1911 = vmatprep.subr.bf16.mxu1 %v1835_v56 }
 0x501   : > { %3327 = vpow2.f32 %v1756_v53  ;;  %1871 = vmatpush1.bf16.xpose.msra.mxu0 %v1834_v44  ;;  %1912 = vmatpush1.bf16.xpose.msra.mxu1 %v1834_v44  ;;  %v3318_v4 = vpop.eup %3317 }
 0x502   : > { %3329 = vpow2.f32 %v1758_v25  ;;  %v1586_v10 = vpop.xlane.xlu0 %1585 }
 0x503   : > { %v3320_v45 = vpop.eup %3319  ;;  %3331 = vpow2.f32 %v1754_v30  ;;  %v1664_v23 = vsub.f32 %v3994_v39, %v1586_v10  ;;  %v1665_v8 = vsub.f32 %v3996_v40, %v1586_v10 }
 0x504   : > { %v3322_v60 = vpop.eup %3321  ;;  %v1589_v13 = vpop.xlane.xlu1 %1588  ;;  %v1836_v1 = vpack.c.bf16 %v3320_v45, %v3318_v4 }
 0x505   : > { %v3324_v46 = vpop.eup %3323  ;;  %v1760_v3 = vmul.f32 1.442695, %v1664_v23  ;;  %v1666_v27 = vsub.f32 %v3998_v21, %v1589_v13  ;;  %v1667_v28 = vsub.f32 %v4002_v41, %v1589_v13  ;;  %v1762_v32 = vmul.f32 1.442695, %v1665_v8 }
 0x506   : > { %v1837_v5 = vpack.c.bf16 %v3322_v60, %v3324_v46 }
 0x507   : > { %v1764_v59 = vmul.f32 1.442695, %v1666_v27  ;;  %v1766_v15 = vmul.f32 1.442695, %v1667_v28  ;;  %3333 = vpow2.f32 %v1760_v3 }
 0x508   : > { %1872 = vmatprep.subr.bf16.mxu0 %v1837_v5  ;;  %1913 = vmatprep.subr.bf16.mxu1 %v1837_v5 }
 0x509   : > { %3335 = vpow2.f32 %v1764_v59  ;;  %1873 = vmatpush1.bf16.xpose.msra.mxu0 %v1836_v1  ;;  %1914 = vmatpush1.bf16.xpose.msra.mxu1 %v1836_v1  ;;  %v3326_v39 = vpop.eup %3325 }
 0x50a   : > { %3337 = vpow2.f32 %v1766_v15  ;;  %v1592_v40 = vpop.xlane.xlu0 %1591  ;;  %v4515_v15 = vld [vmem:[#allocation8_spill] sm:$0xff] }
 0x50b   : > { %v3328_v36 = vpop.eup %3327  ;;  %3339 = vpow2.f32 %v1762_v32  ;;  %v1668_v57 = vsub.f32 %v4006_v22, %v1592_v40  ;;  %v1669_v21 = vsub.f32 %v4008_v29, %v1592_v40  ;;  %v4516_v40 = vld [vmem:[#allocation9_spill] sm:$0xff] }
 0x50c   : > { %v3330_v41 = vpop.eup %3329  ;;  %v1595_v2 = vpop.xlane.xlu1 %1594  ;;  %v1838_v20 = vpack.c.bf16 %v3328_v36, %v3326_v39 }
 0x50d   : > { %v3332_v16 = vpop.eup %3331  ;;  %v1768_v63 = vmul.f32 1.442695, %v1668_v57  ;;  %v1670_v9 = vsub.f32 %v4010_v34, %v1595_v2  ;;  %v1671_v49 = vsub.f32 %v4014_v62, %v1595_v2  ;;  %v1770_v38 = vmul.f32 1.442695, %v1669_v21 }
 0x50e   : > { %v1839_v48 = vpack.c.bf16 %v3330_v41, %v3332_v16 }
 0x50f   : > { %v1772_v42 = vmul.f32 1.442695, %v1670_v9  ;;  %v1774_v55 = vmul.f32 1.442695, %v1671_v49  ;;  %3341 = vpow2.f32 %v1768_v63  ;;  %v4517_v63 = vld [vmem:[#allocation10_spill] sm:$0xff]  ;;  %v4518_v49 = vld [vmem:[#allocation11_spill] sm:$0xff] }
 0x510   : > { %1874 = vmatprep.subr.bf16.mxu0 %v1839_v48  ;;  %1915 = vmatprep.subr.bf16.mxu1 %v1839_v48 }
 0x511   : > { %3343 = vpow2.f32 %v1772_v42  ;;  %1875 = vmatpush1.bf16.xpose.msra.mxu0 %v1838_v20  ;;  %1916 = vmatpush1.bf16.xpose.msra.mxu1 %v1838_v20  ;;  %v3334_v22 = vpop.eup %3333 }
 0x512   : > { %3345 = vpow2.f32 %v1774_v55  ;;  %v1598_v29 = vpop.xlane.xlu0 %1597 }
 0x513   : > { %v3336_v50 = vpop.eup %3335  ;;  %3347 = vpow2.f32 %v1770_v38  ;;  %v1672_v58 = vsub.f32 %v4018_v47, %v1598_v29  ;;  %v1673_v34 = vsub.f32 %v4020_v11, %v1598_v29 }
 0x514   : > { %v3338_v62 = vpop.eup %3337  ;;  %v1601_v54 = vpop.xlane.xlu1 %1600  ;;  %v1840_v0 = vpack.c.bf16 %v3336_v50, %v3334_v22  ;;  %v4519_v50 = vld [vmem:[#allocation12_spill] sm:$0xff] }
 0x515   : > { %v3340_v61 = vpop.eup %3339  ;;  %v1776_v17 = vmul.f32 1.442695, %v1672_v58  ;;  %v1674_v51 = vsub.f32 %v4022_v12, %v1601_v54  ;;  %v1675_v44 = vsub.f32 %v4026_v14, %v1601_v54  ;;  %v1778_v33 = vmul.f32 1.442695, %v1673_v34  ;;  %v4520_v34 = vld [vmem:[#allocation13_spill] sm:$0xff] }
 0x516   : > { %v1841_v52 = vpack.c.bf16 %v3338_v62, %v3340_v61 }
 0x517   : > { %v1780_v37 = vmul.f32 1.442695, %v1674_v51  ;;  %v1782_v26 = vmul.f32 1.442695, %v1675_v44  ;;  %3349 = vpow2.f32 %v1776_v17 }
 0x518   : > { %1876 = vmatprep.subr.bf16.mxu0 %v1841_v52  ;;  %1917 = vmatprep.subr.bf16.mxu1 %v1841_v52 }
 0x519   : > { %3351 = vpow2.f32 %v1780_v37  ;;  %1877 = vmatpush1.bf16.xpose.msra.mxu0 %v1840_v0  ;;  %1918 = vmatpush1.bf16.xpose.msra.mxu1 %v1840_v0  ;;  %v3342_v47 = vpop.eup %3341 }
 0x51a   : > { %3353 = vpow2.f32 %v1782_v26  ;;  %v1604_v11 = vpop.xlane.xlu0 %1603  ;;  %v4522_v26 = vld [vmem:[#allocation15_spill] sm:$0xff] }
 0x51b   : > { %v3344_v56 = vpop.eup %3343  ;;  %3355 = vpow2.f32 %v1778_v33  ;;  %v1676_v30 = vsub.f32 %v4030_v31, %v1604_v11  ;;  %v1677_v12 = vsub.f32 %v4032_v6, %v1604_v11  ;;  %v4521_v33 = vld [vmem:[#allocation14_spill] sm:$0xff] }
 0x51c   : > { %v3346_v14 = vpop.eup %3345  ;;  %v1607_v53 = vpop.xlane.xlu1 %1606  ;;  %v1842_v25 = vpack.c.bf16 %v3344_v56, %v3342_v47 }
 0x51d   : > { %v3348_v4 = vpop.eup %3347  ;;  %v1784_v10 = vmul.f32 1.442695, %v1676_v30  ;;  %v1678_v45 = vsub.f32 %v4034_v35, %v1607_v53  ;;  %v1679_v23 = vsub.f32 %v4038_v18, %v1607_v53  ;;  %v1786_v60 = vmul.f32 1.442695, %v1677_v12  ;;  %v4514_v35 = vld [vmem:[#allocation7_spill] sm:$0xff] }
 0x51e   : > { %v1843_v8 = vpack.c.bf16 %v3346_v14, %v3348_v4 }
 0x51f   : > { %v1788_v13 = vmul.f32 1.442695, %v1678_v45  ;;  %v1790_v1 = vmul.f32 1.442695, %v1679_v23  ;;  %3357 = vpow2.f32 %v1784_v10  ;;  %v4524_v10 = vld [vmem:[#allocation17_spill] sm:$0xff] }
 0x520   : > { %1878 = vmatprep.subr.bf16.mxu0 %v1843_v8  ;;  %1919 = vmatprep.subr.bf16.mxu1 %v1843_v8 }
 0x521   : > { %3359 = vpow2.f32 %v1788_v13  ;;  %1879 = vmatpush1.bf16.xpose.msra.mxu0 %v1842_v25  ;;  %1920 = vmatpush1.bf16.xpose.msra.mxu1 %v1842_v25  ;;  %v3350_v31 = vpop.eup %3349  ;;  %v4523_v25 = vld [vmem:[#allocation16_spill] sm:$0xff] }
 0x522   : > { %3361 = vpow2.f32 %v1790_v1  ;;  %v1610_v6 = vpop.xlane.xlu0 %1609 }
 0x523   : > { %v3352_v46 = vpop.eup %3351  ;;  %3363 = vpow2.f32 %v1786_v60  ;;  %v1680_v3 = vsub.f32 %v4042_v19, %v1610_v6  ;;  %v1681_v27 = vsub.f32 %v4514_v35, %v1610_v6  ;;  %v4525_v6 = vld [vmem:[#allocation18_spill] sm:$0xff] }
 0x524   : > { %v3354_v18 = vpop.eup %3353  ;;  %v1613_v28 = vpop.xlane.xlu1 %1612  ;;  %v1844_v5 = vpack.c.bf16 %v3352_v46, %v3350_v31 }
 0x525   : > { %v3356_v32 = vpop.eup %3355  ;;  %v1792_v59 = vmul.f32 1.442695, %v1680_v3  ;;  %v1682_v39 = vsub.f32 %v4515_v15, %v1613_v28  ;;  %v1683_v36 = vsub.f32 %v4516_v40, %v1613_v28  ;;  %v1794_v21 = vmul.f32 1.442695, %v1681_v27  ;;  %v4526_v3 = vld [vmem:[#allocation3_spill] sm:$0xff] }
 0x526   : > { %v1845_v57 = vpack.c.bf16 %v3354_v18, %v3356_v32 }
 0x527   : > { %v1796_v41 = vmul.f32 1.442695, %v1682_v39  ;;  %v1798_v2 = vmul.f32 1.442695, %v1683_v36  ;;  %3365 = vpow2.f32 %v1792_v59  ;;  %v4527_v39 = vld [vmem:[#allocation19_spill] sm:$0xff] }
 0x528   : > { %1880 = vmatprep.subr.bf16.mxu0 %v1845_v57  ;;  %1921 = vmatprep.subr.bf16.mxu1 %v1845_v57 }
 0x529   : > { %3367 = vpow2.f32 %v1796_v41  ;;  %1881 = vmatpush1.bf16.xpose.msra.mxu0 %v1844_v5  ;;  %1922 = vmatpush1.bf16.xpose.msra.mxu1 %v1844_v5  ;;  %v3358_v19 = vpop.eup %3357 }
 0x52a   : > { %3369 = vpow2.f32 %v1798_v2  ;;  %v1616_v20 = vpop.xlane.xlu0 %1615 }
 0x52b   : > { %v3360_v16 = vpop.eup %3359  ;;  %3371 = vpow2.f32 %v1794_v21  ;;  %v1684_v9 = vsub.f32 %v4517_v63, %v1616_v20  ;;  %v1685_v48 = vsub.f32 %v4518_v49, %v1616_v20 }
 0x52c   : > { %v3362_v38 = vpop.eup %3361  ;;  %v1619_v42 = vpop.xlane.xlu1 %1618  ;;  %v1846_v55 = vpack.c.bf16 %v3360_v16, %v3358_v19 }
 0x52d   : > { %v3364_v22 = vpop.eup %3363  ;;  %v1800_v29 = vmul.f32 1.442695, %v1684_v9  ;;  %v1686_v58 = vsub.f32 %v4519_v50, %v1619_v42  ;;  %v1687_v62 = vsub.f32 %v4520_v34, %v1619_v42  ;;  %v1802_v0 = vmul.f32 1.442695, %v1685_v48 }
 0x52e   : > { %v1847_v54 = vpack.c.bf16 %v3362_v38, %v3364_v22  ;;  %v4530_v50 = vmov 0   ;;  %v3441_v34 = vmov 5  }
 0x52f   : > { %v1804_v61 = vmul.f32 1.442695, %v1686_v58  ;;  %v1806_v17 = vmul.f32 1.442695, %v1687_v62  ;;  %3373 = vpow2.f32 %v1800_v29  ;;  %v4529_v29 = vmov 1065369472   ;;  %3111 = vset.pattern.permute.xlu0 %v3441_v34 }
 0x530   : > { %1882 = vmatprep.subr.bf16.mxu0 %v1847_v54  ;;  %1923 = vmatprep.subr.bf16.mxu1 %v1847_v54  ;;  %v3440_v58 = vmov 2   ;;  %v4168_v62 = vld [vmem:[%s4420_s6] sm:$0xff]  ;;  %v3442_v54 = vmov 4   ;;  %v3443_v34 = vmov 1  }
 0x531   : > { %3375 = vpow2.f32 %v1804_v61  ;;  %1883 = vmatpush1.bf16.xpose.msra.mxu0 %v1846_v55  ;;  %1924 = vmatpush1.bf16.xpose.msra.mxu1 %v1846_v55  ;;  %v3366_v51 = vpop.eup %3365  ;;  %v4528_v55 = vld [vmem:[#allocation2_spill] sm:$0xff] }
 0x532   : > { %3377 = vpow2.f32 %v1806_v17  ;;  %v1622_v44 = vpop.xlane.xlu0 %1621  ;;  %v1856_v22 = vrot.slane %v4528_v55, 3  ;;  %3109 = vset.pattern.permute.xlu1 %v3440_v58  ;;  %2144 = vperm.xlu0 %3111, %v4168_v62  }
 0x533   : > { %v3368_v52 = vpop.eup %3367  ;;  %3379 = vpow2.f32 %v1802_v0  ;;  %v1688_v37 = vsub.f32 %v4521_v33, %v1622_v44  ;;  %v1689_v47 = vsub.f32 %v4522_v26, %v1622_v44  ;;  %2067 = vperm.xlu1 %3109, %v4168_v62  }
 0x534   : > { %v3370_v11 = vpop.eup %3369  ;;  %v1625_v56 = vpop.xlane.xlu1 %1624  ;;  %v1848_v30 = vpack.c.bf16 %v3368_v52, %v3366_v51 }
 0x535   : > { %v3372_v12 = vpop.eup %3371  ;;  %v1808_v14 = vmul.f32 1.442695, %v1688_v37  ;;  %v1810_v53 = vmul.f32 1.442695, %v1689_v47  ;;  %v1690_v4 = vsub.f32 %v4523_v25, %v1625_v56  ;;  %v1691_v45 = vsub.f32 %v4524_v10, %v1625_v56  ;;  %v4532_v10 = vld [vmem:[#allocation6_spill] sm:$0xff] }
 0x536   : > { %v1849_v23 = vpack.c.bf16 %v3370_v11, %v3372_v12  ;;  %v4531_v11 = vld [vmem:[#allocation4_spill] sm:$0xff]  ;;  %3113 = vset.pattern.permute.xlu0 %v3443_v34 }
 0x537   : > { %3381 = vpow2.f32 %v1808_v14  ;;  %v1812_v8 = vmul.f32 1.442695, %v1690_v4  ;;  %v1814_v60 = vmul.f32 1.442695, %v1691_v45  ;;  %3110 = vset.pattern.permute.xlu1 %v3442_v54  ;;  %v1248_v45 = vpack.c.bf16 %v4532_v10, %v4532_v10  ;;  %v384_v10 = vld [vmem:[%s4420_s6 + $0x30] sm:$0xff] }
 0x538   : > { %3383 = vpow2.f32 %v1810_v53  ;;  %1884 = vmatprep.subr.bf16.mxu0 %v1849_v23  ;;  %1925 = vmatprep.subr.bf16.mxu1 %v1849_v23  ;;  %v4533_v23 = vld [vmem:[#allocation5_spill] sm:$0xff] }
 0x539   : > { %3385 = vpow2.f32 %v1812_v8  ;;  %1885 = vmatpush1.bf16.xpose.msra.mxu0 %v1848_v30  ;;  %1926 = vmatpush1.bf16.xpose.msra.mxu1 %v1848_v30  ;;  %v3374_v13 = vpop.eup %3373  ;;  %v1247_v8 = vpack.c.bf16 %v4533_v23, %v4533_v23 }
 0x53a   : > { %3387 = vpow2.f32 %v1814_v60  ;;  %v1628_v1 = vpop.xlane.xlu0 %1627  ;;  %2132 = vperm.xlu1 %3110, %v4168_v62  }
 0x53b   : > { %v3376_v31 = vpop.eup %3375  ;;  %v1692_v46 = vsub.f32 %v4525_v6, %v1628_v1  ;;  %v1693_v35 = vsub.f32 %v4526_v3, %v1628_v1 }
 0x53c   : > { %v3378_v27 = vpop.eup %3377  ;;  %v1631_v18 = vpop.xlane.xlu1 %1630  ;;  %v1850_v28 = vpack.c.bf16 %v3376_v31, %v3374_v13  ;;  %v2020_v13 = vsel %vm627_vm3, %v1247_v8, 0 }
 0x53d   : > { %v3380_v5 = vpop.eup %3379  ;;  %v1816_v32 = vmul.f32 1.442695, %v1692_v46  ;;  %v1818_v59 = vmul.f32 1.442695, %v1693_v35  ;;  %v1694_v15 = vsub.f32 %v4082_v24, %v1631_v18  ;;  %v1695_v40 = vsub.f32 %v4527_v39, %v1631_v18 }
 0x53e   : > { %v1851_v36 = vpack.c.bf16 %v3378_v27, %v3380_v5  ;;  %3112 = vset.pattern.permute.xlu1 %v3443_v34  ;;  %v402_v34 = vld [vmem:[%s4420_s6 + $0xc0] sm:$0xff] }
 0x53f   : > { %3389 = vpow2.f32 %v1816_v32  ;;  %v1820_v57 = vmul.f32 1.442695, %v1694_v15  ;;  %v1822_v21 = vmul.f32 1.442695, %v1695_v40  ;;  %v3410_v40 = vld [vmem:[%s3524_s15] sm:$0xff]  ;;  %2161 = vperm.xlu1 %3112, %v4168_v62  }
 0x540   : > { %3391 = vpow2.f32 %v1818_v59  ;;  %1886 = vmatprep.subr.bf16.mxu0 %v1851_v36  ;;  %1927 = vmatprep.subr.bf16.mxu1 %v1851_v36 }
 0x541   : > { %v3382_v41 = vpop.eup %3381  ;;  %3393 = vpow2.f32 %v1820_v57  ;;  %1887 = vmatpush1.bf16.xpose.msra.mxu0 %v1850_v28  ;;  %1928 = vmatpush1.bf16.xpose.msra.mxu1 %v1850_v28 }
 0x542   : > { %v3384_v2 = vpop.eup %3383  ;;  %3395 = vpow2.f32 %v1822_v21 }
 0x543   : > { %v3386_v19 = vpop.eup %3385 }
 0x544   : > { %v3388_v20 = vpop.eup %3387  ;;  %v1852_v16 = vpack.c.bf16 %v3386_v19, %v3382_v41 }
 0x545   : > { %v1853_v63 = vpack.c.bf16 %v3388_v20, %v3384_v2 }
 0x547   : > { %1888 = vmatprep.subr.bf16.mxu0 %v1853_v63  ;;  %1929 = vmatprep.subr.bf16.mxu1 %v1853_v63 }
 0x549   : > { %v3390_v24 = vpop.eup %3389  ;;  %1889 = vmatpush1.bf16.xpose.msra.mxu0 %v1852_v16  ;;  %1930 = vmatpush1.bf16.xpose.msra.mxu1 %v1852_v16 }
 0x54a   : > { %v3392_v9 = vpop.eup %3391 }
 0x54b   : > { %v3394_v49 = vpop.eup %3393 }
 0x54c   : > { %v3396_v48 = vpop.eup %3395  ;;  %v1854_v38 = vpack.c.bf16 %v3394_v49, %v3390_v24 }
 0x54d   : > { %v1855_v42 = vpack.c.bf16 %v3396_v48, %v3392_v9 }
 0x54f   : > { %1890 = vmatprep.subr.bf16.mxu0 %v1855_v42  ;;  %1931 = vmatprep.subr.bf16.mxu1 %v1855_v42 }
 0x551   : > { %1891 = vmatpush1.bf16.xpose.msra.mxu0 %v1854_v38  ;;  %1932 = vmatpush1.bf16.xpose.msra.mxu1 %v1854_v38 }
 0x554   : > { %v1965_v60 = vpop.permute.xlu0 %1964 }
 0x558   : > { %1893 = vmatmul.mubr.bf16.vlgmr.msra.gmra.mrb[4].mxu0 %v1856_v22  ;;  %1934 = vmatmul.mubr.bf16.vlgmr.msra.gmra.mrb[140].mxu1 %v4529_v29 }
 0x559   : > { %2007 = vmatprep.mubr.bf16.mxu1 %v4530_v50  ;;  %2484 = vmatprep.mubr.bf16.mxu0 %v4530_v50 }
 0x5b2   : > { %v2068_v35 = vpop.permute.xlu1 %2067 }
 0x62b   : > { %v1894_v0 = vpop.f32.mrb[4].mxu0  ;;  %v1935_v61 = vpop.f32.mrb[140].mxu1 }
 0x62c   : > { %3397 = vrcp.f32 %v1935_v61  ;;  %v1896_v17 = vpop.f32.mrb[5].mxu0  ;;  %v1937_v51 = vpop.f32.mrb[141].mxu1 }
 0x62d   : > { %3399 = vrcp.f32 %v1937_v51  ;;  %v1898_v44 = vpop.f32.mrb[6].mxu0  ;;  %v1939_v52 = vpop.f32.mrb[142].mxu1  ;;  %v3411_v51 = vld [vmem:[%s4420_s6 + $0x8] sm:$0xff] }
 0x62e   : > { %v1899_v33 = vpop.f32.mrb[7].mxu0  ;;  %v1940_v37 = vpop.f32.mrb[143].mxu1  ;;  %2165 = vperm.xlu1 %3112, %v3411_v51   ;;  %v406_v51 = vld [vmem:[%s4420_s6 + $0xe0] sm:$0xff] }
 0x62f   : > { %v381_v37 = vld [vmem:[%s4420_s6 + $0x18] sm:$0xff] }
 0x632   : > { %2175 = vperm.xlu1 %3112, %v381_v37   ;;  %v407_v37 = vld [vmem:[%s4420_s6 + $0xe8] sm:$0xff] }
 0x636   : > { %v3398_v26 = vpop.eup %3397 }
 0x637   : > { %v3400_v47 = vpop.eup %3399  ;;  %v1947_v56 = vrot.slane %v3398_v26, %v4531_v11 }
 0x638   : > { %v1951_v30 = vrot.slane %v3400_v47, %v4531_v11 }
 0x639   : > { %v1952_v12 = vmul.f32 %v1947_v56, %v1894_v0 }
 0x63a   : > { %v1953_v14 = vmul.f32 %v1951_v30, %v1896_v17  ;;  %v380_v30 = vld [vmem:[%s4420_s6 + $0x10] sm:$0xff] }
 0x63b   : > { %v1954_v53 = vpack.c.bf16 %v1952_v12, %v1952_v12  ;;  %v382_v12 = vld [vmem:[%s4420_s6 + $0x20] sm:$0xff]  ;;  %2170 = vperm.xlu0 %3113, %v380_v30   ;;  %v3127_v30 = vld [vmem:[%s4418_s4 + $0x30] sm:$0xff]  }
 0x63c   : > { %v1955_v25 = vpack.c.bf16 %v1953_v14, %v1953_v14  ;;  %2180 = vperm.xlu1 %3112, %v382_v12   ;;  %v3128_v12 = vld [vmem:[%s4418_s4 + $0x38] sm:$0xff]  }
 0x63d   : > { %v1970_v4 = vsel %vm627_vm3, %v1954_v53, 0 }
 0x63e   : > { %3029 = vmatprep.subr.msk.bf16.mxu1 %vm627_vm3, %v1955_v25 }
 0x63f   : > { %1976 = vmatpush1.bf16.msra.mxu1 %v1970_v4 }
 0x640   : > { %3031 = vmatprep.subr.msk.bf16.mxu1 %vm627_vm3, %v1248_v45  ;;  %2190 = vperm.xlu1 %3112, %v384_v10   ;;  %v3133_v10 = vld [vmem:[%s4418_s4 + $0x60] sm:$0xff]  }
 0x642   : > { %3030 = vmatmul.mubr.msk.bf16.vlgmr.msra.gmra.mrb[144].mxu1 %vm578_vm4, %v1965_v60 }
 0x643   : > { %2026 = vmatpush1.bf16.msra.mxu1 %v2020_v13  ;;  %2057 = vmatprep.mubr.bf16.mxu1 %v4530_v50  ;;  %v383_v13 = vld [vmem:[%s4420_s6 + $0x28] sm:$0xff] }
 0x644   : > { %2185 = vperm.xlu0 %3113, %v383_v13  }
 0x64a   : > { %3032 = vmatmul.mubr.msk.bf16.vlgmr.msra.gmra.mrb[148].mxu1 %vm578_vm4, %v4109_v7 }
 0x715   : > { %v2009_v1 = vpop.f32.mrb[144].mxu1 }
 0x716   : > { %v2011_v31 = vpop.f32.mrb[145].mxu1 }
 0x717   : > { %v2013_v6 = vpop.f32.mrb[146].mxu1 }
 0x718   : > { %v2014_v46 = vpop.f32.mrb[147].mxu1  ;;  %v3444_v6 = vmov 839922192  }
 0x719   : > { %v2135_v46 = vunpack.c.l.s4 %v3444_v6 }
 0x71d   : > { %v2059_v3 = vpop.f32.mrb[148].mxu1 }
 0x71e   : > { %v2060_v27 = vadd.f32 %v2059_v3, %v2009_v1  ;;  %v2061_v18 = vpop.f32.mrb[149].mxu1  ;;  %v386_v1 = vld [vmem:[%s4420_s6 + $0x40] sm:$0xff]  ;;  %v385_v3 = vld [vmem:[%s4420_s6 + $0x38] sm:$0xff] }
 0x71f   : > { %v2062_v28 = vadd.f32 %v2061_v18, %v2011_v31  ;;  %v2063_v5 = vpop.f32.mrb[150].mxu1  ;;  %2200 = vperm.xlu1 %3112, %v386_v1   ;;  %2195 = vperm.xlu0 %3113, %v385_v3   ;;  %v387_v18 = vld [vmem:[%s4420_s6 + $0x48] sm:$0xff] }
 0x720   : > { %v2070_v32 = vadd.f32 %v2068_v35, %v2060_v27  ;;  %v2064_v59 = vpop.f32.mrb[151].mxu1  ;;  %v2136_v27 = vunpack.c.0.s8 %v2135_v46 }
 0x721   : > { %v2071_v15 = vadd.f32 %v2068_v35, %v2062_v28  ;;  %v388_v35 = vld [vmem:[%s4420_s6 + $0x50] sm:$0xff]  ;;  %v390_v28 = vld [vmem:[%s4420_s6 + $0x60] sm:$0xff] }
 0x722   : > { %v4231_v5 = vsub.s32 %v2136_v27, %v3887_v43  ;;  %v391_v43 = vld [vmem:[%s4420_s6 + $0x68] sm:$0xff] }
 0x723   : > { %v2074_v39 = vcombine.low %v2070_v32, %v2071_v15  ;;  %2210 = vperm.xlu1 %3112, %v388_v35   ;;  %2205 = vperm.xlu0 %3113, %v387_v18   ;;  %v2133_v32 = vpop.permute.xlu1 %2132  ;;  %v389_v15 = vld [vmem:[%s4420_s6 + $0x58] sm:$0xff]  ;;  %v4386_v35 = vld.sshfl [vmem:[%s4419_s5] sm:$0x33 pattern:$0x76325410] }
 0x724   : > { %v2753_v18 = vcombine.high %v4386_v35, %v4386_v35 }
 0x725   : > { %v2076_v36 = vadd.f32 %v3410_v40, %v2074_v39  ;;  %v392_v39 = vld [vmem:[%s4420_s6 + $0x70] sm:$0xff] }
 0x726   : > { %2788 = vmatprep.mubr.bf16.mxu1 %v2753_v18 }
 0x727   : > { %v2078_v57 = vcombine.high %v2076_v36, %v2076_v36  ;;  %v2080_v21 = vsel %vm487_vm2, %v2076_v36, 0.0  ;;  %2220 = vperm.xlu1 %3112, %v390_v28   ;;  %2215 = vperm.xlu0 %3113, %v389_v15  }
 0x728   : > { %v2081_v7 = vrot.slane %v2080_v21, 4 }
 0x729   : > { %v2087_v41 = vsel %vm487_vm2, %v2078_v57, 0.0 }
 0x72a   : > { %v2082_v2 = vadd.f32 %v2081_v7, %v2080_v21  ;;  %v2088_v19 = vrot.slane %v2087_v41, 4  ;;  %v2140_v21 = vrot.slane %v2133_v32, %v4231_v5  ;;  %v394_v7 = vld [vmem:[%s4420_s6 + $0x80] sm:$0xff] }
 0x72b   : > { %2230 = vperm.xlu1 %3112, %v392_v39   ;;  %2225 = vperm.xlu0 %3113, %v391_v43  }
 0x72c   : > { %v2083_v20 = vrot.slane %v2082_v2, 2  ;;  %v2089_v16 = vadd.f32 %v2088_v19, %v2087_v41 }
 0x72e   : > { %v2084_v63 = vadd.f32 %v2083_v20, %v2082_v2  ;;  %v2090_v24 = vrot.slane %v2089_v16, 2 }
 0x72f   : > { %2240 = vperm.xlu1 %3112, %v394_v7  }
 0x730   : > { %v2085_v9 = vrot.slane %v2084_v63, 1  ;;  %v2091_v49 = vadd.f32 %v2090_v24, %v2089_v16  ;;  %v393_v16 = vld [vmem:[%s4420_s6 + $0x78] sm:$0xff] }
 0x731   : > { %2235 = vperm.xlu0 %3113, %v393_v16  }
 0x732   : > { %v2086_v48 = vadd.f32 %v2085_v9, %v2084_v63  ;;  %v2092_v38 = vrot.slane %v2091_v49, 1  ;;  %v396_v63 = vld [vmem:[%s4420_s6 + $0x90] sm:$0xff] }
 0x733   : > { %2250 = vperm.xlu1 %3112, %v396_v63  }
 0x734   : > { %v2093_v42 = vadd.f32 %v2092_v38, %v2091_v49  ;;  %v2095_v55 = vmul.f32 0.25, %v2086_v48  ;;  %v395_v49 = vld [vmem:[%s4420_s6 + $0x88] sm:$0xff]  ;;  %v398_v48 = vld [vmem:[%s4420_s6 + $0xa0] sm:$0xff] }
 0x735   : > { %2245 = vperm.xlu0 %3113, %v395_v49  }
 0x736   : > { %v2096_v22 = vmul.f32 0.25, %v2093_v42 }
 0x737   : > { %2260 = vperm.xlu1 %3112, %v398_v48   ;;  %v3447_v48 = vmov 7  }
 0x738   : > { %v2099_v29 = vcombine.low %v2095_v55, %v2096_v22  ;;  %v3121_v55 = vld [vmem:[%s4418_s4] sm:$0xff]   ;;  %v397_v22 = vld [vmem:[%s4420_s6 + $0x98] sm:$0xff] }
 0x739   : > { %2255 = vperm.xlu0 %3113, %v397_v22  }
 0x73a   : > { %v4190_v58 = vsub.f32 %v2076_v36, %v2099_v29  ;;  %v2145_v36 = vpop.permute.xlu0 %2144  ;;  %v400_v29 = vld [vmem:[%s4420_s6 + $0xb0] sm:$0xff] }
 0x73b   : > { %v2152_v2 = vrot.slane %v2145_v36, %v4231_v5  ;;  %2270 = vperm.xlu1 %3112, %v400_v29  }
 0x73c   : > { %v2102_v54 = vmul.f32 %v4190_v58, %v4190_v58 }
 0x73e   : > { %v2104_v0 = vcombine.high %v2102_v54, %v2102_v54  ;;  %v2106_v61 = vsel %vm487_vm2, %v2102_v54, 0.0  ;;  %v3122_v54 = vld [vmem:[%s4418_s4 + $0x8] sm:$0xff]  }
 0x73f   : > { %v2107_v17 = vrot.slane %v2106_v61, 4  ;;  %2280 = vperm.xlu1 %3112, %v402_v34  }
 0x740   : > { %v2113_v44 = vsel %vm487_vm2, %v2104_v0, 0.0  ;;  %v401_v0 = vld [vmem:[%s4420_s6 + $0xb8] sm:$0xff] }
 0x741   : > { %v2108_v52 = vadd.f32 %v2107_v17, %v2106_v61  ;;  %v2114_v33 = vrot.slane %v2113_v44, 4  ;;  %v404_v61 = vld [vmem:[%s4420_s6 + $0xd0] sm:$0xff]  ;;  %v403_v17 = vld [vmem:[%s4420_s6 + $0xc8] sm:$0xff] }
 0x743   : > { %v2109_v26 = vrot.slane %v2108_v52, 2  ;;  %v2115_v47 = vadd.f32 %v2114_v33, %v2113_v44  ;;  %2290 = vperm.xlu1 %3112, %v404_v61   ;;  %v3123_v44 = vld [vmem:[%s4418_s4 + $0x10] sm:$0xff]  }
 0x744   : > { %v408_v33 = vld [vmem:[%s4420_s6 + $0xf0] sm:$0xff] }
 0x745   : > { %v2110_v11 = vadd.f32 %v2109_v26, %v2108_v52  ;;  %v2116_v56 = vrot.slane %v2115_v47, 2  ;;  %v405_v52 = vld [vmem:[%s4420_s6 + $0xd8] sm:$0xff] }
 0x746   : > { %v3124_v26 = vld [vmem:[%s4418_s4 + $0x18] sm:$0xff]  }
 0x747   : > { %v2111_v14 = vrot.slane %v2110_v11, 1  ;;  %v2117_v53 = vadd.f32 %v2116_v56, %v2115_v47  ;;  %2300 = vperm.xlu1 %3112, %v406_v51   ;;  %v409_v47 = vld [vmem:[%s4420_s6 + $0xf8] sm:$0xff]  ;;  %v3126_v56 = vld [vmem:[%s4418_s4 + $0x28] sm:$0xff]  }
 0x749   : > { %v2112_v25 = vadd.f32 %v2111_v14, %v2110_v11  ;;  %v2118_v4 = vrot.slane %v2117_v53, 1  ;;  %v3125_v11 = vld [vmem:[%s4418_s4 + $0x20] sm:$0xff]  }
 0x74a   : > { %v3129_v14 = vld [vmem:[%s4418_s4 + $0x40] sm:$0xff]  }
 0x74b   : > { %v2119_v45 = vadd.f32 %v2118_v4, %v2117_v53  ;;  %v2120_v23 = vmul.f32 0.25, %v2112_v25  ;;  %2310 = vperm.xlu1 %3112, %v408_v33   ;;  %v3130_v53 = vld [vmem:[%s4418_s4 + $0x48] sm:$0xff]   ;;  %v3131_v25 = vld [vmem:[%s4418_s4 + $0x50] sm:$0xff]   ;;  %v3132_v4 = vld [vmem:[%s4418_s4 + $0x58] sm:$0xff]  }
 0x74d   : > { %v2121_v8 = vmul.f32 0.25, %v2119_v45  ;;  %v2122_v60 = vadd.f32 1e-05, %v2120_v23  ;;  %v3134_v45 = vld [vmem:[%s4418_s4 + $0x68] sm:$0xff]   ;;  %v3135_v23 = vld [vmem:[%s4418_s4 + $0x70] sm:$0xff]  }
 0x74f   : > { %v2123_v31 = vadd.f32 1e-05, %v2121_v8  ;;  %3401 = vrsqrt.f32 %v2122_v60  ;;  %v3136_v8 = vld [vmem:[%s4418_s4 + $0x78] sm:$0xff]   ;;  %v2162_v60 = vpop.permute.xlu1 %2161 }
 0x751   : > { %3403 = vrsqrt.f32 %v2123_v31 }
 0x753   : > { %v2166_v3 = vpop.permute.xlu1 %2165 }
 0x759   : > { %v3402_v59 = vpop.eup %3401 }
 0x75b   : > { %v3404_v40 = vpop.eup %3403 }
 0x75c   : > { %v2128_v57 = vcombine.low %v3402_v59, %v3404_v40  ;;  %v2171_v40 = vpop.permute.xlu0 %2170 }
 0x75e   : > { %v2130_v41 = vmul.f32 %v2128_v57, %v4190_v58  ;;  %v399_v58 = vld [vmem:[%s4420_s6 + $0xa8] sm:$0xff]  ;;  %v3445_v57 = vmov 3  }
 0x75f   : > { %2265 = vperm.xlu0 %3113, %v399_v58   ;;  %3114 = vset.pattern.permute.xlu1 %v3445_v57 }
 0x760   : > { %v2142_v19 = vmul.f32 %v2140_v21, %v2130_v41  ;;  %v3446_v21 = vmov 6   ;;  %2742 = vperm.xlu1 %3114, %v4168_v62  }
 0x762   : > { %v4248_v20 = vadd.f32 %v2152_v2, %v2142_v19  ;;  %v2176_v19 = vpop.permute.xlu1 %2175 }
 0x763   : > { %2275 = vperm.xlu0 %3113, %v401_v0  }
 0x764   : > { %v2156_v24 = vcombine.high %v4248_v20, %v4248_v20  ;;  %v2158_v9 = vpack.c.bf16 %v4248_v20, %v4248_v20  ;;  %3116 = vset.pattern.permute.xlu1 %v3447_v48 }
 0x765   : > { %2868 = vperm.xlu1 %3116, %v4168_v62  }
 0x766   : > { %v2159_v38 = vpack.c.bf16 %v2156_v24, %v2156_v24  ;;  %v2447_v42 = vsel %vm424_vm0, %v2158_v9, 0  ;;  %v2181_v34 = vpop.permute.xlu1 %2180 }
 0x767   : > { %2285 = vperm.xlu0 %3113, %v403_v17  }
 0x768   : > { %3049 = vmatprep.subr.msk.bf16.mxu0 %vm424_vm0, %v2159_v38 }
 0x769   : > { %2453 = vmatpush1.bf16.msra.mxu0 %v2447_v42 }
 0x76b   : > { %2295 = vperm.xlu0 %3113, %v405_v52  }
 0x76c   : > { %3050 = vmatmul.mubr.msk.bf16.vlgmr.msra.gmra.mrb[8].mxu0 %vm420_vm1, %v3121_v55 }
 0x76d   : > { %2494 = vmatprep.mubr.bf16.mxu0 %v4530_v50 }
 0x76f   : > { %2305 = vperm.xlu0 %3113, %v407_v37  }
 0x773   : > { %2315 = vperm.xlu0 %3113, %v409_v47  }
 0x774   : > { %3051 = vmatmul.mubr.msk.bf16.gmra.mrb[12].mxu0 %vm420_vm1, %v3122_v54 }
 0x775   : > { %2504 = vmatprep.mubr.bf16.mxu0 %v4530_v50 }
 0x777   : > { %3115 = vset.pattern.permute.xlu0 %v3446_v21 }
 0x778   : > { %2856 = vperm.xlu0 %3115, %v4168_v62  }
 0x77c   : > { %3052 = vmatmul.mubr.msk.bf16.gmra.mrb[16].mxu0 %vm420_vm1, %v3123_v44  ;;  %3117 = vset.pattern.permute.xlu0 %v3447_v48  ;;  %v2186_v44 = vpop.permute.xlu0 %2185 }
 0x77d   : > { %2514 = vmatprep.mubr.bf16.mxu0 %v4530_v50 }
 0x784   : > { %3053 = vmatmul.mubr.msk.bf16.gmra.mrb[20].mxu0 %vm420_vm1, %v3124_v26 }
 0x785   : > { %2524 = vmatprep.mubr.bf16.mxu0 %v4530_v50 }
 0x78c   : > { %3054 = vmatmul.mubr.msk.bf16.gmra.mrb[24].mxu0 %vm420_vm1, %v3125_v11 }
 0x78d   : > { %2534 = vmatprep.mubr.bf16.mxu0 %v4530_v50 }
 0x794   : > { %3055 = vmatmul.mubr.msk.bf16.gmra.mrb[28].mxu0 %vm420_vm1, %v3126_v56 }
 0x795   : > { %2544 = vmatprep.mubr.bf16.mxu0 %v4530_v50 }
 0x79c   : > { %3056 = vmatmul.mubr.msk.bf16.gmra.mrb[32].mxu0 %vm420_vm1, %v3127_v30  ;;  %v2191_v30 = vpop.permute.xlu1 %2190 }
 0x79d   : > { %2554 = vmatprep.mubr.bf16.mxu0 %v4530_v50 }
 0x7a4   : > { %3057 = vmatmul.mubr.msk.bf16.gmra.mrb[36].mxu0 %vm420_vm1, %v3128_v12 }
 0x7a5   : > { %2564 = vmatprep.mubr.bf16.mxu0 %v4530_v50 }
 0x7ac   : > { %3058 = vmatmul.mubr.msk.bf16.gmra.mrb[40].mxu0 %vm420_vm1, %v3129_v14 }
 0x7ad   : > { %2574 = vmatprep.mubr.bf16.mxu0 %v4530_v50 }
 0x7b4   : > { %3059 = vmatmul.mubr.msk.bf16.gmra.mrb[44].mxu0 %vm420_vm1, %v3130_v53 }
 0x7b5   : > { %2584 = vmatprep.mubr.bf16.mxu0 %v4530_v50 }
 0x7bc   : > { %3060 = vmatmul.mubr.msk.bf16.gmra.mrb[48].mxu0 %vm420_vm1, %v3131_v25 }
 0x7bd   : > { %2594 = vmatprep.mubr.bf16.mxu0 %v4530_v50 }
 0x7c4   : > { %3061 = vmatmul.mubr.msk.bf16.gmra.mrb[52].mxu0 %vm420_vm1, %v3132_v4  ;;  %v2196_v4 = vpop.permute.xlu0 %2195 }
 0x7c5   : > { %2604 = vmatprep.mubr.bf16.mxu0 %v4530_v50 }
 0x7cc   : > { %3062 = vmatmul.mubr.msk.bf16.gmra.mrb[56].mxu0 %vm420_vm1, %v3133_v10 }
 0x7cd   : > { %2614 = vmatprep.mubr.bf16.mxu0 %v4530_v50 }
 0x7d4   : > { %3063 = vmatmul.mubr.msk.bf16.gmra.mrb[60].mxu0 %vm420_vm1, %v3134_v45 }
 0x7d5   : > { %2624 = vmatprep.mubr.bf16.mxu0 %v4530_v50 }
 0x7dc   : > { %3064 = vmatmul.mubr.msk.bf16.gmra.mrb[64].mxu0 %vm420_vm1, %v3135_v23 }
 0x7dd   : > { %2634 = vmatprep.mubr.bf16.mxu0 %v4530_v50 }
 0x7e4   : > { %3065 = vmatmul.mubr.msk.bf16.gmra.mrb[68].mxu0 %vm420_vm1, %v3136_v8 }
 0x83f   : > { %v2486_v13 = vpop.f32.mrb[8].mxu0 }
 0x840   : > { %v2487_v1 = vadd.f32 %v2486_v13, %v2162_v60  ;;  %v2488_v31 = vpop.f32.mrb[9].mxu0 }
 0x841   : > { %v2489_v6 = vadd.f32 %v2488_v31, %v2162_v60  ;;  %v2490_v46 = vpop.f32.mrb[10].mxu0 }
 0x842   : > { %v2492_v27 = vpop.f32.mrb[11].mxu0  ;;  %v2491_v50 = vadd.f32 %v2490_v46, %v2166_v3  ;;  %v2645_v32 = vmax.f32 %v2487_v1, 0.0 }
 0x843   : > { %v2493_v28 = vadd.f32 %v2492_v27, %v2166_v3  ;;  %v2646_v15 = vmax.f32 %v2489_v6, 0.0  ;;  %v2201_v3 = vpop.permute.xlu1 %2200 }
 0x844   : > { %v2647_v59 = vmax.f32 %v2491_v50, 0.0 }
 0x845   : > { %v2648_v39 = vmax.f32 %v2493_v28, 0.0 }
 0x846   : > { %v2709_v36 = vpack.c.bf16 %v2647_v59, %v2645_v32  ;;  %v2206_v32 = vpop.permute.xlu0 %2205 }
 0x847   : > { %v2496_v43 = vpop.f32.mrb[12].mxu0  ;;  %v2710_v7 = vpack.c.bf16 %v2648_v39, %v2646_v15 }
 0x848   : > { %v2498_v41 = vpop.f32.mrb[13].mxu0  ;;  %v2497_v2 = vadd.f32 %v2496_v43, %v2171_v40 }
 0x849   : > { %v2500_v16 = vpop.f32.mrb[14].mxu0  ;;  %2756 = vmatprep.subr.bf16.mxu1 %v2710_v7  ;;  %v2499_v63 = vadd.f32 %v2498_v41, %v2171_v40 }
 0x84a   : > { %v2501_v24 = vadd.f32 %v2500_v16, %v2176_v19  ;;  %v2502_v9 = vpop.f32.mrb[15].mxu0  ;;  %2757 = vmatpush1.bf16.msra.mxu1 %v2709_v36  ;;  %v2649_v42 = vmax.f32 %v2497_v2, 0.0  ;;  %v2211_v2 = vpop.permute.xlu1 %2210 }
 0x84b   : > { %v2503_v49 = vadd.f32 %v2502_v9, %v2176_v19  ;;  %v2650_v55 = vmax.f32 %v2499_v63, 0.0  ;;  %v2216_v9 = vpop.permute.xlu0 %2215 }
 0x84c   : > { %v2651_v38 = vmax.f32 %v2501_v24, 0.0 }
 0x84d   : > { %v2652_v22 = vmax.f32 %v2503_v49, 0.0 }
 0x84e   : > { %v2711_v29 = vpack.c.bf16 %v2651_v38, %v2649_v42 }
 0x84f   : > { %v2712_v58 = vpack.c.bf16 %v2652_v22, %v2650_v55  ;;  %v2506_v54 = vpop.f32.mrb[16].mxu0 }
 0x850   : > { %v2507_v0 = vadd.f32 %v2506_v54, %v2181_v34  ;;  %v2508_v61 = vpop.f32.mrb[17].mxu0 }
 0x851   : > { %v2509_v17 = vadd.f32 %v2508_v61, %v2181_v34  ;;  %v2510_v51 = vpop.f32.mrb[18].mxu0  ;;  %2758 = vmatprep.subr.bf16.mxu1 %v2712_v58 }
 0x852   : > { %v2511_v52 = vadd.f32 %v2510_v51, %v2186_v44  ;;  %v2512_v33 = vpop.f32.mrb[19].mxu0  ;;  %2759 = vmatpush1.bf16.msra.mxu1 %v2711_v29  ;;  %v2653_v26 = vmax.f32 %v2507_v0, 0.0  ;;  %v2221_v0 = vpop.permute.xlu1 %2220 }
 0x853   : > { %v2513_v37 = vadd.f32 %v2512_v33, %v2186_v44  ;;  %v2654_v11 = vmax.f32 %v2509_v17, 0.0 }
 0x854   : > { %v2655_v47 = vmax.f32 %v2511_v52, 0.0  ;;  %v2226_v52 = vpop.permute.xlu0 %2225 }
 0x855   : > { %v2656_v62 = vmax.f32 %v2513_v37, 0.0 }
 0x856   : > { %v2713_v56 = vpack.c.bf16 %v2655_v47, %v2653_v26 }
 0x857   : > { %v2714_v12 = vpack.c.bf16 %v2656_v62, %v2654_v11  ;;  %v2516_v14 = vpop.f32.mrb[20].mxu0 }
 0x858   : > { %v2517_v53 = vadd.f32 %v2516_v14, %v2191_v30  ;;  %v2518_v25 = vpop.f32.mrb[21].mxu0 }
 0x859   : > { %v2519_v10 = vadd.f32 %v2518_v25, %v2191_v30  ;;  %v2520_v45 = vpop.f32.mrb[22].mxu0  ;;  %2760 = vmatprep.subr.bf16.mxu1 %v2714_v12 }
 0x85a   : > { %v2521_v23 = vadd.f32 %v2520_v45, %v2196_v4  ;;  %v2522_v8 = vpop.f32.mrb[23].mxu0  ;;  %2761 = vmatpush1.bf16.msra.mxu1 %v2713_v56  ;;  %v2657_v13 = vmax.f32 %v2517_v53, 0.0  ;;  %v2231_v53 = vpop.permute.xlu1 %2230 }
 0x85b   : > { %v2523_v60 = vadd.f32 %v2522_v8, %v2196_v4  ;;  %v2658_v31 = vmax.f32 %v2519_v10, 0.0 }
 0x85c   : > { %v2659_v1 = vmax.f32 %v2521_v23, 0.0  ;;  %v2236_v23 = vpop.permute.xlu0 %2235 }
 0x85d   : > { %v2660_v6 = vmax.f32 %v2523_v60, 0.0 }
 0x85e   : > { %v2715_v46 = vpack.c.bf16 %v2659_v1, %v2657_v13 }
 0x85f   : > { %v2716_v27 = vpack.c.bf16 %v2660_v6, %v2658_v31  ;;  %v2526_v50 = vpop.f32.mrb[24].mxu0 }
 0x860   : > { %v2527_v18 = vadd.f32 %v2526_v50, %v2201_v3  ;;  %v2528_v28 = vpop.f32.mrb[25].mxu0 }
 0x861   : > { %v2529_v59 = vadd.f32 %v2528_v28, %v2201_v3  ;;  %v2530_v15 = vpop.f32.mrb[26].mxu0  ;;  %2762 = vmatprep.subr.bf16.mxu1 %v2716_v27 }
 0x862   : > { %v2531_v39 = vadd.f32 %v2530_v15, %v2206_v32  ;;  %v2532_v40 = vpop.f32.mrb[27].mxu0  ;;  %2763 = vmatpush1.bf16.msra.mxu1 %v2715_v46  ;;  %v2661_v57 = vmax.f32 %v2527_v18, 0.0  ;;  %v2241_v18 = vpop.permute.xlu1 %2240 }
 0x863   : > { %v2533_v36 = vadd.f32 %v2532_v40, %v2206_v32  ;;  %v2662_v43 = vmax.f32 %v2529_v59, 0.0 }
 0x864   : > { %v2663_v21 = vmax.f32 %v2531_v39, 0.0  ;;  %v2246_v39 = vpop.permute.xlu0 %2245 }
 0x865   : > { %v2664_v7 = vmax.f32 %v2533_v36, 0.0 }
 0x866   : > { %v2717_v41 = vpack.c.bf16 %v2663_v21, %v2661_v57 }
 0x867   : > { %v2718_v19 = vpack.c.bf16 %v2664_v7, %v2662_v43  ;;  %v2536_v16 = vpop.f32.mrb[28].mxu0 }
 0x868   : > { %v2537_v63 = vadd.f32 %v2536_v16, %v2211_v2  ;;  %v2538_v24 = vpop.f32.mrb[29].mxu0 }
 0x869   : > { %v2539_v49 = vadd.f32 %v2538_v24, %v2211_v2  ;;  %v2540_v48 = vpop.f32.mrb[30].mxu0  ;;  %2764 = vmatprep.subr.bf16.mxu1 %v2718_v19 }
 0x86a   : > { %v2541_v38 = vadd.f32 %v2540_v48, %v2216_v9  ;;  %v2542_v42 = vpop.f32.mrb[31].mxu0  ;;  %2765 = vmatpush1.bf16.msra.mxu1 %v2717_v41  ;;  %v2665_v22 = vmax.f32 %v2537_v63, 0.0  ;;  %v2251_v63 = vpop.permute.xlu1 %2250 }
 0x86b   : > { %v2543_v55 = vadd.f32 %v2542_v42, %v2216_v9  ;;  %v2666_v58 = vmax.f32 %v2539_v49, 0.0 }
 0x86c   : > { %v2667_v29 = vmax.f32 %v2541_v38, 0.0  ;;  %v2256_v38 = vpop.permute.xlu0 %2255 }
 0x86d   : > { %v2668_v34 = vmax.f32 %v2543_v55, 0.0 }
 0x86e   : > { %v2719_v54 = vpack.c.bf16 %v2667_v29, %v2665_v22 }
 0x86f   : > { %v2720_v61 = vpack.c.bf16 %v2668_v34, %v2666_v58  ;;  %v2546_v17 = vpop.f32.mrb[32].mxu0 }
 0x870   : > { %v2547_v51 = vadd.f32 %v2546_v17, %v2221_v0  ;;  %v2548_v44 = vpop.f32.mrb[33].mxu0 }
 0x871   : > { %v2549_v33 = vadd.f32 %v2548_v44, %v2221_v0  ;;  %v2550_v37 = vpop.f32.mrb[34].mxu0  ;;  %2766 = vmatprep.subr.bf16.mxu1 %v2720_v61 }
 0x872   : > { %v2551_v26 = vadd.f32 %v2550_v37, %v2226_v52  ;;  %v2552_v47 = vpop.f32.mrb[35].mxu0  ;;  %2767 = vmatpush1.bf16.msra.mxu1 %v2719_v54  ;;  %v2669_v62 = vmax.f32 %v2547_v51, 0.0  ;;  %v2261_v51 = vpop.permute.xlu1 %2260 }
 0x873   : > { %v2553_v11 = vadd.f32 %v2552_v47, %v2226_v52  ;;  %v2670_v30 = vmax.f32 %v2549_v33, 0.0 }
 0x874   : > { %v2671_v56 = vmax.f32 %v2551_v26, 0.0  ;;  %v2266_v26 = vpop.permute.xlu0 %2265 }
 0x875   : > { %v2672_v12 = vmax.f32 %v2553_v11, 0.0 }
 0x876   : > { %v2721_v14 = vpack.c.bf16 %v2671_v56, %v2669_v62 }
 0x877   : > { %v2722_v25 = vpack.c.bf16 %v2672_v12, %v2670_v30  ;;  %v2556_v4 = vpop.f32.mrb[36].mxu0 }
 0x878   : > { %v2557_v10 = vadd.f32 %v2556_v4, %v2231_v53  ;;  %v2558_v45 = vpop.f32.mrb[37].mxu0 }
 0x879   : > { %v2559_v8 = vadd.f32 %v2558_v45, %v2231_v53  ;;  %v2560_v60 = vpop.f32.mrb[38].mxu0  ;;  %2768 = vmatprep.subr.bf16.mxu1 %v2722_v25 }
 0x87a   : > { %v2561_v13 = vadd.f32 %v2560_v60, %v2236_v23  ;;  %v2562_v1 = vpop.f32.mrb[39].mxu0  ;;  %2769 = vmatpush1.bf16.msra.mxu1 %v2721_v14  ;;  %v2673_v6 = vmax.f32 %v2557_v10, 0.0  ;;  %v2271_v10 = vpop.permute.xlu1 %2270 }
 0x87b   : > { %v2563_v31 = vadd.f32 %v2562_v1, %v2236_v23  ;;  %v2674_v3 = vmax.f32 %v2559_v8, 0.0 }
 0x87c   : > { %v2675_v46 = vmax.f32 %v2561_v13, 0.0  ;;  %v2276_v13 = vpop.permute.xlu0 %2275 }
 0x87d   : > { %v2676_v27 = vmax.f32 %v2563_v31, 0.0 }
 0x87e   : > { %v2723_v50 = vpack.c.bf16 %v2675_v46, %v2673_v6 }
 0x87f   : > { %v2724_v28 = vpack.c.bf16 %v2676_v27, %v2674_v3  ;;  %v2566_v32 = vpop.f32.mrb[40].mxu0 }
 0x880   : > { %v2567_v59 = vadd.f32 %v2566_v32, %v2241_v18  ;;  %v2568_v15 = vpop.f32.mrb[41].mxu0 }
 0x881   : > { %v2569_v40 = vadd.f32 %v2568_v15, %v2241_v18  ;;  %v2570_v36 = vpop.f32.mrb[42].mxu0  ;;  %2770 = vmatprep.subr.bf16.mxu1 %v2724_v28 }
 0x882   : > { %v2571_v57 = vadd.f32 %v2570_v36, %v2246_v39  ;;  %v2572_v21 = vpop.f32.mrb[43].mxu0  ;;  %2771 = vmatpush1.bf16.msra.mxu1 %v2723_v50  ;;  %v2677_v7 = vmax.f32 %v2567_v59, 0.0  ;;  %v2281_v59 = vpop.permute.xlu1 %2280 }
 0x883   : > { %v2573_v43 = vadd.f32 %v2572_v21, %v2246_v39  ;;  %v2678_v2 = vmax.f32 %v2569_v40, 0.0 }
 0x884   : > { %v2679_v41 = vmax.f32 %v2571_v57, 0.0  ;;  %v2286_v57 = vpop.permute.xlu0 %2285 }
 0x885   : > { %v2680_v19 = vmax.f32 %v2573_v43, 0.0 }
 0x886   : > { %v2725_v16 = vpack.c.bf16 %v2679_v41, %v2677_v7 }
 0x887   : > { %v2726_v24 = vpack.c.bf16 %v2680_v19, %v2678_v2  ;;  %v2576_v9 = vpop.f32.mrb[44].mxu0 }
 0x888   : > { %v2577_v49 = vadd.f32 %v2576_v9, %v2251_v63  ;;  %v2578_v48 = vpop.f32.mrb[45].mxu0 }
 0x889   : > { %v2579_v42 = vadd.f32 %v2578_v48, %v2251_v63  ;;  %v2580_v55 = vpop.f32.mrb[46].mxu0  ;;  %2772 = vmatprep.subr.bf16.mxu1 %v2726_v24 }
 0x88a   : > { %v2581_v22 = vadd.f32 %v2580_v55, %v2256_v38  ;;  %v2582_v29 = vpop.f32.mrb[47].mxu0  ;;  %2773 = vmatpush1.bf16.msra.mxu1 %v2725_v16  ;;  %v2681_v34 = vmax.f32 %v2577_v49, 0.0  ;;  %v2291_v49 = vpop.permute.xlu1 %2290 }
 0x88b   : > { %v2583_v58 = vadd.f32 %v2582_v29, %v2256_v38  ;;  %v2682_v0 = vmax.f32 %v2579_v42, 0.0 }
 0x88c   : > { %v2683_v54 = vmax.f32 %v2581_v22, 0.0  ;;  %v2296_v22 = vpop.permute.xlu0 %2295 }
 0x88d   : > { %v2684_v61 = vmax.f32 %v2583_v58, 0.0 }
 0x88e   : > { %v2727_v17 = vpack.c.bf16 %v2683_v54, %v2681_v34 }
 0x88f   : > { %v2728_v44 = vpack.c.bf16 %v2684_v61, %v2682_v0  ;;  %v2586_v52 = vpop.f32.mrb[48].mxu0 }
 0x890   : > { %v2587_v33 = vadd.f32 %v2586_v52, %v2261_v51  ;;  %v2588_v37 = vpop.f32.mrb[49].mxu0 }
 0x891   : > { %v2589_v47 = vadd.f32 %v2588_v37, %v2261_v51  ;;  %v2590_v11 = vpop.f32.mrb[50].mxu0  ;;  %2774 = vmatprep.subr.bf16.mxu1 %v2728_v44 }
 0x892   : > { %v2591_v62 = vadd.f32 %v2590_v11, %v2266_v26  ;;  %v2592_v56 = vpop.f32.mrb[51].mxu0  ;;  %2775 = vmatpush1.bf16.msra.mxu1 %v2727_v17  ;;  %v2685_v12 = vmax.f32 %v2587_v33, 0.0  ;;  %v2301_v33 = vpop.permute.xlu1 %2300 }
 0x893   : > { %v2593_v30 = vadd.f32 %v2592_v56, %v2266_v26  ;;  %v2686_v53 = vmax.f32 %v2589_v47, 0.0 }
 0x894   : > { %v2687_v14 = vmax.f32 %v2591_v62, 0.0  ;;  %v2306_v62 = vpop.permute.xlu0 %2305 }
 0x895   : > { %v2688_v25 = vmax.f32 %v2593_v30, 0.0 }
 0x896   : > { %v2729_v4 = vpack.c.bf16 %v2687_v14, %v2685_v12 }
 0x897   : > { %v2730_v45 = vpack.c.bf16 %v2688_v25, %v2686_v53  ;;  %v2596_v23 = vpop.f32.mrb[52].mxu0 }
 0x898   : > { %v2597_v8 = vadd.f32 %v2596_v23, %v2271_v10  ;;  %v2598_v60 = vpop.f32.mrb[53].mxu0 }
 0x899   : > { %v2599_v1 = vadd.f32 %v2598_v60, %v2271_v10  ;;  %v2600_v31 = vpop.f32.mrb[54].mxu0  ;;  %2776 = vmatprep.subr.bf16.mxu1 %v2730_v45 }
 0x89a   : > { %v2601_v6 = vadd.f32 %v2600_v31, %v2276_v13  ;;  %v2602_v46 = vpop.f32.mrb[55].mxu0  ;;  %2777 = vmatpush1.bf16.msra.mxu1 %v2729_v4  ;;  %v2689_v27 = vmax.f32 %v2597_v8, 0.0  ;;  %v2311_v8 = vpop.permute.xlu1 %2310 }
 0x89b   : > { %v2603_v3 = vadd.f32 %v2602_v46, %v2276_v13  ;;  %v2690_v18 = vmax.f32 %v2599_v1, 0.0 }
 0x89c   : > { %v2691_v50 = vmax.f32 %v2601_v6, 0.0  ;;  %v2316_v6 = vpop.permute.xlu0 %2315 }
 0x89d   : > { %v2692_v28 = vmax.f32 %v2603_v3, 0.0 }
 0x89e   : > { %v2731_v32 = vpack.c.bf16 %v2691_v50, %v2689_v27 }
 0x89f   : > { %v2732_v15 = vpack.c.bf16 %v2692_v28, %v2690_v18  ;;  %v2606_v39 = vpop.f32.mrb[56].mxu0 }
 0x8a0   : > { %v2607_v40 = vadd.f32 %v2606_v39, %v2281_v59  ;;  %v2608_v36 = vpop.f32.mrb[57].mxu0 }
 0x8a1   : > { %v2609_v21 = vadd.f32 %v2608_v36, %v2281_v59  ;;  %v2610_v43 = vpop.f32.mrb[58].mxu0  ;;  %2778 = vmatprep.subr.bf16.mxu1 %v2732_v15  ;;  %v2743_v36 = vpop.permute.xlu1 %2742 }
 0x8a2   : > { %v2611_v7 = vadd.f32 %v2610_v43, %v2286_v57  ;;  %v2612_v41 = vpop.f32.mrb[59].mxu0  ;;  %2779 = vmatpush1.bf16.msra.mxu1 %v2731_v32  ;;  %v2693_v19 = vmax.f32 %v2607_v40, 0.0 }
 0x8a3   : > { %v2613_v2 = vadd.f32 %v2612_v41, %v2286_v57  ;;  %v2694_v63 = vmax.f32 %v2609_v21, 0.0 }
 0x8a4   : > { %v2695_v16 = vmax.f32 %v2611_v7, 0.0 }
 0x8a5   : > { %v2696_v24 = vmax.f32 %v2613_v2, 0.0 }
 0x8a6   : > { %v2733_v9 = vpack.c.bf16 %v2695_v16, %v2693_v19 }
 0x8a7   : > { %v2734_v48 = vpack.c.bf16 %v2696_v24, %v2694_v63  ;;  %v2616_v38 = vpop.f32.mrb[60].mxu0 }
 0x8a8   : > { %v2617_v42 = vadd.f32 %v2616_v38, %v2291_v49  ;;  %v2618_v55 = vpop.f32.mrb[61].mxu0 }
 0x8a9   : > { %v2619_v29 = vadd.f32 %v2618_v55, %v2291_v49  ;;  %v2620_v58 = vpop.f32.mrb[62].mxu0  ;;  %2780 = vmatprep.subr.bf16.mxu1 %v2734_v48 }
 0x8aa   : > { %v2621_v34 = vadd.f32 %v2620_v58, %v2296_v22  ;;  %v2622_v54 = vpop.f32.mrb[63].mxu0  ;;  %2781 = vmatpush1.bf16.msra.mxu1 %v2733_v9  ;;  %v2697_v61 = vmax.f32 %v2617_v42, 0.0 }
 0x8ab   : > { %v2623_v0 = vadd.f32 %v2622_v54, %v2296_v22  ;;  %v2698_v51 = vmax.f32 %v2619_v29, 0.0 }
 0x8ac   : > { %v2699_v17 = vmax.f32 %v2621_v34, 0.0 }
 0x8ad   : > { %v2700_v44 = vmax.f32 %v2623_v0, 0.0 }
 0x8ae   : > { %v2735_v52 = vpack.c.bf16 %v2699_v17, %v2697_v61 }
 0x8af   : > { %v2736_v37 = vpack.c.bf16 %v2700_v44, %v2698_v51  ;;  %v2626_v26 = vpop.f32.mrb[64].mxu0 }
 0x8b0   : > { %v2627_v47 = vadd.f32 %v2626_v26, %v2301_v33  ;;  %v2628_v11 = vpop.f32.mrb[65].mxu0 }
 0x8b1   : > { %v2629_v56 = vadd.f32 %v2628_v11, %v2301_v33  ;;  %v2630_v30 = vpop.f32.mrb[66].mxu0  ;;  %2782 = vmatprep.subr.bf16.mxu1 %v2736_v37 }
 0x8b2   : > { %v2631_v12 = vadd.f32 %v2630_v30, %v2306_v62  ;;  %v2632_v14 = vpop.f32.mrb[67].mxu0  ;;  %2783 = vmatpush1.bf16.msra.mxu1 %v2735_v52  ;;  %v2701_v25 = vmax.f32 %v2627_v47, 0.0 }
 0x8b3   : > { %v2633_v53 = vadd.f32 %v2632_v14, %v2306_v62  ;;  %v2702_v10 = vmax.f32 %v2629_v56, 0.0 }
 0x8b4   : > { %v2703_v4 = vmax.f32 %v2631_v12, 0.0 }
 0x8b5   : > { %v2704_v45 = vmax.f32 %v2633_v53, 0.0 }
 0x8b6   : > { %v2737_v23 = vpack.c.bf16 %v2703_v4, %v2701_v25 }
 0x8b7   : > { %v2738_v60 = vpack.c.bf16 %v2704_v45, %v2702_v10  ;;  %v2636_v13 = vpop.f32.mrb[68].mxu0 }
 0x8b8   : > { %v2637_v1 = vadd.f32 %v2636_v13, %v2311_v8  ;;  %v2638_v31 = vpop.f32.mrb[69].mxu0  ;;  %v2857_v13 = vpop.permute.xlu0 %2856 }
 0x8b9   : > { %v2639_v46 = vadd.f32 %v2638_v31, %v2311_v8  ;;  %v2640_v3 = vpop.f32.mrb[70].mxu0  ;;  %2784 = vmatprep.subr.bf16.mxu1 %v2738_v60 }
 0x8ba   : > { %v2641_v27 = vadd.f32 %v2640_v3, %v2316_v6  ;;  %v2642_v50 = vpop.f32.mrb[71].mxu0  ;;  %2785 = vmatpush1.bf16.msra.mxu1 %v2737_v23  ;;  %v2705_v28 = vmax.f32 %v2637_v1, 0.0  ;;  %v2864_v3 = vrot.slane %v2857_v13, %v4231_v5 }
 0x8bb   : > { %v2643_v18 = vadd.f32 %v2642_v50, %v2316_v6  ;;  %v2706_v59 = vmax.f32 %v2639_v46, 0.0  ;;  %v2869_v6 = vpop.permute.xlu1 %2868 }
 0x8bc   : > { %v2707_v32 = vmax.f32 %v2641_v27, 0.0  ;;  %v2876_v50 = vrot.slane %v2869_v6, %v4231_v5 }
 0x8bd   : > { %v2708_v15 = vmax.f32 %v2643_v18, 0.0 }
 0x8be   : > { %v2739_v39 = vpack.c.bf16 %v2707_v32, %v2705_v28 }
 0x8bf   : > { %v2740_v40 = vpack.c.bf16 %v2708_v15, %v2706_v59 }
 0x8c1   : > { %2786 = vmatprep.subr.bf16.mxu1 %v2740_v40 }
 0x8c2   : > { %2787 = vmatpush1.bf16.msra.mxu1 %v2739_v39 }
 0x8c5   : > { %2789 = vmatmul.mubr.bf16.vlgmr.msra.gmra.mrb[152].mxu1 %v4386_v35 }
 0x998   : > { %v2790_v57 = vpop.f32.mrb[152].mxu1 }
 0x999   : > { %v2792_v21 = vpop.f32.mrb[153].mxu1  ;;  %v2791_v43 = vadd.f32 %v2790_v57, %v2743_v36 }
 0x99a   : > { %v2793_v7 = vadd.f32 %v2792_v21, %v2743_v36  ;;  %v2794_v41 = vpop.f32.mrb[154].mxu1 }
 0x99b   : > { %v2795_v2 = vpop.f32.mrb[155].mxu1 }
 0x99c   : > { %v2799_v19 = vcombine.low %v2791_v43, %v2793_v7 }
 0x99e   : > { %v2801_v16 = vadd.f32 %v2799_v19, %v4248_v20 }
 0x9a0   : > { %v2803_v63 = vcombine.high %v2801_v16, %v2801_v16  ;;  %v2805_v24 = vsel %vm487_vm2, %v2801_v16, 0.0 }
 0x9a1   : > { %v2806_v9 = vrot.slane %v2805_v24, 4 }
 0x9a2   : > { %v2812_v49 = vsel %vm487_vm2, %v2803_v63, 0.0 }
 0x9a3   : > { %v2807_v48 = vadd.f32 %v2806_v9, %v2805_v24  ;;  %v2813_v38 = vrot.slane %v2812_v49, 4 }
 0x9a5   : > { %v2808_v42 = vrot.slane %v2807_v48, 2  ;;  %v2814_v35 = vadd.f32 %v2813_v38, %v2812_v49 }
 0x9a7   : > { %v2809_v55 = vadd.f32 %v2808_v42, %v2807_v48  ;;  %v2815_v22 = vrot.slane %v2814_v35, 2 }
 0x9a9   : > { %v2810_v29 = vrot.slane %v2809_v55, 1  ;;  %v2816_v58 = vadd.f32 %v2815_v22, %v2814_v35 }
 0x9ab   : > { %v2811_v34 = vadd.f32 %v2810_v29, %v2809_v55  ;;  %v2817_v54 = vrot.slane %v2816_v58, 1 }
 0x9ad   : > { %v2818_v0 = vadd.f32 %v2817_v54, %v2816_v58  ;;  %v2819_v61 = vmul.f32 0.25, %v2811_v34 }
 0x9af   : > { %v2820_v17 = vmul.f32 0.25, %v2818_v0 }
 0x9b1   : > { %v2823_v20 = vcombine.low %v2819_v61, %v2820_v17 }
 0x9b3   : > { %v2825_v51 = vsub.f32 %v2801_v16, %v2823_v20 }
 0x9b5   : > { %v2826_v44 = vmul.f32 %v2825_v51, %v2825_v51 }
 0x9b7   : > { %v2828_v52 = vcombine.high %v2826_v44, %v2826_v44  ;;  %v2830_v33 = vsel %vm487_vm2, %v2826_v44, 0.0 }
 0x9b8   : > { %v2831_v37 = vrot.slane %v2830_v33, 4 }
 0x9b9   : > { %v2837_v26 = vsel %vm487_vm2, %v2828_v52, 0.0 }
 0x9ba   : > { %v2832_v47 = vadd.f32 %v2831_v37, %v2830_v33  ;;  %v2838_v11 = vrot.slane %v2837_v26, 4 }
 0x9bc   : > { %v2833_v62 = vrot.slane %v2832_v47, 2  ;;  %v2839_v56 = vadd.f32 %v2838_v11, %v2837_v26 }
 0x9be   : > { %v2834_v30 = vadd.f32 %v2833_v62, %v2832_v47  ;;  %v2840_v12 = vrot.slane %v2839_v56, 2 }
 0x9c0   : > { %v2835_v14 = vrot.slane %v2834_v30, 1  ;;  %v2841_v53 = vadd.f32 %v2840_v12, %v2839_v56 }
 0x9c2   : > { %v2836_v25 = vadd.f32 %v2835_v14, %v2834_v30  ;;  %v2842_v4 = vrot.slane %v2841_v53, 1 }
 0x9c4   : > { %v2843_v10 = vadd.f32 %v2842_v4, %v2841_v53  ;;  %v2844_v45 = vmul.f32 0.25, %v2836_v25 }
 0x9c6   : > { %v2845_v23 = vmul.f32 0.25, %v2843_v10  ;;  %v2846_v8 = vadd.f32 1e-05, %v2844_v45 }
 0x9c8   : > { %v2847_v60 = vadd.f32 1e-05, %v2845_v23  ;;  %3405 = vrsqrt.f32 %v2846_v8 }
 0x9ca   : > { %3407 = vrsqrt.f32 %v2847_v60 }
 0x9d2   : > { %v3406_v1 = vpop.eup %3405 }
 0x9d4   : > { %v3408_v31 = vpop.eup %3407 }
 0x9d5   : > { %v2852_v46 = vcombine.low %v3406_v1, %v3408_v31 }
 0x9d7   : > { %v2854_v27 = vmul.f32 %v2852_v46, %v2825_v51 }
 0x9d9   : > { %v2866_v18 = vmul.f32 %v2864_v3, %v2854_v27 }
 0x9db   : > { %v2878_v28 = vadd.f32 %v2876_v50, %v2866_v18 }
 0x9dd   : > { %2879 = vst [vmem:[%s336_s8] sm:$0xff] %v2878_v28 }
 0x9de PF: > { %s17_s26 = sadd.s32 1, %s3434_s26   ;;  %s4534_s24 = smov %s3430_s25 }
 0x9df   : > { %p14_p5 = scmp.ge.s32.totalorder %s17_s26, 4   ;;  %s4535_s25 = smov %s4537_s27 }
 0x9e1   :  { %16 = sbr.rel (!%p14_p5) target bundleno = 2 (0x2), region = 81 }

</bundles_post_ra>
